<compile_context>
chip_gen: v6e
topology: v6e:2x2x1
jax: 0.10.0
libtpu: 0.0.40
codegen_flags: <defaults>
</compile_context>

<pallas_src>
import functools

import jax
import jax.numpy as jnp
from jax import lax
from jax.experimental import pallas as pl
from jax.experimental.pallas import tpu as pltpu


_UNROLL_SEQ_MAX = 16   # fully unroll (static indices) up to this many timesteps
_FORI_UNROLL = 4       # partial unroll for the fori_loop fallback


def _round_up(x, m):
    return (x + m - 1) // m * m


def _sigmoid(x):
    # sigmoid(x) == 0.5 * (tanh(0.5 * x) + 1): one EUP op instead of exp + recip.
    return 0.5 * jnp.tanh(0.5 * x) + 0.5


# ----------------------------------------------------------------------------
# Fused kernel
# ----------------------------------------------------------------------------
def _make_fused_lstm_kernel(num_layers, seq_len, bp, hp):
    """Build the fused (all layers + FC head) forward kernel.

    Ref order (inputs, outputs, scratch):
      x_ref                           (S, Bp, F)         time-major, batch-padded input
      [w_ih, w_hh, b] per layer       (K_l, 4Hp), (Hp, 4Hp), (1, 4Hp)   gate-padded
      fcw_ref, fcb_ref                (Hp, O), (1, O)
      out_ref                         (Bp, O)
      gates_ref  scratch              (S, Bp, 4Hp)       precomputed x@W_ih^T + bias
      hseq_ref   scratch (L>1 only)   (S, Bp, Hp)        inter-layer hidden sequence
    """

    def kernel(x_ref, *refs):
        ws_ih = [refs[3 * l + 0] for l in range(num_layers)]
        ws_hh = [refs[3 * l + 1] for l in range(num_layers)]
        bs = [refs[3 * l + 2] for l in range(num_layers)]
        idx = 3 * num_layers
        fcw_ref = refs[idx]
        fcb_ref = refs[idx + 1]
        out_ref = refs[idx + 2]
        gates_ref = refs[idx + 3]
        hseq_ref = refs[idx + 4] if num_layers > 1 else None

        h_last = None
        for layer in range(num_layers):
            # ---- hoisted input->hidden matmul: one big MXU pass per layer ----
            xin = x_ref[...] if layer == 0 else hseq_ref[...]
            xin2 = xin.reshape(seq_len * bp, xin.shape[-1])          # (S*Bp, K)
            gx = jnp.dot(xin2, ws_ih[layer][...],
                         preferred_element_type=jnp.float32)
            gx = gx + bs[layer][...]            # bias folded once per layer
            gates_ref[...] = gx.reshape(seq_len, bp, 4 * hp)

            w_hh = ws_hh[layer][...]            # hoisted out of the time loop
            write_seq = layer < num_layers - 1

            def step(t, h_prev, c_prev, *, w_hh=w_hh, write_seq=write_seq):
                # Only the recurrent (Bp, Hp) @ (Hp, 4Hp) dot remains per step.
                gates = gates_ref[t] + jnp.dot(
                    h_prev, w_hh, preferred_element_type=jnp.float32)
                # PyTorch gate order i, f, g, o; slices are lane-aligned (Hp%128==0).
                i_g = _sigmoid(gates[:, 0 * hp:1 * hp])
                f_g = _sigmoid(gates[:, 1 * hp:2 * hp])
                g_g = jnp.tanh(gates[:, 2 * hp:3 * hp])
                o_g = _sigmoid(gates[:, 3 * hp:4 * hp])
                c_new = f_g * c_prev + i_g * g_g
                h_new = o_g * jnp.tanh(c_new)
                if write_seq:
                    hseq_ref[t] = h_new
                return h_new, c_new

            # h / c live in vregs (loop carries), not VMEM scratch.
            h = jnp.zeros((bp, hp), jnp.float32)
            c = jnp.zeros((bp, hp), jnp.float32)
            if seq_len <= _UNROLL_SEQ_MAX:
                for t in range(seq_len):        # fully unrolled, static indices
                    h, c = step(t, h, c)
            else:
                def body(t, carry):
                    return step(t, carry[0], carry[1])
                h, c = lax.fori_loop(0, seq_len, body, (h, c),
                                     unroll=_FORI_UNROLL)
            h_last = h

        # Fused FC head on the final hidden state of the last layer.
        out_ref[...] = (jnp.dot(h_last, fcw_ref[...],
                                preferred_element_type=jnp.float32)
                        + fcb_ref[...]).astype(out_ref.dtype)

    return kernel


# ----------------------------------------------------------------------------
# Wrapper
# ----------------------------------------------------------------------------
@functools.partial(jax.jit, static_argnames=("hidden_size", "num_layers"))
def lstm_model_forward(x, packed, hidden_size, num_layers):
    """x: (batch, seq_len, input_size) -> (batch, output_size)."""
    batch, seq_len, in_size = x.shape
    hp = _round_up(hidden_size, 128)
    bp = _round_up(batch, 8)
    out_features = packed["fc"]["w"].shape[-1]

    # Pad batch to a sublane multiple and go time-major so each timestep is a
    # leading-dim (Bp, ...) slice of a VMEM ref.  One cheap relayout of x.
    xp = jnp.zeros((bp, seq_len, in_size), jnp.float32).at[:batch].set(
        x.astype(jnp.float32))
    x_tm = jnp.transpose(xp, (1, 0, 2))                      # (S, Bp, F)

    inputs = [x_tm]
    n_elems = x_tm.size
    for layer in range(num_layers):
        p = packed["lstm"][layer]
        inputs += [p["w_ih"], p["w_hh"], p["b"]]
        n_elems += p["w_ih"].size + p["w_hh"].size + p["b"].size
    inputs += [packed["fc"]["w"], packed["fc"]["b"]]
    n_elems += packed["fc"]["w"].size + packed["fc"]["b"].size

    scratch = [pltpu.VMEM((seq_len, bp, 4 * hp), jnp.float32)]   # gates_x
    n_elems += seq_len * bp * 4 * hp
    if num_layers > 1:
        scratch.append(pltpu.VMEM((seq_len, bp, hp), jnp.float32))  # hseq
        n_elems += seq_len * bp * hp
    n_elems += bp * out_features

    # Size scoped VMEM to the actual resident footprint (with headroom), capped
    # to v7x's physical 64 MiB.
    vmem_limit = int(min(64 * 1024 * 1024,
                         max(16 * 1024 * 1024, 2 * 4 * n_elems)))

    kernel = _make_fused_lstm_kernel(num_layers, seq_len, bp, hp)
    out_p = pl.pallas_call(
        kernel,
        out_shape=jax.ShapeDtypeStruct((bp, out_features), jnp.float32),
        scratch_shapes=scratch,
        compiler_params=pltpu.CompilerParams(vmem_limit_bytes=vmem_limit),
    )(*inputs)
    return out_p[:batch]


# ----------------------------------------------------------------------------
# Parameter init (PyTorch layout, U(-1/sqrt(H), 1/sqrt(H))) and kernel packing
# ----------------------------------------------------------------------------
def init_params(key, input_size, hidden_size, num_layers, output_size):
    k = 1.0 / float(hidden_size) ** 0.5
    params = {"lstm": [], "fc": {}}
    for layer in range(num_layers):
        in_f = input_size if layer == 0 else hidden_size
        key, k1, k2, k3, k4 = jax.random.split(key, 5)
        params["lstm"].append({
            "w_ih": jax.random.uniform(k1, (4 * hidden_size, in_f), jnp.float32, -k, k),
            "w_hh": jax.random.uniform(k2, (4 * hidden_size, hidden_size), jnp.float32, -k, k),
            "b_ih": jax.random.uniform(k3, (4 * hidden_size,), jnp.float32, -k, k),
            "b_hh": jax.random.uniform(k4, (4 * hidden_size,), jnp.float32, -k, k),
        })
    key, k1, k2 = jax.random.split(key, 3)
    params["fc"] = {
        "w": jax.random.uniform(k1, (output_size, hidden_size), jnp.float32, -k, k),
        "b": jax.random.uniform(k2, (output_size,), jnp.float32, -k, k),
    }
    return params


def pack_params(raw, input_size, hidden_size, num_layers, output_size):
    """Lane-pad each gate to Hp=ceil(H/128)*128 columns (zeros elsewhere) and
    transpose weights so the kernel does x @ W (no concat, no per-step bias)."""
    H = hidden_size
    hp = _round_up(H, 128)
    packed = {"lstm": [], "fc": {}}
    for layer in range(num_layers):
        p = raw["lstm"][layer]
        k_in = input_size if layer == 0 else H
        k_pad = input_size if layer == 0 else hp          # layer>0 reads padded hseq
        w_ih = jnp.zeros((k_pad, 4 * hp), jnp.float32)
        w_hh = jnp.zeros((hp, 4 * hp), jnp.float32)
        bias = jnp.zeros((1, 4 * hp), jnp.float32)
        w_ih_t = p["w_ih"].T                              # (k_in, 4H)
        w_hh_t = p["w_hh"].T                              # (H, 4H)
        b = p["b_ih"] + p["b_hh"]
        for g in range(4):
            w_ih = w_ih.at[:k_in, g * hp:g * hp + H].set(w_ih_t[:, g * H:(g + 1) * H])
            w_hh = w_hh.at[:H, g * hp:g * hp + H].set(w_hh_t[:, g * H:(g + 1) * H])
            bias = bias.at[0, g * hp:g * hp + H].set(b[g * H:(g + 1) * H])
        packed["lstm"].append({"w_ih": w_ih, "w_hh": w_hh, "b": bias})
    fc_w = jnp.zeros((hp, output_size), jnp.float32).at[:H].set(raw["fc"]["w"].T)
    packed["fc"] = {"w": fc_w, "b": raw["fc"]["b"].reshape(1, output_size)}
    return packed


# ----------------------------------------------------------------------------
# Pure-JAX reference (silent correctness check)
# ----------------------------------------------------------------------------
def lstm_model_ref(x, raw, hidden_size, num_layers):
    H = hidden_size
    batch = x.shape[0]
    h_seq = jnp.transpose(x, (1, 0, 2)).astype(jnp.float32)   # (S, B, F)
    for layer in range(num_layers):
        p = raw["lstm"][layer]
        w_ih_t, w_hh_t = p["w_ih"].T, p["w_hh"].T
        b = p["b_ih"] + p["b_hh"]

        def step(carry, x_t, w_ih_t=w_ih_t, w_hh_t=w_hh_t, b=b):
            h, c = carry
            gates = x_t @ w_ih_t + h @ w_hh_t + b
            i_g = jax.nn.sigmoid(gates[:, 0 * H:1 * H])
            f_g = jax.nn.sigmoid(gates[:, 1 * H:2 * H])
            g_g = jnp.tanh(gates[:, 2 * H:3 * H])
            o_g = jax.nn.sigmoid(gates[:, 3 * H:4 * H])
            c_new = f_g * c + i_g * g_g
            h_new = o_g * jnp.tanh(c_new)
            return (h_new, c_new), h_new

        init = (jnp.zeros((batch, H), jnp.float32),
                jnp.zeros((batch, H), jnp.float32))
        (_, _), h_seq = lax.scan(step, init, h_seq)
    return h_seq[-1] @ raw["fc"]["w"].T + raw["fc"]["b"]


# ----------------------------------------------------------------------------
if __name__ == "__main__":
    input_size, hidden_size, num_layers, output_size = 16, 32, 2, 4
    batch, seq_len = 2, 8

    key = jax.random.PRNGKey(0)
    key, xkey = jax.random.split(key)
    x = jax.random.normal(xkey, (batch, seq_len, input_size), jnp.float32)

    raw_params = init_params(key, input_size, hidden_size, num_layers, output_size)
    packed_params = pack_params(raw_params, input_size, hidden_size,
                                num_layers, output_size)

    out = lstm_model_forward(x, packed_params, hidden_size, num_layers)
    out = jax.block_until_ready(out)

    ref = lstm_model_ref(x, raw_params, hidden_size, num_layers)
    assert out.shape == (batch, output_size)
    assert jnp.allclose(out, ref, atol=1e-4, rtol=1e-4), "mismatch vs JAX reference"

    print("KERNEL_OK")
</pallas_src>

<mosaic_0001>
module attributes {stable_mosaic.version = 11 : i64} {
  func.func @kernel(%arg0: memref<8x8x16xf32, #tpu.memory_space<vmem>>, %arg1: memref<16x512xf32, #tpu.memory_space<vmem>>, %arg2: memref<128x512xf32, #tpu.memory_space<vmem>>, %arg3: memref<1x512xf32, #tpu.memory_space<vmem>>, %arg4: memref<128x512xf32, #tpu.memory_space<vmem>>, %arg5: memref<128x512xf32, #tpu.memory_space<vmem>>, %arg6: memref<1x512xf32, #tpu.memory_space<vmem>>, %arg7: memref<128x4xf32, #tpu.memory_space<vmem>>, %arg8: memref<1x4xf32, #tpu.memory_space<vmem>>, %arg9: memref<8x4xf32, #tpu.memory_space<vmem>>, %arg10: memref<8x8x512xf32, #tpu.memory_space<vmem>>, %arg11: memref<8x8x128xf32, #tpu.memory_space<vmem>>) attributes {dimension_semantics = [], scalar_prefetch = 0 : i64, scratch_operands = 2 : i64, tpu.core_type = #tpu.core_type<tc>} {
    %c0 = arith.constant 0 : index
    %c0_0 = arith.constant 0 : index
    %c0_1 = arith.constant 0 : index
    %0 = vector.load %arg0[%c0, %c0_0, %c0_1] : memref<8x8x16xf32, #tpu.memory_space<vmem>>, vector<8x8x16xf32>
    %1 = vector.shape_cast %0 : vector<8x8x16xf32> to vector<64x16xf32>
    %c0_2 = arith.constant 0 : index
    %c0_3 = arith.constant 0 : index
    %2 = vector.load %arg1[%c0_2, %c0_3] : memref<16x512xf32, #tpu.memory_space<vmem>>, vector<16x512xf32>
    %cst = arith.constant dense<0.000000e+00> : vector<64x512xf32>
    %3 = tpu.matmul %1, %2, %cst {dimension_numbers = #tpu.dot_dimension_numbers<[1], [0], [0], [1], [0, 0, 1, 1], [], []>} : vector<64x16xf32>, vector<16x512xf32>, vector<64x512xf32> -> vector<64x512xf32>
    %c0_4 = arith.constant 0 : index
    %c0_5 = arith.constant 0 : index
    %4 = vector.load %arg3[%c0_4, %c0_5] : memref<1x512xf32, #tpu.memory_space<vmem>>, vector<1x512xf32>
    %5 = vector.broadcast %4 : vector<1x512xf32> to vector<64x512xf32>
    %6 = arith.addf %3, %5 : vector<64x512xf32>
    %7 = vector.shape_cast %6 : vector<64x512xf32> to vector<8x8x512xf32>
    %c0_6 = arith.constant 0 : index
    %c0_7 = arith.constant 0 : index
    %c0_8 = arith.constant 0 : index
    %8 = vector.load %arg10[%c0_6, %c0_7, %c0_8] : memref<8x8x512xf32, #tpu.memory_space<vmem>>, vector<8x8x512xf32>
    tpu.vector_store %arg10[%c0_6, %c0_7, %c0_8], %7 {strides = array<i32>} : memref<8x8x512xf32, #tpu.memory_space<vmem>>, vector<8x8x512xf32>,
    %c0_9 = arith.constant 0 : index
    %c0_10 = arith.constant 0 : index
    %9 = vector.load %arg2[%c0_9, %c0_10] : memref<128x512xf32, #tpu.memory_space<vmem>>, vector<128x512xf32>
    %cst_11 = arith.constant 0.000000e+00 : f32
    %10 = vector.broadcast %cst_11 : f32 to vector<8x128xf32>
    %cst_12 = arith.constant 0.000000e+00 : f32
    %11 = vector.broadcast %cst_12 : f32 to vector<8x128xf32>
    %c0_13 = arith.constant 0 : index
    %c0_14 = arith.constant 0 : index
    %c0_15 = arith.constant 0 : index
    %12 = vector.load %arg10[%c0_13, %c0_14, %c0_15] : memref<8x8x512xf32, #tpu.memory_space<vmem>>, vector<1x8x512xf32>
    %13 = vector.shape_cast %12 : vector<1x8x512xf32> to vector<8x512xf32>
    %cst_16 = arith.constant dense<0.000000e+00> : vector<8x512xf32>
    %14 = tpu.matmul %10, %9, %cst_16 {dimension_numbers = #tpu.dot_dimension_numbers<[1], [0], [0], [1], [0, 0, 1, 1], [], []>} : vector<8x128xf32>, vector<128x512xf32>, vector<8x512xf32> -> vector<8x512xf32>
    %15 = arith.addf %13, %14 : vector<8x512xf32>
    %16 = vector.extract_strided_slice %15 {offsets = [0, 0], sizes = [8, 128], strides = [1, 1]} : vector<8x512xf32> to vector<8x128xf32>
    %cst_17 = arith.constant 5.000000e-01 : f32
    %17 = vector.broadcast %cst_17 : f32 to vector<8x128xf32>
    %18 = arith.mulf %17, %16 : vector<8x128xf32>
    %19 = math.tanh %18 : vector<8x128xf32>
    %cst_18 = arith.constant 5.000000e-01 : f32
    %20 = vector.broadcast %cst_18 : f32 to vector<8x128xf32>
    %21 = arith.mulf %20, %19 : vector<8x128xf32>
    %cst_19 = arith.constant 5.000000e-01 : f32
    %22 = vector.broadcast %cst_19 : f32 to vector<8x128xf32>
    %23 = arith.addf %21, %22 : vector<8x128xf32>
    %24 = vector.extract_strided_slice %15 {offsets = [0, 128], sizes = [8, 128], strides = [1, 1]} : vector<8x512xf32> to vector<8x128xf32>
    %cst_20 = arith.constant 5.000000e-01 : f32
    %25 = vector.broadcast %cst_20 : f32 to vector<8x128xf32>
    %26 = arith.mulf %25, %24 : vector<8x128xf32>
    %27 = math.tanh %26 : vector<8x128xf32>
    %cst_21 = arith.constant 5.000000e-01 : f32
    %28 = vector.broadcast %cst_21 : f32 to vector<8x128xf32>
    %29 = arith.mulf %28, %27 : vector<8x128xf32>
    %cst_22 = arith.constant 5.000000e-01 : f32
    %30 = vector.broadcast %cst_22 : f32 to vector<8x128xf32>
    %31 = arith.addf %29, %30 : vector<8x128xf32>
    %32 = vector.extract_strided_slice %15 {offsets = [0, 256], sizes = [8, 128], strides = [1, 1]} : vector<8x512xf32> to vector<8x128xf32>
    %33 = math.tanh %32 : vector<8x128xf32>
    %34 = vector.extract_strided_slice %15 {offsets = [0, 384], sizes = [8, 128], strides = [1, 1]} : vector<8x512xf32> to vector<8x128xf32>
    %cst_23 = arith.constant 5.000000e-01 : f32
    %35 = vector.broadcast %cst_23 : f32 to vector<8x128xf32>
    %36 = arith.mulf %35, %34 : vector<8x128xf32>
    %37 = math.tanh %36 : vector<8x128xf32>
    %cst_24 = arith.constant 5.000000e-01 : f32
    %38 = vector.broadcast %cst_24 : f32 to vector<8x128xf32>
    %39 = arith.mulf %38, %37 : vector<8x128xf32>
    %cst_25 = arith.constant 5.000000e-01 : f32
    %40 = vector.broadcast %cst_25 : f32 to vector<8x128xf32>
    %41 = arith.addf %39, %40 : vector<8x128xf32>
    %42 = arith.mulf %31, %11 : vector<8x128xf32>
    %43 = arith.mulf %23, %33 : vector<8x128xf32>
    %44 = arith.addf %42, %43 : vector<8x128xf32>
    %45 = math.tanh %44 : vector<8x128xf32>
    %46 = arith.mulf %41, %45 : vector<8x128xf32>
    %c0_26 = arith.constant 0 : index
    %c0_27 = arith.constant 0 : index
    %c0_28 = arith.constant 0 : index
    %47 = vector.load %arg11[%c0_26, %c0_27, %c0_28] : memref<8x8x128xf32, #tpu.memory_space<vmem>>, vector<1x8x128xf32>
    %48 = vector.shape_cast %47 : vector<1x8x128xf32> to vector<8x128xf32>
    %49 = vector.shape_cast %46 : vector<8x128xf32> to vector<1x8x128xf32>
    tpu.vector_store %arg11[%c0_26, %c0_27, %c0_28], %49 {strides = array<i32>} : memref<8x8x128xf32, #tpu.memory_space<vmem>>, vector<1x8x128xf32>,
    %c1 = arith.constant 1 : index
    %c0_29 = arith.constant 0 : index
    %c0_30 = arith.constant 0 : index
    %50 = vector.load %arg10[%c1, %c0_29, %c0_30] : memref<8x8x512xf32, #tpu.memory_space<vmem>>, vector<1x8x512xf32>
    %51 = vector.shape_cast %50 : vector<1x8x512xf32> to vector<8x512xf32>
    %cst_31 = arith.constant dense<0.000000e+00> : vector<8x512xf32>
    %52 = tpu.matmul %46, %9, %cst_31 {dimension_numbers = #tpu.dot_dimension_numbers<[1], [0], [0], [1], [0, 0, 1, 1], [], []>} : vector<8x128xf32>, vector<128x512xf32>, vector<8x512xf32> -> vector<8x512xf32>
    %53 = arith.addf %51, %52 : vector<8x512xf32>
    %54 = vector.extract_strided_slice %53 {offsets = [0, 0], sizes = [8, 128], strides = [1, 1]} : vector<8x512xf32> to vector<8x128xf32>
    %cst_32 = arith.constant 5.000000e-01 : f32
    %55 = vector.broadcast %cst_32 : f32 to vector<8x128xf32>
    %56 = arith.mulf %55, %54 : vector<8x128xf32>
    %57 = math.tanh %56 : vector<8x128xf32>
    %cst_33 = arith.constant 5.000000e-01 : f32
    %58 = vector.broadcast %cst_33 : f32 to vector<8x128xf32>
    %59 = arith.mulf %58, %57 : vector<8x128xf32>
    %cst_34 = arith.constant 5.000000e-01 : f32
    %60 = vector.broadcast %cst_34 : f32 to vector<8x128xf32>
    %61 = arith.addf %59, %60 : vector<8x128xf32>
    %62 = vector.extract_strided_slice %53 {offsets = [0, 128], sizes = [8, 128], strides = [1, 1]} : vector<8x512xf32> to vector<8x128xf32>
    %cst_35 = arith.constant 5.000000e-01 : f32
    %63 = vector.broadcast %cst_35 : f32 to vector<8x128xf32>
    %64 = arith.mulf %63, %62 : vector<8x128xf32>
    %65 = math.tanh %64 : vector<8x128xf32>
    %cst_36 = arith.constant 5.000000e-01 : f32
    %66 = vector.broadcast %cst_36 : f32 to vector<8x128xf32>
    %67 = arith.mulf %66, %65 : vector<8x128xf32>
    %cst_37 = arith.constant 5.000000e-01 : f32
    %68 = vector.broadcast %cst_37 : f32 to vector<8x128xf32>
    %69 = arith.addf %67, %68 : vector<8x128xf32>
    %70 = vector.extract_strided_slice %53 {offsets = [0, 256], sizes = [8, 128], strides = [1, 1]} : vector<8x512xf32> to vector<8x128xf32>
    %71 = math.tanh %70 : vector<8x128xf32>
    %72 = vector.extract_strided_slice %53 {offsets = [0, 384], sizes = [8, 128], strides = [1, 1]} : vector<8x512xf32> to vector<8x128xf32>
    %cst_38 = arith.constant 5.000000e-01 : f32
    %73 = vector.broadcast %cst_38 : f32 to vector<8x128xf32>
    %74 = arith.mulf %73, %72 : vector<8x128xf32>
    %75 = math.tanh %74 : vector<8x128xf32>
    %cst_39 = arith.constant 5.000000e-01 : f32
    %76 = vector.broadcast %cst_39 : f32 to vector<8x128xf32>
    %77 = arith.mulf %76, %75 : vector<8x128xf32>
    %cst_40 = arith.constant 5.000000e-01 : f32
    %78 = vector.broadcast %cst_40 : f32 to vector<8x128xf32>
    %79 = arith.addf %77, %78 : vector<8x128xf32>
    %80 = arith.mulf %69, %44 : vector<8x128xf32>
    %81 = arith.mulf %61, %71 : vector<8x128xf32>
    %82 = arith.addf %80, %81 : vector<8x128xf32>
    %83 = math.tanh %82 : vector<8x128xf32>
    %84 = arith.mulf %79, %83 : vector<8x128xf32>
    %c1_41 = arith.constant 1 : index
    %c0_42 = arith.constant 0 : index
    %c0_43 = arith.constant 0 : index
    %85 = vector.load %arg11[%c1_41, %c0_42, %c0_43] : memref<8x8x128xf32, #tpu.memory_space<vmem>>, vector<1x8x128xf32>
    %86 = vector.shape_cast %85 : vector<1x8x128xf32> to vector<8x128xf32>
    %87 = vector.shape_cast %84 : vector<8x128xf32> to vector<1x8x128xf32>
    tpu.vector_store %arg11[%c1_41, %c0_42, %c0_43], %87 {strides = array<i32>} : memref<8x8x128xf32, #tpu.memory_space<vmem>>, vector<1x8x128xf32>,
    %c2 = arith.constant 2 : index
    %c0_44 = arith.constant 0 : index
    %c0_45 = arith.constant 0 : index
    %88 = vector.load %arg10[%c2, %c0_44, %c0_45] : memref<8x8x512xf32, #tpu.memory_space<vmem>>, vector<1x8x512xf32>
    %89 = vector.shape_cast %88 : vector<1x8x512xf32> to vector<8x512xf32>
    %cst_46 = arith.constant dense<0.000000e+00> : vector<8x512xf32>
    %90 = tpu.matmul %84, %9, %cst_46 {dimension_numbers = #tpu.dot_dimension_numbers<[1], [0], [0], [1], [0, 0, 1, 1], [], []>} : vector<8x128xf32>, vector<128x512xf32>, vector<8x512xf32> -> vector<8x512xf32>
    %91 = arith.addf %89, %90 : vector<8x512xf32>
    %92 = vector.extract_strided_slice %91 {offsets = [0, 0], sizes = [8, 128], strides = [1, 1]} : vector<8x512xf32> to vector<8x128xf32>
    %cst_47 = arith.constant 5.000000e-01 : f32
    %93 = vector.broadcast %cst_47 : f32 to vector<8x128xf32>
    %94 = arith.mulf %93, %92 : vector<8x128xf32>
    %95 = math.tanh %94 : vector<8x128xf32>
    %cst_48 = arith.constant 5.000000e-01 : f32
    %96 = vector.broadcast %cst_48 : f32 to vector<8x128xf32>
    %97 = arith.mulf %96, %95 : vector<8x128xf32>
    %cst_49 = arith.constant 5.000000e-01 : f32
    %98 = vector.broadcast %cst_49 : f32 to vector<8x128xf32>
    %99 = arith.addf %97, %98 : vector<8x128xf32>
    %100 = vector.extract_strided_slice %91 {offsets = [0, 128], sizes = [8, 128], strides = [1, 1]} : vector<8x512xf32> to vector<8x128xf32>
    %cst_50 = arith.constant 5.000000e-01 : f32
    %101 = vector.broadcast %cst_50 : f32 to vector<8x128xf32>
    %102 = arith.mulf %101, %100 : vector<8x128xf32>
    %103 = math.tanh %102 : vector<8x128xf32>
    %cst_51 = arith.constant 5.000000e-01 : f32
    %104 = vector.broadcast %cst_51 : f32 to vector<8x128xf32>
    %105 = arith.mulf %104, %103 : vector<8x128xf32>
    %cst_52 = arith.constant 5.000000e-01 : f32
    %106 = vector.broadcast %cst_52 : f32 to vector<8x128xf32>
    %107 = arith.addf %105, %106 : vector<8x128xf32>
    %108 = vector.extract_strided_slice %91 {offsets = [0, 256], sizes = [8, 128], strides = [1, 1]} : vector<8x512xf32> to vector<8x128xf32>
    %109 = math.tanh %108 : vector<8x128xf32>
    %110 = vector.extract_strided_slice %91 {offsets = [0, 384], sizes = [8, 128], strides = [1, 1]} : vector<8x512xf32> to vector<8x128xf32>
    %cst_53 = arith.constant 5.000000e-01 : f32
    %111 = vector.broadcast %cst_53 : f32 to vector<8x128xf32>
    %112 = arith.mulf %111, %110 : vector<8x128xf32>
    %113 = math.tanh %112 : vector<8x128xf32>
    %cst_54 = arith.constant 5.000000e-01 : f32
    %114 = vector.broadcast %cst_54 : f32 to vector<8x128xf32>
    %115 = arith.mulf %114, %113 : vector<8x128xf32>
    %cst_55 = arith.constant 5.000000e-01 : f32
    %116 = vector.broadcast %cst_55 : f32 to vector<8x128xf32>
    %117 = arith.addf %115, %116 : vector<8x128xf32>
    %118 = arith.mulf %107, %82 : vector<8x128xf32>
    %119 = arith.mulf %99, %109 : vector<8x128xf32>
    %120 = arith.addf %118, %119 : vector<8x128xf32>
    %121 = math.tanh %120 : vector<8x128xf32>
    %122 = arith.mulf %117, %121 : vector<8x128xf32>
    %c2_56 = arith.constant 2 : index
    %c0_57 = arith.constant 0 : index
    %c0_58 = arith.constant 0 : index
    %123 = vector.load %arg11[%c2_56, %c0_57, %c0_58] : memref<8x8x128xf32, #tpu.memory_space<vmem>>, vector<1x8x128xf32>
    %124 = vector.shape_cast %123 : vector<1x8x128xf32> to vector<8x128xf32>
    %125 = vector.shape_cast %122 : vector<8x128xf32> to vector<1x8x128xf32>
    tpu.vector_store %arg11[%c2_56, %c0_57, %c0_58], %125 {strides = array<i32>} : memref<8x8x128xf32, #tpu.memory_space<vmem>>, vector<1x8x128xf32>,
    %c3 = arith.constant 3 : index
    %c0_59 = arith.constant 0 : index
    %c0_60 = arith.constant 0 : index
    %126 = vector.load %arg10[%c3, %c0_59, %c0_60] : memref<8x8x512xf32, #tpu.memory_space<vmem>>, vector<1x8x512xf32>
    %127 = vector.shape_cast %126 : vector<1x8x512xf32> to vector<8x512xf32>
    %cst_61 = arith.constant dense<0.000000e+00> : vector<8x512xf32>
    %128 = tpu.matmul %122, %9, %cst_61 {dimension_numbers = #tpu.dot_dimension_numbers<[1], [0], [0], [1], [0, 0, 1, 1], [], []>} : vector<8x128xf32>, vector<128x512xf32>, vector<8x512xf32> -> vector<8x512xf32>
    %129 = arith.addf %127, %128 : vector<8x512xf32>
    %130 = vector.extract_strided_slice %129 {offsets = [0, 0], sizes = [8, 128], strides = [1, 1]} : vector<8x512xf32> to vector<8x128xf32>
    %cst_62 = arith.constant 5.000000e-01 : f32
    %131 = vector.broadcast %cst_62 : f32 to vector<8x128xf32>
    %132 = arith.mulf %131, %130 : vector<8x128xf32>
    %133 = math.tanh %132 : vector<8x128xf32>
    %cst_63 = arith.constant 5.000000e-01 : f32
    %134 = vector.broadcast %cst_63 : f32 to vector<8x128xf32>
    %135 = arith.mulf %134, %133 : vector<8x128xf32>
    %cst_64 = arith.constant 5.000000e-01 : f32
    %136 = vector.broadcast %cst_64 : f32 to vector<8x128xf32>
    %137 = arith.addf %135, %136 : vector<8x128xf32>
    %138 = vector.extract_strided_slice %129 {offsets = [0, 128], sizes = [8, 128], strides = [1, 1]} : vector<8x512xf32> to vector<8x128xf32>
    %cst_65 = arith.constant 5.000000e-01 : f32
    %139 = vector.broadcast %cst_65 : f32 to vector<8x128xf32>
    %140 = arith.mulf %139, %138 : vector<8x128xf32>
    %141 = math.tanh %140 : vector<8x128xf32>
    %cst_66 = arith.constant 5.000000e-01 : f32
    %142 = vector.broadcast %cst_66 : f32 to vector<8x128xf32>
    %143 = arith.mulf %142, %141 : vector<8x128xf32>
    %cst_67 = arith.constant 5.000000e-01 : f32
    %144 = vector.broadcast %cst_67 : f32 to vector<8x128xf32>
    %145 = arith.addf %143, %144 : vector<8x128xf32>
    %146 = vector.extract_strided_slice %129 {offsets = [0, 256], sizes = [8, 128], strides = [1, 1]} : vector<8x512xf32> to vector<8x128xf32>
    %147 = math.tanh %146 : vector<8x128xf32>
    %148 = vector.extract_strided_slice %129 {offsets = [0, 384], sizes = [8, 128], strides = [1, 1]} : vector<8x512xf32> to vector<8x128xf32>
    %cst_68 = arith.constant 5.000000e-01 : f32
    %149 = vector.broadcast %cst_68 : f32 to vector<8x128xf32>
    %150 = arith.mulf %149, %148 : vector<8x128xf32>
    %151 = math.tanh %150 : vector<8x128xf32>
    %cst_69 = arith.constant 5.000000e-01 : f32
    %152 = vector.broadcast %cst_69 : f32 to vector<8x128xf32>
    %153 = arith.mulf %152, %151 : vector<8x128xf32>
    %cst_70 = arith.constant 5.000000e-01 : f32
    %154 = vector.broadcast %cst_70 : f32 to vector<8x128xf32>
    %155 = arith.addf %153, %154 : vector<8x128xf32>
    %156 = arith.mulf %145, %120 : vector<8x128xf32>
    %157 = arith.mulf %137, %147 : vector<8x128xf32>
    %158 = arith.addf %156, %157 : vector<8x128xf32>
    %159 = math.tanh %158 : vector<8x128xf32>
    %160 = arith.mulf %155, %159 : vector<8x128xf32>
    %c3_71 = arith.constant 3 : index
    %c0_72 = arith.constant 0 : index
    %c0_73 = arith.constant 0 : index
    %161 = vector.load %arg11[%c3_71, %c0_72, %c0_73] : memref<8x8x128xf32, #tpu.memory_space<vmem>>, vector<1x8x128xf32>
    %162 = vector.shape_cast %161 : vector<1x8x128xf32> to vector<8x128xf32>
    %163 = vector.shape_cast %160 : vector<8x128xf32> to vector<1x8x128xf32>
    tpu.vector_store %arg11[%c3_71, %c0_72, %c0_73], %163 {strides = array<i32>} : memref<8x8x128xf32, #tpu.memory_space<vmem>>, vector<1x8x128xf32>,
    %c4 = arith.constant 4 : index
    %c0_74 = arith.constant 0 : index
    %c0_75 = arith.constant 0 : index
    %164 = vector.load %arg10[%c4, %c0_74, %c0_75] : memref<8x8x512xf32, #tpu.memory_space<vmem>>, vector<1x8x512xf32>
    %165 = vector.shape_cast %164 : vector<1x8x512xf32> to vector<8x512xf32>
    %cst_76 = arith.constant dense<0.000000e+00> : vector<8x512xf32>
    %166 = tpu.matmul %160, %9, %cst_76 {dimension_numbers = #tpu.dot_dimension_numbers<[1], [0], [0], [1], [0, 0, 1, 1], [], []>} : vector<8x128xf32>, vector<128x512xf32>, vector<8x512xf32> -> vector<8x512xf32>
    %167 = arith.addf %165, %166 : vector<8x512xf32>
    %168 = vector.extract_strided_slice %167 {offsets = [0, 0], sizes = [8, 128], strides = [1, 1]} : vector<8x512xf32> to vector<8x128xf32>
    %cst_77 = arith.constant 5.000000e-01 : f32
    %169 = vector.broadcast %cst_77 : f32 to vector<8x128xf32>
    %170 = arith.mulf %169, %168 : vector<8x128xf32>
    %171 = math.tanh %170 : vector<8x128xf32>
    %cst_78 = arith.constant 5.000000e-01 : f32
    %172 = vector.broadcast %cst_78 : f32 to vector<8x128xf32>
    %173 = arith.mulf %172, %171 : vector<8x128xf32>
    %cst_79 = arith.constant 5.000000e-01 : f32
    %174 = vector.broadcast %cst_79 : f32 to vector<8x128xf32>
    %175 = arith.addf %173, %174 : vector<8x128xf32>
    %176 = vector.extract_strided_slice %167 {offsets = [0, 128], sizes = [8, 128], strides = [1, 1]} : vector<8x512xf32> to vector<8x128xf32>
    %cst_80 = arith.constant 5.000000e-01 : f32
    %177 = vector.broadcast %cst_80 : f32 to vector<8x128xf32>
    %178 = arith.mulf %177, %176 : vector<8x128xf32>
    %179 = math.tanh %178 : vector<8x128xf32>
    %cst_81 = arith.constant 5.000000e-01 : f32
    %180 = vector.broadcast %cst_81 : f32 to vector<8x128xf32>
    %181 = arith.mulf %180, %179 : vector<8x128xf32>
    %cst_82 = arith.constant 5.000000e-01 : f32
    %182 = vector.broadcast %cst_82 : f32 to vector<8x128xf32>
    %183 = arith.addf %181, %182 : vector<8x128xf32>
    %184 = vector.extract_strided_slice %167 {offsets = [0, 256], sizes = [8, 128], strides = [1, 1]} : vector<8x512xf32> to vector<8x128xf32>
    %185 = math.tanh %184 : vector<8x128xf32>
    %186 = vector.extract_strided_slice %167 {offsets = [0, 384], sizes = [8, 128], strides = [1, 1]} : vector<8x512xf32> to vector<8x128xf32>
    %cst_83 = arith.constant 5.000000e-01 : f32
    %187 = vector.broadcast %cst_83 : f32 to vector<8x128xf32>
    %188 = arith.mulf %187, %186 : vector<8x128xf32>
    %189 = math.tanh %188 : vector<8x128xf32>
    %cst_84 = arith.constant 5.000000e-01 : f32
    %190 = vector.broadcast %cst_84 : f32 to vector<8x128xf32>
    %191 = arith.mulf %190, %189 : vector<8x128xf32>
    %cst_85 = arith.constant 5.000000e-01 : f32
    %192 = vector.broadcast %cst_85 : f32 to vector<8x128xf32>
    %193 = arith.addf %191, %192 : vector<8x128xf32>
    %194 = arith.mulf %183, %158 : vector<8x128xf32>
    %195 = arith.mulf %175, %185 : vector<8x128xf32>
    %196 = arith.addf %194, %195 : vector<8x128xf32>
    %197 = math.tanh %196 : vector<8x128xf32>
    %198 = arith.mulf %193, %197 : vector<8x128xf32>
    %c4_86 = arith.constant 4 : index
    %c0_87 = arith.constant 0 : index
    %c0_88 = arith.constant 0 : index
    %199 = vector.load %arg11[%c4_86, %c0_87, %c0_88] : memref<8x8x128xf32, #tpu.memory_space<vmem>>, vector<1x8x128xf32>
    %200 = vector.shape_cast %199 : vector<1x8x128xf32> to vector<8x128xf32>
    %201 = vector.shape_cast %198 : vector<8x128xf32> to vector<1x8x128xf32>
    tpu.vector_store %arg11[%c4_86, %c0_87, %c0_88], %201 {strides = array<i32>} : memref<8x8x128xf32, #tpu.memory_space<vmem>>, vector<1x8x128xf32>,
    %c5 = arith.constant 5 : index
    %c0_89 = arith.constant 0 : index
    %c0_90 = arith.constant 0 : index
    %202 = vector.load %arg10[%c5, %c0_89, %c0_90] : memref<8x8x512xf32, #tpu.memory_space<vmem>>, vector<1x8x512xf32>
    %203 = vector.shape_cast %202 : vector<1x8x512xf32> to vector<8x512xf32>
    %cst_91 = arith.constant dense<0.000000e+00> : vector<8x512xf32>
    %204 = tpu.matmul %198, %9, %cst_91 {dimension_numbers = #tpu.dot_dimension_numbers<[1], [0], [0], [1], [0, 0, 1, 1], [], []>} : vector<8x128xf32>, vector<128x512xf32>, vector<8x512xf32> -> vector<8x512xf32>
    %205 = arith.addf %203, %204 : vector<8x512xf32>
    %206 = vector.extract_strided_slice %205 {offsets = [0, 0], sizes = [8, 128], strides = [1, 1]} : vector<8x512xf32> to vector<8x128xf32>
    %cst_92 = arith.constant 5.000000e-01 : f32
    %207 = vector.broadcast %cst_92 : f32 to vector<8x128xf32>
    %208 = arith.mulf %207, %206 : vector<8x128xf32>
    %209 = math.tanh %208 : vector<8x128xf32>
    %cst_93 = arith.constant 5.000000e-01 : f32
    %210 = vector.broadcast %cst_93 : f32 to vector<8x128xf32>
    %211 = arith.mulf %210, %209 : vector<8x128xf32>
    %cst_94 = arith.constant 5.000000e-01 : f32
    %212 = vector.broadcast %cst_94 : f32 to vector<8x128xf32>
    %213 = arith.addf %211, %212 : vector<8x128xf32>
    %214 = vector.extract_strided_slice %205 {offsets = [0, 128], sizes = [8, 128], strides = [1, 1]} : vector<8x512xf32> to vector<8x128xf32>
    %cst_95 = arith.constant 5.000000e-01 : f32
    %215 = vector.broadcast %cst_95 : f32 to vector<8x128xf32>
    %216 = arith.mulf %215, %214 : vector<8x128xf32>
    %217 = math.tanh %216 : vector<8x128xf32>
    %cst_96 = arith.constant 5.000000e-01 : f32
    %218 = vector.broadcast %cst_96 : f32 to vector<8x128xf32>
    %219 = arith.mulf %218, %217 : vector<8x128xf32>
    %cst_97 = arith.constant 5.000000e-01 : f32
    %220 = vector.broadcast %cst_97 : f32 to vector<8x128xf32>
    %221 = arith.addf %219, %220 : vector<8x128xf32>
    %222 = vector.extract_strided_slice %205 {offsets = [0, 256], sizes = [8, 128], strides = [1, 1]} : vector<8x512xf32> to vector<8x128xf32>
    %223 = math.tanh %222 : vector<8x128xf32>
    %224 = vector.extract_strided_slice %205 {offsets = [0, 384], sizes = [8, 128], strides = [1, 1]} : vector<8x512xf32> to vector<8x128xf32>
    %cst_98 = arith.constant 5.000000e-01 : f32
    %225 = vector.broadcast %cst_98 : f32 to vector<8x128xf32>
    %226 = arith.mulf %225, %224 : vector<8x128xf32>
    %227 = math.tanh %226 : vector<8x128xf32>
    %cst_99 = arith.constant 5.000000e-01 : f32
    %228 = vector.broadcast %cst_99 : f32 to vector<8x128xf32>
    %229 = arith.mulf %228, %227 : vector<8x128xf32>
    %cst_100 = arith.constant 5.000000e-01 : f32
    %230 = vector.broadcast %cst_100 : f32 to vector<8x128xf32>
    %231 = arith.addf %229, %230 : vector<8x128xf32>
    %232 = arith.mulf %221, %196 : vector<8x128xf32>
    %233 = arith.mulf %213, %223 : vector<8x128xf32>
    %234 = arith.addf %232, %233 : vector<8x128xf32>
    %235 = math.tanh %234 : vector<8x128xf32>
    %236 = arith.mulf %231, %235 : vector<8x128xf32>
    %c5_101 = arith.constant 5 : index
    %c0_102 = arith.constant 0 : index
    %c0_103 = arith.constant 0 : index
    %237 = vector.load %arg11[%c5_101, %c0_102, %c0_103] : memref<8x8x128xf32, #tpu.memory_space<vmem>>, vector<1x8x128xf32>
    %238 = vector.shape_cast %237 : vector<1x8x128xf32> to vector<8x128xf32>
    %239 = vector.shape_cast %236 : vector<8x128xf32> to vector<1x8x128xf32>
    tpu.vector_store %arg11[%c5_101, %c0_102, %c0_103], %239 {strides = array<i32>} : memref<8x8x128xf32, #tpu.memory_space<vmem>>, vector<1x8x128xf32>,
    %c6 = arith.constant 6 : index
    %c0_104 = arith.constant 0 : index
    %c0_105 = arith.constant 0 : index
    %240 = vector.load %arg10[%c6, %c0_104, %c0_105] : memref<8x8x512xf32, #tpu.memory_space<vmem>>, vector<1x8x512xf32>
    %241 = vector.shape_cast %240 : vector<1x8x512xf32> to vector<8x512xf32>
    %cst_106 = arith.constant dense<0.000000e+00> : vector<8x512xf32>
    %242 = tpu.matmul %236, %9, %cst_106 {dimension_numbers = #tpu.dot_dimension_numbers<[1], [0], [0], [1], [0, 0, 1, 1], [], []>} : vector<8x128xf32>, vector<128x512xf32>, vector<8x512xf32> -> vector<8x512xf32>
    %243 = arith.addf %241, %242 : vector<8x512xf32>
    %244 = vector.extract_strided_slice %243 {offsets = [0, 0], sizes = [8, 128], strides = [1, 1]} : vector<8x512xf32> to vector<8x128xf32>
    %cst_107 = arith.constant 5.000000e-01 : f32
    %245 = vector.broadcast %cst_107 : f32 to vector<8x128xf32>
    %246 = arith.mulf %245, %244 : vector<8x128xf32>
    %247 = math.tanh %246 : vector<8x128xf32>
    %cst_108 = arith.constant 5.000000e-01 : f32
    %248 = vector.broadcast %cst_108 : f32 to vector<8x128xf32>
    %249 = arith.mulf %248, %247 : vector<8x128xf32>
    %cst_109 = arith.constant 5.000000e-01 : f32
    %250 = vector.broadcast %cst_109 : f32 to vector<8x128xf32>
    %251 = arith.addf %249, %250 : vector<8x128xf32>
    %252 = vector.extract_strided_slice %243 {offsets = [0, 128], sizes = [8, 128], strides = [1, 1]} : vector<8x512xf32> to vector<8x128xf32>
    %cst_110 = arith.constant 5.000000e-01 : f32
    %253 = vector.broadcast %cst_110 : f32 to vector<8x128xf32>
    %254 = arith.mulf %253, %252 : vector<8x128xf32>
    %255 = math.tanh %254 : vector<8x128xf32>
    %cst_111 = arith.constant 5.000000e-01 : f32
    %256 = vector.broadcast %cst_111 : f32 to vector<8x128xf32>
    %257 = arith.mulf %256, %255 : vector<8x128xf32>
    %cst_112 = arith.constant 5.000000e-01 : f32
    %258 = vector.broadcast %cst_112 : f32 to vector<8x128xf32>
    %259 = arith.addf %257, %258 : vector<8x128xf32>
    %260 = vector.extract_strided_slice %243 {offsets = [0, 256], sizes = [8, 128], strides = [1, 1]} : vector<8x512xf32> to vector<8x128xf32>
    %261 = math.tanh %260 : vector<8x128xf32>
    %262 = vector.extract_strided_slice %243 {offsets = [0, 384], sizes = [8, 128], strides = [1, 1]} : vector<8x512xf32> to vector<8x128xf32>
    %cst_113 = arith.constant 5.000000e-01 : f32
    %263 = vector.broadcast %cst_113 : f32 to vector<8x128xf32>
    %264 = arith.mulf %263, %262 : vector<8x128xf32>
    %265 = math.tanh %264 : vector<8x128xf32>
    %cst_114 = arith.constant 5.000000e-01 : f32
    %266 = vector.broadcast %cst_114 : f32 to vector<8x128xf32>
    %267 = arith.mulf %266, %265 : vector<8x128xf32>
    %cst_115 = arith.constant 5.000000e-01 : f32
    %268 = vector.broadcast %cst_115 : f32 to vector<8x128xf32>
    %269 = arith.addf %267, %268 : vector<8x128xf32>
    %270 = arith.mulf %259, %234 : vector<8x128xf32>
    %271 = arith.mulf %251, %261 : vector<8x128xf32>
    %272 = arith.addf %270, %271 : vector<8x128xf32>
    %273 = math.tanh %272 : vector<8x128xf32>
    %274 = arith.mulf %269, %273 : vector<8x128xf32>
    %c6_116 = arith.constant 6 : index
    %c0_117 = arith.constant 0 : index
    %c0_118 = arith.constant 0 : index
    %275 = vector.load %arg11[%c6_116, %c0_117, %c0_118] : memref<8x8x128xf32, #tpu.memory_space<vmem>>, vector<1x8x128xf32>
    %276 = vector.shape_cast %275 : vector<1x8x128xf32> to vector<8x128xf32>
    %277 = vector.shape_cast %274 : vector<8x128xf32> to vector<1x8x128xf32>
    tpu.vector_store %arg11[%c6_116, %c0_117, %c0_118], %277 {strides = array<i32>} : memref<8x8x128xf32, #tpu.memory_space<vmem>>, vector<1x8x128xf32>,
    %c7 = arith.constant 7 : index
    %c0_119 = arith.constant 0 : index
    %c0_120 = arith.constant 0 : index
    %278 = vector.load %arg10[%c7, %c0_119, %c0_120] : memref<8x8x512xf32, #tpu.memory_space<vmem>>, vector<1x8x512xf32>
    %279 = vector.shape_cast %278 : vector<1x8x512xf32> to vector<8x512xf32>
    %cst_121 = arith.constant dense<0.000000e+00> : vector<8x512xf32>
    %280 = tpu.matmul %274, %9, %cst_121 {dimension_numbers = #tpu.dot_dimension_numbers<[1], [0], [0], [1], [0, 0, 1, 1], [], []>} : vector<8x128xf32>, vector<128x512xf32>, vector<8x512xf32> -> vector<8x512xf32>
    %281 = arith.addf %279, %280 : vector<8x512xf32>
    %282 = vector.extract_strided_slice %281 {offsets = [0, 0], sizes = [8, 128], strides = [1, 1]} : vector<8x512xf32> to vector<8x128xf32>
    %cst_122 = arith.constant 5.000000e-01 : f32
    %283 = vector.broadcast %cst_122 : f32 to vector<8x128xf32>
    %284 = arith.mulf %283, %282 : vector<8x128xf32>
    %285 = math.tanh %284 : vector<8x128xf32>
    %cst_123 = arith.constant 5.000000e-01 : f32
    %286 = vector.broadcast %cst_123 : f32 to vector<8x128xf32>
    %287 = arith.mulf %286, %285 : vector<8x128xf32>
    %cst_124 = arith.constant 5.000000e-01 : f32
    %288 = vector.broadcast %cst_124 : f32 to vector<8x128xf32>
    %289 = arith.addf %287, %288 : vector<8x128xf32>
    %290 = vector.extract_strided_slice %281 {offsets = [0, 128], sizes = [8, 128], strides = [1, 1]} : vector<8x512xf32> to vector<8x128xf32>
    %cst_125 = arith.constant 5.000000e-01 : f32
    %291 = vector.broadcast %cst_125 : f32 to vector<8x128xf32>
    %292 = arith.mulf %291, %290 : vector<8x128xf32>
    %293 = math.tanh %292 : vector<8x128xf32>
    %cst_126 = arith.constant 5.000000e-01 : f32
    %294 = vector.broadcast %cst_126 : f32 to vector<8x128xf32>
    %295 = arith.mulf %294, %293 : vector<8x128xf32>
    %cst_127 = arith.constant 5.000000e-01 : f32
    %296 = vector.broadcast %cst_127 : f32 to vector<8x128xf32>
    %297 = arith.addf %295, %296 : vector<8x128xf32>
    %298 = vector.extract_strided_slice %281 {offsets = [0, 256], sizes = [8, 128], strides = [1, 1]} : vector<8x512xf32> to vector<8x128xf32>
    %299 = math.tanh %298 : vector<8x128xf32>
    %300 = vector.extract_strided_slice %281 {offsets = [0, 384], sizes = [8, 128], strides = [1, 1]} : vector<8x512xf32> to vector<8x128xf32>
    %cst_128 = arith.constant 5.000000e-01 : f32
    %301 = vector.broadcast %cst_128 : f32 to vector<8x128xf32>
    %302 = arith.mulf %301, %300 : vector<8x128xf32>
    %303 = math.tanh %302 : vector<8x128xf32>
    %cst_129 = arith.constant 5.000000e-01 : f32
    %304 = vector.broadcast %cst_129 : f32 to vector<8x128xf32>
    %305 = arith.mulf %304, %303 : vector<8x128xf32>
    %cst_130 = arith.constant 5.000000e-01 : f32
    %306 = vector.broadcast %cst_130 : f32 to vector<8x128xf32>
    %307 = arith.addf %305, %306 : vector<8x128xf32>
    %308 = arith.mulf %297, %272 : vector<8x128xf32>
    %309 = arith.mulf %289, %299 : vector<8x128xf32>
    %310 = arith.addf %308, %309 : vector<8x128xf32>
    %311 = math.tanh %310 : vector<8x128xf32>
    %312 = arith.mulf %307, %311 : vector<8x128xf32>
    %c7_131 = arith.constant 7 : index
    %c0_132 = arith.constant 0 : index
    %c0_133 = arith.constant 0 : index
    %313 = vector.load %arg11[%c7_131, %c0_132, %c0_133] : memref<8x8x128xf32, #tpu.memory_space<vmem>>, vector<1x8x128xf32>
    %314 = vector.shape_cast %313 : vector<1x8x128xf32> to vector<8x128xf32>
    %315 = vector.shape_cast %312 : vector<8x128xf32> to vector<1x8x128xf32>
    tpu.vector_store %arg11[%c7_131, %c0_132, %c0_133], %315 {strides = array<i32>} : memref<8x8x128xf32, #tpu.memory_space<vmem>>, vector<1x8x128xf32>,
    %c0_134 = arith.constant 0 : index
    %c0_135 = arith.constant 0 : index
    %c0_136 = arith.constant 0 : index
    %316 = vector.load %arg11[%c0_134, %c0_135, %c0_136] : memref<8x8x128xf32, #tpu.memory_space<vmem>>, vector<8x8x128xf32>
    %317 = vector.shape_cast %316 : vector<8x8x128xf32> to vector<64x128xf32>
    %c0_137 = arith.constant 0 : index
    %c0_138 = arith.constant 0 : index
    %318 = vector.load %arg4[%c0_137, %c0_138] : memref<128x512xf32, #tpu.memory_space<vmem>>, vector<128x512xf32>
    %cst_139 = arith.constant dense<0.000000e+00> : vector<64x512xf32>
    %319 = tpu.matmul %317, %318, %cst_139 {dimension_numbers = #tpu.dot_dimension_numbers<[1], [0], [0], [1], [0, 0, 1, 1], [], []>} : vector<64x128xf32>, vector<128x512xf32>, vector<64x512xf32> -> vector<64x512xf32>
    %c0_140 = arith.constant 0 : index
    %c0_141 = arith.constant 0 : index
    %320 = vector.load %arg6[%c0_140, %c0_141] : memref<1x512xf32, #tpu.memory_space<vmem>>, vector<1x512xf32>
    %321 = vector.broadcast %320 : vector<1x512xf32> to vector<64x512xf32>
    %322 = arith.addf %319, %321 : vector<64x512xf32>
    %323 = vector.shape_cast %322 : vector<64x512xf32> to vector<8x8x512xf32>
    %c0_142 = arith.constant 0 : index
    %c0_143 = arith.constant 0 : index
    %c0_144 = arith.constant 0 : index
    %324 = vector.load %arg10[%c0_142, %c0_143, %c0_144] : memref<8x8x512xf32, #tpu.memory_space<vmem>>, vector<8x8x512xf32>
    tpu.vector_store %arg10[%c0_142, %c0_143, %c0_144], %323 {strides = array<i32>} : memref<8x8x512xf32, #tpu.memory_space<vmem>>, vector<8x8x512xf32>,
    %c0_145 = arith.constant 0 : index
    %c0_146 = arith.constant 0 : index
    %325 = vector.load %arg5[%c0_145, %c0_146] : memref<128x512xf32, #tpu.memory_space<vmem>>, vector<128x512xf32>
    %cst_147 = arith.constant 0.000000e+00 : f32
    %326 = vector.broadcast %cst_147 : f32 to vector<8x128xf32>
    %cst_148 = arith.constant 0.000000e+00 : f32
    %327 = vector.broadcast %cst_148 : f32 to vector<8x128xf32>
    %c0_149 = arith.constant 0 : index
    %c0_150 = arith.constant 0 : index
    %c0_151 = arith.constant 0 : index
    %328 = vector.load %arg10[%c0_149, %c0_150, %c0_151] : memref<8x8x512xf32, #tpu.memory_space<vmem>>, vector<1x8x512xf32>
    %329 = vector.shape_cast %328 : vector<1x8x512xf32> to vector<8x512xf32>
    %cst_152 = arith.constant dense<0.000000e+00> : vector<8x512xf32>
    %330 = tpu.matmul %326, %325, %cst_152 {dimension_numbers = #tpu.dot_dimension_numbers<[1], [0], [0], [1], [0, 0, 1, 1], [], []>} : vector<8x128xf32>, vector<128x512xf32>, vector<8x512xf32> -> vector<8x512xf32>
    %331 = arith.addf %329, %330 : vector<8x512xf32>
    %332 = vector.extract_strided_slice %331 {offsets = [0, 0], sizes = [8, 128], strides = [1, 1]} : vector<8x512xf32> to vector<8x128xf32>
    %cst_153 = arith.constant 5.000000e-01 : f32
    %333 = vector.broadcast %cst_153 : f32 to vector<8x128xf32>
    %334 = arith.mulf %333, %332 : vector<8x128xf32>
    %335 = math.tanh %334 : vector<8x128xf32>
    %cst_154 = arith.constant 5.000000e-01 : f32
    %336 = vector.broadcast %cst_154 : f32 to vector<8x128xf32>
    %337 = arith.mulf %336, %335 : vector<8x128xf32>
    %cst_155 = arith.constant 5.000000e-01 : f32
    %338 = vector.broadcast %cst_155 : f32 to vector<8x128xf32>
    %339 = arith.addf %337, %338 : vector<8x128xf32>
    %340 = vector.extract_strided_slice %331 {offsets = [0, 128], sizes = [8, 128], strides = [1, 1]} : vector<8x512xf32> to vector<8x128xf32>
    %cst_156 = arith.constant 5.000000e-01 : f32
    %341 = vector.broadcast %cst_156 : f32 to vector<8x128xf32>
    %342 = arith.mulf %341, %340 : vector<8x128xf32>
    %343 = math.tanh %342 : vector<8x128xf32>
    %cst_157 = arith.constant 5.000000e-01 : f32
    %344 = vector.broadcast %cst_157 : f32 to vector<8x128xf32>
    %345 = arith.mulf %344, %343 : vector<8x128xf32>
    %cst_158 = arith.constant 5.000000e-01 : f32
    %346 = vector.broadcast %cst_158 : f32 to vector<8x128xf32>
    %347 = arith.addf %345, %346 : vector<8x128xf32>
    %348 = vector.extract_strided_slice %331 {offsets = [0, 256], sizes = [8, 128], strides = [1, 1]} : vector<8x512xf32> to vector<8x128xf32>
    %349 = math.tanh %348 : vector<8x128xf32>
    %350 = vector.extract_strided_slice %331 {offsets = [0, 384], sizes = [8, 128], strides = [1, 1]} : vector<8x512xf32> to vector<8x128xf32>
    %cst_159 = arith.constant 5.000000e-01 : f32
    %351 = vector.broadcast %cst_159 : f32 to vector<8x128xf32>
    %352 = arith.mulf %351, %350 : vector<8x128xf32>
    %353 = math.tanh %352 : vector<8x128xf32>
    %cst_160 = arith.constant 5.000000e-01 : f32
    %354 = vector.broadcast %cst_160 : f32 to vector<8x128xf32>
    %355 = arith.mulf %354, %353 : vector<8x128xf32>
    %cst_161 = arith.constant 5.000000e-01 : f32
    %356 = vector.broadcast %cst_161 : f32 to vector<8x128xf32>
    %357 = arith.addf %355, %356 : vector<8x128xf32>
    %358 = arith.mulf %347, %327 : vector<8x128xf32>
    %359 = arith.mulf %339, %349 : vector<8x128xf32>
    %360 = arith.addf %358, %359 : vector<8x128xf32>
    %361 = math.tanh %360 : vector<8x128xf32>
    %362 = arith.mulf %357, %361 : vector<8x128xf32>
    %c1_162 = arith.constant 1 : index
    %c0_163 = arith.constant 0 : index
    %c0_164 = arith.constant 0 : index
    %363 = vector.load %arg10[%c1_162, %c0_163, %c0_164] : memref<8x8x512xf32, #tpu.memory_space<vmem>>, vector<1x8x512xf32>
    %364 = vector.shape_cast %363 : vector<1x8x512xf32> to vector<8x512xf32>
    %cst_165 = arith.constant dense<0.000000e+00> : vector<8x512xf32>
    %365 = tpu.matmul %362, %325, %cst_165 {dimension_numbers = #tpu.dot_dimension_numbers<[1], [0], [0], [1], [0, 0, 1, 1], [], []>} : vector<8x128xf32>, vector<128x512xf32>, vector<8x512xf32> -> vector<8x512xf32>
    %366 = arith.addf %364, %365 : vector<8x512xf32>
    %367 = vector.extract_strided_slice %366 {offsets = [0, 0], sizes = [8, 128], strides = [1, 1]} : vector<8x512xf32> to vector<8x128xf32>
    %cst_166 = arith.constant 5.000000e-01 : f32
    %368 = vector.broadcast %cst_166 : f32 to vector<8x128xf32>
    %369 = arith.mulf %368, %367 : vector<8x128xf32>
    %370 = math.tanh %369 : vector<8x128xf32>
    %cst_167 = arith.constant 5.000000e-01 : f32
    %371 = vector.broadcast %cst_167 : f32 to vector<8x128xf32>
    %372 = arith.mulf %371, %370 : vector<8x128xf32>
    %cst_168 = arith.constant 5.000000e-01 : f32
    %373 = vector.broadcast %cst_168 : f32 to vector<8x128xf32>
    %374 = arith.addf %372, %373 : vector<8x128xf32>
    %375 = vector.extract_strided_slice %366 {offsets = [0, 128], sizes = [8, 128], strides = [1, 1]} : vector<8x512xf32> to vector<8x128xf32>
    %cst_169 = arith.constant 5.000000e-01 : f32
    %376 = vector.broadcast %cst_169 : f32 to vector<8x128xf32>
    %377 = arith.mulf %376, %375 : vector<8x128xf32>
    %378 = math.tanh %377 : vector<8x128xf32>
    %cst_170 = arith.constant 5.000000e-01 : f32
    %379 = vector.broadcast %cst_170 : f32 to vector<8x128xf32>
    %380 = arith.mulf %379, %378 : vector<8x128xf32>
    %cst_171 = arith.constant 5.000000e-01 : f32
    %381 = vector.broadcast %cst_171 : f32 to vector<8x128xf32>
    %382 = arith.addf %380, %381 : vector<8x128xf32>
    %383 = vector.extract_strided_slice %366 {offsets = [0, 256], sizes = [8, 128], strides = [1, 1]} : vector<8x512xf32> to vector<8x128xf32>
    %384 = math.tanh %383 : vector<8x128xf32>
    %385 = vector.extract_strided_slice %366 {offsets = [0, 384], sizes = [8, 128], strides = [1, 1]} : vector<8x512xf32> to vector<8x128xf32>
    %cst_172 = arith.constant 5.000000e-01 : f32
    %386 = vector.broadcast %cst_172 : f32 to vector<8x128xf32>
    %387 = arith.mulf %386, %385 : vector<8x128xf32>
    %388 = math.tanh %387 : vector<8x128xf32>
    %cst_173 = arith.constant 5.000000e-01 : f32
    %389 = vector.broadcast %cst_173 : f32 to vector<8x128xf32>
    %390 = arith.mulf %389, %388 : vector<8x128xf32>
    %cst_174 = arith.constant 5.000000e-01 : f32
    %391 = vector.broadcast %cst_174 : f32 to vector<8x128xf32>
    %392 = arith.addf %390, %391 : vector<8x128xf32>
    %393 = arith.mulf %382, %360 : vector<8x128xf32>
    %394 = arith.mulf %374, %384 : vector<8x128xf32>
    %395 = arith.addf %393, %394 : vector<8x128xf32>
    %396 = math.tanh %395 : vector<8x128xf32>
    %397 = arith.mulf %392, %396 : vector<8x128xf32>
    %c2_175 = arith.constant 2 : index
    %c0_176 = arith.constant 0 : index
    %c0_177 = arith.constant 0 : index
    %398 = vector.load %arg10[%c2_175, %c0_176, %c0_177] : memref<8x8x512xf32, #tpu.memory_space<vmem>>, vector<1x8x512xf32>
    %399 = vector.shape_cast %398 : vector<1x8x512xf32> to vector<8x512xf32>
    %cst_178 = arith.constant dense<0.000000e+00> : vector<8x512xf32>
    %400 = tpu.matmul %397, %325, %cst_178 {dimension_numbers = #tpu.dot_dimension_numbers<[1], [0], [0], [1], [0, 0, 1, 1], [], []>} : vector<8x128xf32>, vector<128x512xf32>, vector<8x512xf32> -> vector<8x512xf32>
    %401 = arith.addf %399, %400 : vector<8x512xf32>
    %402 = vector.extract_strided_slice %401 {offsets = [0, 0], sizes = [8, 128], strides = [1, 1]} : vector<8x512xf32> to vector<8x128xf32>
    %cst_179 = arith.constant 5.000000e-01 : f32
    %403 = vector.broadcast %cst_179 : f32 to vector<8x128xf32>
    %404 = arith.mulf %403, %402 : vector<8x128xf32>
    %405 = math.tanh %404 : vector<8x128xf32>
    %cst_180 = arith.constant 5.000000e-01 : f32
    %406 = vector.broadcast %cst_180 : f32 to vector<8x128xf32>
    %407 = arith.mulf %406, %405 : vector<8x128xf32>
    %cst_181 = arith.constant 5.000000e-01 : f32
    %408 = vector.broadcast %cst_181 : f32 to vector<8x128xf32>
    %409 = arith.addf %407, %408 : vector<8x128xf32>
    %410 = vector.extract_strided_slice %401 {offsets = [0, 128], sizes = [8, 128], strides = [1, 1]} : vector<8x512xf32> to vector<8x128xf32>
    %cst_182 = arith.constant 5.000000e-01 : f32
    %411 = vector.broadcast %cst_182 : f32 to vector<8x128xf32>
    %412 = arith.mulf %411, %410 : vector<8x128xf32>
    %413 = math.tanh %412 : vector<8x128xf32>
    %cst_183 = arith.constant 5.000000e-01 : f32
    %414 = vector.broadcast %cst_183 : f32 to vector<8x128xf32>
    %415 = arith.mulf %414, %413 : vector<8x128xf32>
    %cst_184 = arith.constant 5.000000e-01 : f32
    %416 = vector.broadcast %cst_184 : f32 to vector<8x128xf32>
    %417 = arith.addf %415, %416 : vector<8x128xf32>
    %418 = vector.extract_strided_slice %401 {offsets = [0, 256], sizes = [8, 128], strides = [1, 1]} : vector<8x512xf32> to vector<8x128xf32>
    %419 = math.tanh %418 : vector<8x128xf32>
    %420 = vector.extract_strided_slice %401 {offsets = [0, 384], sizes = [8, 128], strides = [1, 1]} : vector<8x512xf32> to vector<8x128xf32>
    %cst_185 = arith.constant 5.000000e-01 : f32
    %421 = vector.broadcast %cst_185 : f32 to vector<8x128xf32>
    %422 = arith.mulf %421, %420 : vector<8x128xf32>
    %423 = math.tanh %422 : vector<8x128xf32>
    %cst_186 = arith.constant 5.000000e-01 : f32
    %424 = vector.broadcast %cst_186 : f32 to vector<8x128xf32>
    %425 = arith.mulf %424, %423 : vector<8x128xf32>
    %cst_187 = arith.constant 5.000000e-01 : f32
    %426 = vector.broadcast %cst_187 : f32 to vector<8x128xf32>
    %427 = arith.addf %425, %426 : vector<8x128xf32>
    %428 = arith.mulf %417, %395 : vector<8x128xf32>
    %429 = arith.mulf %409, %419 : vector<8x128xf32>
    %430 = arith.addf %428, %429 : vector<8x128xf32>
    %431 = math.tanh %430 : vector<8x128xf32>
    %432 = arith.mulf %427, %431 : vector<8x128xf32>
    %c3_188 = arith.constant 3 : index
    %c0_189 = arith.constant 0 : index
    %c0_190 = arith.constant 0 : index
    %433 = vector.load %arg10[%c3_188, %c0_189, %c0_190] : memref<8x8x512xf32, #tpu.memory_space<vmem>>, vector<1x8x512xf32>
    %434 = vector.shape_cast %433 : vector<1x8x512xf32> to vector<8x512xf32>
    %cst_191 = arith.constant dense<0.000000e+00> : vector<8x512xf32>
    %435 = tpu.matmul %432, %325, %cst_191 {dimension_numbers = #tpu.dot_dimension_numbers<[1], [0], [0], [1], [0, 0, 1, 1], [], []>} : vector<8x128xf32>, vector<128x512xf32>, vector<8x512xf32> -> vector<8x512xf32>
    %436 = arith.addf %434, %435 : vector<8x512xf32>
    %437 = vector.extract_strided_slice %436 {offsets = [0, 0], sizes = [8, 128], strides = [1, 1]} : vector<8x512xf32> to vector<8x128xf32>
    %cst_192 = arith.constant 5.000000e-01 : f32
    %438 = vector.broadcast %cst_192 : f32 to vector<8x128xf32>
    %439 = arith.mulf %438, %437 : vector<8x128xf32>
    %440 = math.tanh %439 : vector<8x128xf32>
    %cst_193 = arith.constant 5.000000e-01 : f32
    %441 = vector.broadcast %cst_193 : f32 to vector<8x128xf32>
    %442 = arith.mulf %441, %440 : vector<8x128xf32>
    %cst_194 = arith.constant 5.000000e-01 : f32
    %443 = vector.broadcast %cst_194 : f32 to vector<8x128xf32>
    %444 = arith.addf %442, %443 : vector<8x128xf32>
    %445 = vector.extract_strided_slice %436 {offsets = [0, 128], sizes = [8, 128], strides = [1, 1]} : vector<8x512xf32> to vector<8x128xf32>
    %cst_195 = arith.constant 5.000000e-01 : f32
    %446 = vector.broadcast %cst_195 : f32 to vector<8x128xf32>
    %447 = arith.mulf %446, %445 : vector<8x128xf32>
    %448 = math.tanh %447 : vector<8x128xf32>
    %cst_196 = arith.constant 5.000000e-01 : f32
    %449 = vector.broadcast %cst_196 : f32 to vector<8x128xf32>
    %450 = arith.mulf %449, %448 : vector<8x128xf32>
    %cst_197 = arith.constant 5.000000e-01 : f32
    %451 = vector.broadcast %cst_197 : f32 to vector<8x128xf32>
    %452 = arith.addf %450, %451 : vector<8x128xf32>
    %453 = vector.extract_strided_slice %436 {offsets = [0, 256], sizes = [8, 128], strides = [1, 1]} : vector<8x512xf32> to vector<8x128xf32>
    %454 = math.tanh %453 : vector<8x128xf32>
    %455 = vector.extract_strided_slice %436 {offsets = [0, 384], sizes = [8, 128], strides = [1, 1]} : vector<8x512xf32> to vector<8x128xf32>
    %cst_198 = arith.constant 5.000000e-01 : f32
    %456 = vector.broadcast %cst_198 : f32 to vector<8x128xf32>
    %457 = arith.mulf %456, %455 : vector<8x128xf32>
    %458 = math.tanh %457 : vector<8x128xf32>
    %cst_199 = arith.constant 5.000000e-01 : f32
    %459 = vector.broadcast %cst_199 : f32 to vector<8x128xf32>
    %460 = arith.mulf %459, %458 : vector<8x128xf32>
    %cst_200 = arith.constant 5.000000e-01 : f32
    %461 = vector.broadcast %cst_200 : f32 to vector<8x128xf32>
    %462 = arith.addf %460, %461 : vector<8x128xf32>
    %463 = arith.mulf %452, %430 : vector<8x128xf32>
    %464 = arith.mulf %444, %454 : vector<8x128xf32>
    %465 = arith.addf %463, %464 : vector<8x128xf32>
    %466 = math.tanh %465 : vector<8x128xf32>
    %467 = arith.mulf %462, %466 : vector<8x128xf32>
    %c4_201 = arith.constant 4 : index
    %c0_202 = arith.constant 0 : index
    %c0_203 = arith.constant 0 : index
    %468 = vector.load %arg10[%c4_201, %c0_202, %c0_203] : memref<8x8x512xf32, #tpu.memory_space<vmem>>, vector<1x8x512xf32>
    %469 = vector.shape_cast %468 : vector<1x8x512xf32> to vector<8x512xf32>
    %cst_204 = arith.constant dense<0.000000e+00> : vector<8x512xf32>
    %470 = tpu.matmul %467, %325, %cst_204 {dimension_numbers = #tpu.dot_dimension_numbers<[1], [0], [0], [1], [0, 0, 1, 1], [], []>} : vector<8x128xf32>, vector<128x512xf32>, vector<8x512xf32> -> vector<8x512xf32>
    %471 = arith.addf %469, %470 : vector<8x512xf32>
    %472 = vector.extract_strided_slice %471 {offsets = [0, 0], sizes = [8, 128], strides = [1, 1]} : vector<8x512xf32> to vector<8x128xf32>
    %cst_205 = arith.constant 5.000000e-01 : f32
    %473 = vector.broadcast %cst_205 : f32 to vector<8x128xf32>
    %474 = arith.mulf %473, %472 : vector<8x128xf32>
    %475 = math.tanh %474 : vector<8x128xf32>
    %cst_206 = arith.constant 5.000000e-01 : f32
    %476 = vector.broadcast %cst_206 : f32 to vector<8x128xf32>
    %477 = arith.mulf %476, %475 : vector<8x128xf32>
    %cst_207 = arith.constant 5.000000e-01 : f32
    %478 = vector.broadcast %cst_207 : f32 to vector<8x128xf32>
    %479 = arith.addf %477, %478 : vector<8x128xf32>
    %480 = vector.extract_strided_slice %471 {offsets = [0, 128], sizes = [8, 128], strides = [1, 1]} : vector<8x512xf32> to vector<8x128xf32>
    %cst_208 = arith.constant 5.000000e-01 : f32
    %481 = vector.broadcast %cst_208 : f32 to vector<8x128xf32>
    %482 = arith.mulf %481, %480 : vector<8x128xf32>
    %483 = math.tanh %482 : vector<8x128xf32>
    %cst_209 = arith.constant 5.000000e-01 : f32
    %484 = vector.broadcast %cst_209 : f32 to vector<8x128xf32>
    %485 = arith.mulf %484, %483 : vector<8x128xf32>
    %cst_210 = arith.constant 5.000000e-01 : f32
    %486 = vector.broadcast %cst_210 : f32 to vector<8x128xf32>
    %487 = arith.addf %485, %486 : vector<8x128xf32>
    %488 = vector.extract_strided_slice %471 {offsets = [0, 256], sizes = [8, 128], strides = [1, 1]} : vector<8x512xf32> to vector<8x128xf32>
    %489 = math.tanh %488 : vector<8x128xf32>
    %490 = vector.extract_strided_slice %471 {offsets = [0, 384], sizes = [8, 128], strides = [1, 1]} : vector<8x512xf32> to vector<8x128xf32>
    %cst_211 = arith.constant 5.000000e-01 : f32
    %491 = vector.broadcast %cst_211 : f32 to vector<8x128xf32>
    %492 = arith.mulf %491, %490 : vector<8x128xf32>
    %493 = math.tanh %492 : vector<8x128xf32>
    %cst_212 = arith.constant 5.000000e-01 : f32
    %494 = vector.broadcast %cst_212 : f32 to vector<8x128xf32>
    %495 = arith.mulf %494, %493 : vector<8x128xf32>
    %cst_213 = arith.constant 5.000000e-01 : f32
    %496 = vector.broadcast %cst_213 : f32 to vector<8x128xf32>
    %497 = arith.addf %495, %496 : vector<8x128xf32>
    %498 = arith.mulf %487, %465 : vector<8x128xf32>
    %499 = arith.mulf %479, %489 : vector<8x128xf32>
    %500 = arith.addf %498, %499 : vector<8x128xf32>
    %501 = math.tanh %500 : vector<8x128xf32>
    %502 = arith.mulf %497, %501 : vector<8x128xf32>
    %c5_214 = arith.constant 5 : index
    %c0_215 = arith.constant 0 : index
    %c0_216 = arith.constant 0 : index
    %503 = vector.load %arg10[%c5_214, %c0_215, %c0_216] : memref<8x8x512xf32, #tpu.memory_space<vmem>>, vector<1x8x512xf32>
    %504 = vector.shape_cast %503 : vector<1x8x512xf32> to vector<8x512xf32>
    %cst_217 = arith.constant dense<0.000000e+00> : vector<8x512xf32>
    %505 = tpu.matmul %502, %325, %cst_217 {dimension_numbers = #tpu.dot_dimension_numbers<[1], [0], [0], [1], [0, 0, 1, 1], [], []>} : vector<8x128xf32>, vector<128x512xf32>, vector<8x512xf32> -> vector<8x512xf32>
    %506 = arith.addf %504, %505 : vector<8x512xf32>
    %507 = vector.extract_strided_slice %506 {offsets = [0, 0], sizes = [8, 128], strides = [1, 1]} : vector<8x512xf32> to vector<8x128xf32>
    %cst_218 = arith.constant 5.000000e-01 : f32
    %508 = vector.broadcast %cst_218 : f32 to vector<8x128xf32>
    %509 = arith.mulf %508, %507 : vector<8x128xf32>
    %510 = math.tanh %509 : vector<8x128xf32>
    %cst_219 = arith.constant 5.000000e-01 : f32
    %511 = vector.broadcast %cst_219 : f32 to vector<8x128xf32>
    %512 = arith.mulf %511, %510 : vector<8x128xf32>
    %cst_220 = arith.constant 5.000000e-01 : f32
    %513 = vector.broadcast %cst_220 : f32 to vector<8x128xf32>
    %514 = arith.addf %512, %513 : vector<8x128xf32>
    %515 = vector.extract_strided_slice %506 {offsets = [0, 128], sizes = [8, 128], strides = [1, 1]} : vector<8x512xf32> to vector<8x128xf32>
    %cst_221 = arith.constant 5.000000e-01 : f32
    %516 = vector.broadcast %cst_221 : f32 to vector<8x128xf32>
    %517 = arith.mulf %516, %515 : vector<8x128xf32>
    %518 = math.tanh %517 : vector<8x128xf32>
    %cst_222 = arith.constant 5.000000e-01 : f32
    %519 = vector.broadcast %cst_222 : f32 to vector<8x128xf32>
    %520 = arith.mulf %519, %518 : vector<8x128xf32>
    %cst_223 = arith.constant 5.000000e-01 : f32
    %521 = vector.broadcast %cst_223 : f32 to vector<8x128xf32>
    %522 = arith.addf %520, %521 : vector<8x128xf32>
    %523 = vector.extract_strided_slice %506 {offsets = [0, 256], sizes = [8, 128], strides = [1, 1]} : vector<8x512xf32> to vector<8x128xf32>
    %524 = math.tanh %523 : vector<8x128xf32>
    %525 = vector.extract_strided_slice %506 {offsets = [0, 384], sizes = [8, 128], strides = [1, 1]} : vector<8x512xf32> to vector<8x128xf32>
    %cst_224 = arith.constant 5.000000e-01 : f32
    %526 = vector.broadcast %cst_224 : f32 to vector<8x128xf32>
    %527 = arith.mulf %526, %525 : vector<8x128xf32>
    %528 = math.tanh %527 : vector<8x128xf32>
    %cst_225 = arith.constant 5.000000e-01 : f32
    %529 = vector.broadcast %cst_225 : f32 to vector<8x128xf32>
    %530 = arith.mulf %529, %528 : vector<8x128xf32>
    %cst_226 = arith.constant 5.000000e-01 : f32
    %531 = vector.broadcast %cst_226 : f32 to vector<8x128xf32>
    %532 = arith.addf %530, %531 : vector<8x128xf32>
    %533 = arith.mulf %522, %500 : vector<8x128xf32>
    %534 = arith.mulf %514, %524 : vector<8x128xf32>
    %535 = arith.addf %533, %534 : vector<8x128xf32>
    %536 = math.tanh %535 : vector<8x128xf32>
    %537 = arith.mulf %532, %536 : vector<8x128xf32>
    %c6_227 = arith.constant 6 : index
    %c0_228 = arith.constant 0 : index
    %c0_229 = arith.constant 0 : index
    %538 = vector.load %arg10[%c6_227, %c0_228, %c0_229] : memref<8x8x512xf32, #tpu.memory_space<vmem>>, vector<1x8x512xf32>
    %539 = vector.shape_cast %538 : vector<1x8x512xf32> to vector<8x512xf32>
    %cst_230 = arith.constant dense<0.000000e+00> : vector<8x512xf32>
    %540 = tpu.matmul %537, %325, %cst_230 {dimension_numbers = #tpu.dot_dimension_numbers<[1], [0], [0], [1], [0, 0, 1, 1], [], []>} : vector<8x128xf32>, vector<128x512xf32>, vector<8x512xf32> -> vector<8x512xf32>
    %541 = arith.addf %539, %540 : vector<8x512xf32>
    %542 = vector.extract_strided_slice %541 {offsets = [0, 0], sizes = [8, 128], strides = [1, 1]} : vector<8x512xf32> to vector<8x128xf32>
    %cst_231 = arith.constant 5.000000e-01 : f32
    %543 = vector.broadcast %cst_231 : f32 to vector<8x128xf32>
    %544 = arith.mulf %543, %542 : vector<8x128xf32>
    %545 = math.tanh %544 : vector<8x128xf32>
    %cst_232 = arith.constant 5.000000e-01 : f32
    %546 = vector.broadcast %cst_232 : f32 to vector<8x128xf32>
    %547 = arith.mulf %546, %545 : vector<8x128xf32>
    %cst_233 = arith.constant 5.000000e-01 : f32
    %548 = vector.broadcast %cst_233 : f32 to vector<8x128xf32>
    %549 = arith.addf %547, %548 : vector<8x128xf32>
    %550 = vector.extract_strided_slice %541 {offsets = [0, 128], sizes = [8, 128], strides = [1, 1]} : vector<8x512xf32> to vector<8x128xf32>
    %cst_234 = arith.constant 5.000000e-01 : f32
    %551 = vector.broadcast %cst_234 : f32 to vector<8x128xf32>
    %552 = arith.mulf %551, %550 : vector<8x128xf32>
    %553 = math.tanh %552 : vector<8x128xf32>
    %cst_235 = arith.constant 5.000000e-01 : f32
    %554 = vector.broadcast %cst_235 : f32 to vector<8x128xf32>
    %555 = arith.mulf %554, %553 : vector<8x128xf32>
    %cst_236 = arith.constant 5.000000e-01 : f32
    %556 = vector.broadcast %cst_236 : f32 to vector<8x128xf32>
    %557 = arith.addf %555, %556 : vector<8x128xf32>
    %558 = vector.extract_strided_slice %541 {offsets = [0, 256], sizes = [8, 128], strides = [1, 1]} : vector<8x512xf32> to vector<8x128xf32>
    %559 = math.tanh %558 : vector<8x128xf32>
    %560 = vector.extract_strided_slice %541 {offsets = [0, 384], sizes = [8, 128], strides = [1, 1]} : vector<8x512xf32> to vector<8x128xf32>
    %cst_237 = arith.constant 5.000000e-01 : f32
    %561 = vector.broadcast %cst_237 : f32 to vector<8x128xf32>
    %562 = arith.mulf %561, %560 : vector<8x128xf32>
    %563 = math.tanh %562 : vector<8x128xf32>
    %cst_238 = arith.constant 5.000000e-01 : f32
    %564 = vector.broadcast %cst_238 : f32 to vector<8x128xf32>
    %565 = arith.mulf %564, %563 : vector<8x128xf32>
    %cst_239 = arith.constant 5.000000e-01 : f32
    %566 = vector.broadcast %cst_239 : f32 to vector<8x128xf32>
    %567 = arith.addf %565, %566 : vector<8x128xf32>
    %568 = arith.mulf %557, %535 : vector<8x128xf32>
    %569 = arith.mulf %549, %559 : vector<8x128xf32>
    %570 = arith.addf %568, %569 : vector<8x128xf32>
    %571 = math.tanh %570 : vector<8x128xf32>
    %572 = arith.mulf %567, %571 : vector<8x128xf32>
    %c7_240 = arith.constant 7 : index
    %c0_241 = arith.constant 0 : index
    %c0_242 = arith.constant 0 : index
    %573 = vector.load %arg10[%c7_240, %c0_241, %c0_242] : memref<8x8x512xf32, #tpu.memory_space<vmem>>, vector<1x8x512xf32>
    %574 = vector.shape_cast %573 : vector<1x8x512xf32> to vector<8x512xf32>
    %cst_243 = arith.constant dense<0.000000e+00> : vector<8x512xf32>
    %575 = tpu.matmul %572, %325, %cst_243 {dimension_numbers = #tpu.dot_dimension_numbers<[1], [0], [0], [1], [0, 0, 1, 1], [], []>} : vector<8x128xf32>, vector<128x512xf32>, vector<8x512xf32> -> vector<8x512xf32>
    %576 = arith.addf %574, %575 : vector<8x512xf32>
    %577 = vector.extract_strided_slice %576 {offsets = [0, 0], sizes = [8, 128], strides = [1, 1]} : vector<8x512xf32> to vector<8x128xf32>
    %cst_244 = arith.constant 5.000000e-01 : f32
    %578 = vector.broadcast %cst_244 : f32 to vector<8x128xf32>
    %579 = arith.mulf %578, %577 : vector<8x128xf32>
    %580 = math.tanh %579 : vector<8x128xf32>
    %cst_245 = arith.constant 5.000000e-01 : f32
    %581 = vector.broadcast %cst_245 : f32 to vector<8x128xf32>
    %582 = arith.mulf %581, %580 : vector<8x128xf32>
    %cst_246 = arith.constant 5.000000e-01 : f32
    %583 = vector.broadcast %cst_246 : f32 to vector<8x128xf32>
    %584 = arith.addf %582, %583 : vector<8x128xf32>
    %585 = vector.extract_strided_slice %576 {offsets = [0, 128], sizes = [8, 128], strides = [1, 1]} : vector<8x512xf32> to vector<8x128xf32>
    %cst_247 = arith.constant 5.000000e-01 : f32
    %586 = vector.broadcast %cst_247 : f32 to vector<8x128xf32>
    %587 = arith.mulf %586, %585 : vector<8x128xf32>
    %588 = math.tanh %587 : vector<8x128xf32>
    %cst_248 = arith.constant 5.000000e-01 : f32
    %589 = vector.broadcast %cst_248 : f32 to vector<8x128xf32>
    %590 = arith.mulf %589, %588 : vector<8x128xf32>
    %cst_249 = arith.constant 5.000000e-01 : f32
    %591 = vector.broadcast %cst_249 : f32 to vector<8x128xf32>
    %592 = arith.addf %590, %591 : vector<8x128xf32>
    %593 = vector.extract_strided_slice %576 {offsets = [0, 256], sizes = [8, 128], strides = [1, 1]} : vector<8x512xf32> to vector<8x128xf32>
    %594 = math.tanh %593 : vector<8x128xf32>
    %595 = vector.extract_strided_slice %576 {offsets = [0, 384], sizes = [8, 128], strides = [1, 1]} : vector<8x512xf32> to vector<8x128xf32>
    %cst_250 = arith.constant 5.000000e-01 : f32
    %596 = vector.broadcast %cst_250 : f32 to vector<8x128xf32>
    %597 = arith.mulf %596, %595 : vector<8x128xf32>
    %598 = math.tanh %597 : vector<8x128xf32>
    %cst_251 = arith.constant 5.000000e-01 : f32
    %599 = vector.broadcast %cst_251 : f32 to vector<8x128xf32>
    %600 = arith.mulf %599, %598 : vector<8x128xf32>
    %cst_252 = arith.constant 5.000000e-01 : f32
    %601 = vector.broadcast %cst_252 : f32 to vector<8x128xf32>
    %602 = arith.addf %600, %601 : vector<8x128xf32>
    %603 = arith.mulf %592, %570 : vector<8x128xf32>
    %604 = arith.mulf %584, %594 : vector<8x128xf32>
    %605 = arith.addf %603, %604 : vector<8x128xf32>
    %606 = math.tanh %605 : vector<8x128xf32>
    %607 = arith.mulf %602, %606 : vector<8x128xf32>
    %c0_253 = arith.constant 0 : index
    %c0_254 = arith.constant 0 : index
    %608 = vector.load %arg7[%c0_253, %c0_254] : memref<128x4xf32, #tpu.memory_space<vmem>>, vector<128x4xf32>
    %cst_255 = arith.constant dense<0.000000e+00> : vector<8x4xf32>
    %609 = tpu.matmul %607, %608, %cst_255 {dimension_numbers = #tpu.dot_dimension_numbers<[1], [0], [0], [1], [0, 0, 1, 1], [], []>} : vector<8x128xf32>, vector<128x4xf32>, vector<8x4xf32> -> vector<8x4xf32>
    %c0_256 = arith.constant 0 : index
    %c0_257 = arith.constant 0 : index
    %610 = vector.load %arg8[%c0_256, %c0_257] : memref<1x4xf32, #tpu.memory_space<vmem>>, vector<1x4xf32>
    %611 = vector.broadcast %610 : vector<1x4xf32> to vector<8x4xf32>
    %612 = arith.addf %609, %611 : vector<8x4xf32>
    %c0_258 = arith.constant 0 : index
    %c0_259 = arith.constant 0 : index
    %613 = vector.load %arg9[%c0_258, %c0_259] : memref<8x4xf32, #tpu.memory_space<vmem>>, vector<8x4xf32>
    tpu.vector_store %arg9[%c0_258, %c0_259], %612 {strides = array<i32>} : memref<8x4xf32, #tpu.memory_space<vmem>>, vector<8x4xf32>,
    return
  }
}

</mosaic_0001>

<bundles_post_ra>
// kernel: lstm_model_forward.1
= control target key start
LH: loop header
LB: loop body
LE: loop exit
PB: predicated region body
PF: predicated region fallthrough
CT: control target
= control target key end

     0   :  { %14 = vsyncpa [#allocation5], 0  ;;  %s6284_s0 = inlined_call_operand.vmem [shape: f32[8,8,16], index: 0, kind: input, shape index: {}]   ;;  %s6285_s1 = inlined_call_operand.vmem [shape: f32[16,512], index: 1, kind: input, shape index: {}]   ;;  %s6286_s2 = inlined_call_operand.hbm [shape: f32[128,512], index: 2, kind: input, shape index: {}]   ;;  %s6287_s3 = inlined_call_operand.vmem [shape: f32[1,512], index: 3, kind: input, shape index: {}]   ;;  %s6288_s4 = inlined_call_operand.hbm [shape: f32[128,512], index: 4, kind: input, shape index: {}]   ;;  %s6289_s5 = inlined_call_operand.hbm [shape: f32[128,512], index: 5, kind: input, shape index: {}]   ;;  %s6290_s6 = inlined_call_operand.vmem [shape: f32[1,512], index: 6, kind: input, shape index: {}]   ;;  %s6291_s7 = inlined_call_operand.vmem [shape: f32[128,4], index: 7, kind: input, shape index: {}]   ;;  %s6292_s8 = inlined_call_operand.vmem [shape: f32[1,4], index: 8, kind: input, shape index: {}]   ;;  %s6293_s9 = inlined_call_operand.vmem [shape: f32[8,4], index: 9, kind: output, shape index: {}]  }
   0x1   :  { %15 = vsyncpa [#allocation7], 0  ;;  %s4113_s30 = smov [#allocation6]   ;;  %s4114_s11 = smov [#allocation4]  }
   0x2   :  { %s39_s10 = sshll.u32 %s4113_s30, 4  ;;  %s25_s12 = sshll.u32 %s4114_s11, 4  ;;  %s40_s10 = int_to_ptr.vmem [resolvable:$true] %s39_s10  ;;  %s26_s12 = int_to_ptr.vmem [resolvable:$true] %s25_s12 }
   0x3   :  { %s4057_s13 = scalar_lea.vmem %s40_s10, 8192  ;;  %p4062_p1 = scmp.lt.s32.totalorder %s40_s10, %s40_s10 }
   0x4   :  { %p4058_p0 = scmp.ne.s32.totalorder %s40_s10, %s4057_s13  ;;  %p4063_p2 = scmp.lt.s32.totalorder %s4057_s13, %s4057_s13 }
   0x6   :  { %p4064_p3 = por %p4063_p2, %p4062_p1 }
   0x8   :  { %p4065_p4 = pnand %p4064_p3, %p4058_p0 }
   0xa   :  { %4068 = shalt.err (!%p4065_p4)
}
   0xb   :  { %s4115_s14 = smov 512   ;;  %s4116_s15 = smov 32  }
   0xc   :  { %45 = dma.hbm_to_vmem [thread:$0]  %s6288_s4, 8192, %s40_s10, [#allocation7], %s4115_s14, %s4115_s14, %s4116_s15  }
   0xd   :  { %s4077_s18 = scalar_lea.vmem %s26_s12, 8192  ;;  %p4082_p6 = scmp.lt.s32.totalorder %s26_s12, %s26_s12 }
   0xe   :  { %p4078_p5 = scmp.ne.s32.totalorder %s26_s12, %s4077_s18  ;;  %p4083_p7 = scmp.lt.s32.totalorder %s4077_s18, %s4077_s18 }
  0x10   :  { %p4084_p8 = por %p4083_p7, %p4082_p6 }
  0x12   :  { %p4085_p9 = pnand %p4084_p8, %p4078_p5 }
  0x14   :  { %4088 = shalt.err (!%p4085_p9)
}
  0x15   :  { %31 = dma.hbm_to_vmem [thread:$0]  %s6286_s2, 8192, %s26_s12, [#allocation5], %s4115_s14, %s4115_s14, %s4116_s15  }
  0x16   :  { %s4117_s21 = smov [#allocation8]  }
  0x17   :  { %s51_s22 = sshll.u32 %s4117_s21, 4  ;;  %s52_s22 = int_to_ptr.vmem [resolvable:$true] %s51_s22 }
  0x18   :  { %s4097_s23 = scalar_lea.vmem %s52_s22, 8192  ;;  %p4102_p11 = scmp.lt.s32.totalorder %s52_s22, %s52_s22 }
  0x19   :  { %p4098_p10 = scmp.ne.s32.totalorder %s52_s22, %s4097_s23  ;;  %p4103_p12 = scmp.lt.s32.totalorder %s4097_s23, %s4097_s23 }
  0x1b   :  { %p4104_p13 = por %p4103_p12, %p4102_p11 }
  0x1d   :  { %p4105_p0 = pnand %p4104_p13, %p4098_p10 }
  0x1f   :  { %4108 = shalt.err (!%p4105_p0)
}
  0x20   :  { %57 = dma.hbm_to_vmem [thread:$0]  %s6289_s5, 8192, %s52_s22, [#allocation7], %s4115_s14, %s4115_s14, %s4116_s15  }
  0x21   :  { %4109 = dma.done.wait [#allocation5], 8192  }
  0x22   :  { %4110 = vsyncadd [#allocation5], 4294959104 }
  0x23   :  { %4111 = dma.done.wait [#allocation7], 16384  }
  0x24   :  { %4112 = vsyncadd [#allocation7], 4294950912  ;;  %v6294_v0 = vmov 0.0   ;;  %v86_v1 = vld [vmem:[%s6285_s1 + $0x28] sm:$0xff]  ;;  %v88_v2 = vld [vmem:[%s6285_s1 + $0x38] sm:$0xff]  ;;  %vm111_vm0 = vcmask 130048  }
  0x25   :  { %200 = vmatprep.mubr.f32.mxu0 %v6294_v0  ;;  %313 = vmatprep.mubr.f32.mxu1 %v6294_v0  ;;  %v85_v3 = vld [vmem:[%s6285_s1 + $0x20] sm:$0xff]  ;;  %v87_v4 = vld [vmem:[%s6285_s1 + $0x30] sm:$0xff]  ;;  %v82_v5 = vld [vmem:[%s6285_s1 + $0x8] sm:$0xff]  ;;  %vm4119_vm1 = vmmov 0   ;;  %vm3677_vm2 = vcmask 31744  }
  0x26   :  { %164 = vmatprep.subr.mxu0 %v86_v1  ;;  %277 = vmatprep.subr.mxu1 %v88_v2  ;;  %v84_v6 = vld [vmem:[%s6285_s1 + $0x18] sm:$0xff]  ;;  %v81_v7 = vld [vmem:[%s6285_s1] sm:$0xff]  ;;  %v83_v8 = vld [vmem:[%s6285_s1 + $0x10] sm:$0xff] }
  0x27   :  { %165 = vmatpush1.msra.mxu0 %v85_v3  ;;  %278 = vmatpush1.msra.mxu1 %v87_v4  ;;  %v73_v9 = vld [vmem:[%s6284_s0] sm:$0xff]  ;;  %v4208_v10 = vld [vmem:[#allocation4 + $0x1e8] sm:$0xff]  ;;  %v4210_v11 = vld [vmem:[#allocation4 + $0x1f8] sm:$0xff] }
  0x28   :  { %166 = vmatprep.subr.mxu0 %v82_v5  ;;  %279 = vmatprep.subr.mxu1 %v84_v6  ;;  %6503 = vst [vmem:[#allocation11_spill] sm:$0xff] %v4208_v10  ;;  %6504 = vst [vmem:[#allocation12_spill] sm:$0xff] %v4210_v11  ;;  %v4212_v12 = vld [vmem:[#allocation4 + $0x1e0] sm:$0xff]  ;;  %v4214_v13 = vld [vmem:[#allocation4 + $0x1f0] sm:$0xff] }
  0x29   :  { %167 = vmatpush1.msra.mxu0 %v81_v7  ;;  %280 = vmatpush1.msra.mxu1 %v83_v8  ;;  %v4218_v14 = vld [vmem:[#allocation4 + $0x1c8] sm:$0xff]  ;;  %v4220_v15 = vld [vmem:[#allocation4 + $0x1d8] sm:$0xff]  ;;  %v4226_v16 = vld [vmem:[#allocation4 + $0x1c0] sm:$0xff] }
  0x2a   :  { %3685 = vmatmul.mubr.msk.f32.vlgmr.msra.gmra.mxu0 %vm111_vm0, %v73_v9  ;;  %3693 = vmatmul.mubr.msk.f32.vlgmr.msra.gmra.mxu1 %vm111_vm0, %v73_v9  ;;  %v4228_v17 = vld [vmem:[#allocation4 + $0x1d0] sm:$0xff]  ;;  %v74_v18 = vld [vmem:[%s6284_s0 + $0x8] sm:$0xff]  ;;  %v4239_v20 = vld [vmem:[#allocation4 + $0x1b8] sm:$0xff] }
  0x2b   :  { %462 = vmatprep.subr.mxu0 %v4208_v10  ;;  %533 = vmatprep.subr.mxu1 %v4210_v11  ;;  %v4237_v19 = vld [vmem:[#allocation4 + $0x1a8] sm:$0xff]  ;;  %v4243_v21 = vld [vmem:[#allocation4 + $0x1a0] sm:$0xff]  ;;  %v4245_v22 = vld [vmem:[#allocation4 + $0x1b0] sm:$0xff] }
  0x2c   :  { %463 = vmatpush1.msra.mxu0 %v4212_v12  ;;  %534 = vmatpush1.msra.mxu1 %v4214_v13  ;;  %v4249_v23 = vld [vmem:[#allocation4 + $0x188] sm:$0xff]  ;;  %v4251_v24 = vld [vmem:[#allocation4 + $0x198] sm:$0xff]  ;;  %v4257_v25 = vld [vmem:[#allocation4 + $0x180] sm:$0xff] }
  0x2d   :  { %464 = vmatprep.subr.mxu0 %v4218_v14  ;;  %535 = vmatprep.subr.mxu1 %v4220_v15  ;;  %v4259_v26 = vld [vmem:[#allocation4 + $0x190] sm:$0xff]  ;;  %v4268_v28 = vld [vmem:[#allocation4 + $0x168] sm:$0xff]  ;;  %v4270_v29 = vld [vmem:[#allocation4 + $0x178] sm:$0xff] }
  0x2e   :  { %206 = vmatprep.mubr.f32.mxu0 %v6294_v0  ;;  %319 = vmatprep.mubr.f32.mxu1 %v6294_v0  ;;  %v75_v27 = vld [vmem:[%s6284_s0 + $0x10] sm:$0xff]  ;;  %v4274_v30 = vld [vmem:[#allocation4 + $0x160] sm:$0xff]  ;;  %v4280_v32 = vld [vmem:[#allocation4 + $0x148] sm:$0xff] }
  0x2f   :  { %465 = vmatpush1.msra.mxu0 %v4226_v16  ;;  %536 = vmatpush1.msra.mxu1 %v4228_v17  ;;  %v4276_v31 = vld [vmem:[#allocation4 + $0x170] sm:$0xff]  ;;  %v4282_v33 = vld [vmem:[#allocation4 + $0x158] sm:$0xff]  ;;  %v4288_v34 = vld [vmem:[#allocation4 + $0x140] sm:$0xff] }
  0x30   :  { %3686 = vmatmul.mubr.msk.f32.gmra.mxu0 %vm111_vm0, %v74_v18  ;;  %3694 = vmatmul.mubr.msk.f32.gmra.mxu1 %vm111_vm0, %v74_v18  ;;  %v4290_v35 = vld [vmem:[#allocation4 + $0x150] sm:$0xff]  ;;  %v76_v36 = vld [vmem:[%s6284_s0 + $0x18] sm:$0xff]  ;;  %v4299_v37 = vld [vmem:[#allocation4 + $0x128] sm:$0xff] }
  0x31   :  { %466 = vmatprep.subr.mxu0 %v4237_v19  ;;  %537 = vmatprep.subr.mxu1 %v4239_v20  ;;  %v4301_v38 = vld [vmem:[#allocation4 + $0x138] sm:$0xff]  ;;  %v4305_v39 = vld [vmem:[#allocation4 + $0x120] sm:$0xff]  ;;  %v4307_v40 = vld [vmem:[#allocation4 + $0x130] sm:$0xff] }
  0x32   :  { %467 = vmatpush1.msra.mxu0 %v4243_v21  ;;  %538 = vmatpush1.msra.mxu1 %v4245_v22  ;;  %v4311_v41 = vld [vmem:[#allocation4 + $0x108] sm:$0xff]  ;;  %v4313_v42 = vld [vmem:[#allocation4 + $0x118] sm:$0xff]  ;;  %v4319_v43 = vld [vmem:[#allocation4 + $0x100] sm:$0xff] }
  0x33   :  { %468 = vmatprep.subr.mxu0 %v4249_v23  ;;  %539 = vmatprep.subr.mxu1 %v4251_v24  ;;  %v4321_v44 = vld [vmem:[#allocation4 + $0x110] sm:$0xff]  ;;  %v77_v45 = vld [vmem:[%s6284_s0 + $0x20] sm:$0xff]  ;;  %v4330_v46 = vld [vmem:[#allocation4 + $0xe8] sm:$0xff] }
  0x34   :  { %212 = vmatprep.mubr.f32.mxu0 %v6294_v0  ;;  %325 = vmatprep.mubr.f32.mxu1 %v6294_v0  ;;  %v4332_v47 = vld [vmem:[#allocation4 + $0xf8] sm:$0xff]  ;;  %v4336_v48 = vld [vmem:[#allocation4 + $0xe0] sm:$0xff]  ;;  %v4338_v49 = vld [vmem:[#allocation4 + $0xf0] sm:$0xff] }
  0x35   :  { %469 = vmatpush1.msra.mxu0 %v4257_v25  ;;  %540 = vmatpush1.msra.mxu1 %v4259_v26  ;;  %v4342_v50 = vld [vmem:[#allocation4 + $0xc8] sm:$0xff]  ;;  %v4344_v51 = vld [vmem:[#allocation4 + $0xd8] sm:$0xff]  ;;  %v4350_v52 = vld [vmem:[#allocation4 + $0xc0] sm:$0xff] }
  0x36   :  { %3687 = vmatmul.mubr.msk.f32.gmra.mxu0 %vm111_vm0, %v75_v27  ;;  %3695 = vmatmul.mubr.msk.f32.gmra.mxu1 %vm111_vm0, %v75_v27  ;;  %v4352_v53 = vld [vmem:[#allocation4 + $0xd0] sm:$0xff]  ;;  %v78_v54 = vld [vmem:[%s6284_s0 + $0x28] sm:$0xff]  ;;  %v4363_v56 = vld [vmem:[#allocation4 + $0xb8] sm:$0xff] }
  0x37   :  { %470 = vmatprep.subr.mxu0 %v4268_v28  ;;  %541 = vmatprep.subr.mxu1 %v4270_v29  ;;  %v4361_v55 = vld [vmem:[#allocation4 + $0xa8] sm:$0xff]  ;;  %v4367_v57 = vld [vmem:[#allocation4 + $0xa0] sm:$0xff]  ;;  %v4369_v58 = vld [vmem:[#allocation4 + $0xb0] sm:$0xff] }
  0x38   :  { %471 = vmatpush1.msra.mxu0 %v4274_v30  ;;  %542 = vmatpush1.msra.mxu1 %v4276_v31  ;;  %6505 = vst [vmem:[#allocation13_spill] sm:$0xff] %v4369_v58  ;;  %v4373_v59 = vld [vmem:[#allocation4 + $0x88] sm:$0xff]  ;;  %v4375_v60 = vld [vmem:[#allocation4 + $0x98] sm:$0xff]  ;;  %v4381_v61 = vld [vmem:[#allocation4 + $0x80] sm:$0xff] }
  0x39   :  { %472 = vmatprep.subr.mxu0 %v4280_v32  ;;  %543 = vmatprep.subr.mxu1 %v4282_v33  ;;  %6506 = vst [vmem:[#allocation14_spill] sm:$0xff] %v4373_v59  ;;  %6507 = vst [vmem:[#allocation15_spill] sm:$0xff] %v4375_v60  ;;  %v4383_v62 = vld [vmem:[#allocation4 + $0x90] sm:$0xff]  ;;  %v4392_v1 = vld [vmem:[#allocation4 + $0x68] sm:$0xff] }
  0x3a   :  { %218 = vmatprep.mubr.f32.mxu0 %v6294_v0  ;;  %331 = vmatprep.mubr.f32.mxu1 %v6294_v0  ;;  %6508 = vst [vmem:[#allocation16_spill] sm:$0xff] %v4381_v61  ;;  %6509 = vst [vmem:[#allocation17_spill] sm:$0xff] %v4383_v62  ;;  %v79_v63 = vld [vmem:[%s6284_s0 + $0x30] sm:$0xff]  ;;  %v4394_v2 = vld [vmem:[#allocation4 + $0x78] sm:$0xff] }
  0x3b   :  { %473 = vmatpush1.msra.mxu0 %v4288_v34  ;;  %544 = vmatpush1.msra.mxu1 %v4290_v35  ;;  %6510 = vst [vmem:[#allocation18_spill] sm:$0xff] %v4392_v1  ;;  %6511 = vst [vmem:[#allocation19_spill] sm:$0xff] %v4394_v2  ;;  %v4398_v3 = vld [vmem:[#allocation4 + $0x60] sm:$0xff]  ;;  %v4400_v4 = vld [vmem:[#allocation4 + $0x70] sm:$0xff] }
  0x3c   :  { %3688 = vmatmul.mubr.msk.f32.gmra.mxu0 %vm111_vm0, %v76_v36  ;;  %3696 = vmatmul.mubr.msk.f32.gmra.mxu1 %vm111_vm0, %v76_v36  ;;  %6512 = vst [vmem:[#allocation20_spill] sm:$0xff] %v4398_v3  ;;  %6513 = vst [vmem:[#allocation21_spill] sm:$0xff] %v4400_v4  ;;  %v4404_v5 = vld [vmem:[#allocation4 + $0x48] sm:$0xff]  ;;  %v4406_v6 = vld [vmem:[#allocation4 + $0x58] sm:$0xff] }
  0x3d   :  { %474 = vmatprep.subr.mxu0 %v4299_v37  ;;  %545 = vmatprep.subr.mxu1 %v4301_v38  ;;  %6514 = vst [vmem:[#allocation22_spill] sm:$0xff] %v4404_v5  ;;  %6515 = vst [vmem:[#allocation23_spill] sm:$0xff] %v4406_v6  ;;  %v4412_v7 = vld [vmem:[#allocation4 + $0x40] sm:$0xff]  ;;  %v4414_v8 = vld [vmem:[#allocation4 + $0x50] sm:$0xff] }
  0x3e   :  { %475 = vmatpush1.msra.mxu0 %v4305_v39  ;;  %546 = vmatpush1.msra.mxu1 %v4307_v40  ;;  %6516 = vst [vmem:[#allocation24_spill] sm:$0xff] %v4412_v7  ;;  %6517 = vst [vmem:[#allocation25_spill] sm:$0xff] %v4414_v8  ;;  %v80_v9 = vld [vmem:[%s6284_s0 + $0x38] sm:$0xff]  ;;  %v4423_v18 = vld [vmem:[#allocation4 + $0x28] sm:$0xff] }
  0x3f   :  { %476 = vmatprep.subr.mxu0 %v4311_v41  ;;  %547 = vmatprep.subr.mxu1 %v4313_v42  ;;  %6518 = vst [vmem:[#allocation26_spill] sm:$0xff] %v4423_v18  ;;  %v4425_v27 = vld [vmem:[#allocation4 + $0x38] sm:$0xff]  ;;  %v4429_v36 = vld [vmem:[#allocation4 + $0x20] sm:$0xff] }
  0x40   :  { %224 = vmatprep.mubr.f32.mxu0 %v6294_v0  ;;  %337 = vmatprep.mubr.f32.mxu1 %v6294_v0  ;;  %6519 = vst [vmem:[#allocation27_spill] sm:$0xff] %v4425_v27  ;;  %6520 = vst [vmem:[#allocation28_spill] sm:$0xff] %v4429_v36 }
  0x41   :  { %477 = vmatpush1.msra.mxu0 %v4319_v43  ;;  %548 = vmatpush1.msra.mxu1 %v4321_v44 }
  0x42   :  { %3689 = vmatmul.mubr.msk.f32.gmra.mxu0 %vm111_vm0, %v77_v45  ;;  %3697 = vmatmul.mubr.msk.f32.gmra.mxu1 %vm111_vm0, %v77_v45  ;;  %v4431_v45 = vld [vmem:[#allocation4 + $0x30] sm:$0xff] }
  0x43   :  { %478 = vmatprep.subr.mxu0 %v4330_v46  ;;  %549 = vmatprep.subr.mxu1 %v4332_v47  ;;  %6521 = vst [vmem:[#allocation29_spill] sm:$0xff] %v4431_v45 }
  0x44   :  { %479 = vmatpush1.msra.mxu0 %v4336_v48  ;;  %550 = vmatpush1.msra.mxu1 %v4338_v49 }
  0x45   :  { %480 = vmatprep.subr.mxu0 %v4342_v50  ;;  %551 = vmatprep.subr.mxu1 %v4344_v51 }
  0x46   :  { %230 = vmatprep.mubr.f32.mxu0 %v6294_v0  ;;  %343 = vmatprep.mubr.f32.mxu1 %v6294_v0 }
  0x47   :  { %481 = vmatpush1.msra.mxu0 %v4350_v52  ;;  %552 = vmatpush1.msra.mxu1 %v4352_v53 }
  0x48   :  { %3690 = vmatmul.mubr.msk.f32.gmra.mxu0 %vm111_vm0, %v78_v54  ;;  %3698 = vmatmul.mubr.msk.f32.gmra.mxu1 %vm111_vm0, %v78_v54  ;;  %v4435_v54 = vld [vmem:[#allocation4 + $0x8] sm:$0xff] }
  0x49   :  { %482 = vmatprep.subr.mxu0 %v4361_v55  ;;  %553 = vmatprep.subr.mxu1 %v4363_v56  ;;  %6522 = vst [vmem:[#allocation30_spill] sm:$0xff] %v4435_v54 }
  0x4a   :  { %483 = vmatpush1.msra.mxu0 %v4367_v57  ;;  %554 = vmatpush1.msra.mxu1 %v4369_v58 }
  0x4b   :  { %484 = vmatprep.subr.mxu0 %v4373_v59  ;;  %555 = vmatprep.subr.mxu1 %v4375_v60 }
  0x4c   :  { %236 = vmatprep.mubr.f32.mxu0 %v6294_v0  ;;  %349 = vmatprep.mubr.f32.mxu1 %v6294_v0 }
  0x4d   :  { %485 = vmatpush1.msra.mxu0 %v4381_v61  ;;  %556 = vmatpush1.msra.mxu1 %v4383_v62 }
  0x4e   :  { %3691 = vmatmul.mubr.msk.f32.gmra.mxu0 %vm111_vm0, %v79_v63  ;;  %3699 = vmatmul.mubr.msk.f32.gmra.mxu1 %vm111_vm0, %v79_v63  ;;  %v4437_v63 = vld [vmem:[#allocation4 + $0x18] sm:$0xff] }
  0x4f   :  { %486 = vmatprep.subr.mxu0 %v4392_v1  ;;  %557 = vmatprep.subr.mxu1 %v4394_v2  ;;  %6523 = vst [vmem:[#allocation31_spill] sm:$0xff] %v4437_v63 }
  0x50   :  { %487 = vmatpush1.msra.mxu0 %v4398_v3  ;;  %558 = vmatpush1.msra.mxu1 %v4400_v4 }
  0x51   :  { %488 = vmatprep.subr.mxu0 %v4404_v5  ;;  %559 = vmatprep.subr.mxu1 %v4406_v6 }
  0x52   :  { %242 = vmatprep.mubr.f32.mxu0 %v6294_v0  ;;  %355 = vmatprep.mubr.f32.mxu1 %v6294_v0  ;;  %v4441_v0 = vld [vmem:[#allocation4] sm:$0xff] }
  0x53   :  { %489 = vmatpush1.msra.mxu0 %v4412_v7  ;;  %560 = vmatpush1.msra.mxu1 %v4414_v8  ;;  %6524 = vst [vmem:[#allocation32_spill] sm:$0xff] %v4441_v0  ;;  %v4445_v8 = vld [vmem:[#allocation4 + $0x10] sm:$0xff] }
  0x54   :  { %3692 = vmatmul.mubr.msk.f32.gmra.mxu0 %vm111_vm0, %v80_v9  ;;  %3700 = vmatmul.mubr.msk.f32.gmra.mxu1 %vm111_vm0, %v80_v9  ;;  %6525 = vst [vmem:[#allocation33_spill] sm:$0xff] %v4445_v8  ;;  %v6526_v9 = vmov 0.0  }
  0x55   :  { %490 = vmatprep.subr.mxu0 %v4423_v18  ;;  %561 = vmatprep.subr.mxu1 %v4425_v27 }
  0x56   :  { %491 = vmatpush1.msra.mxu0 %v4429_v36  ;;  %562 = vmatpush1.msra.mxu1 %v4431_v45 }
  0x57   :  { %492 = vmatprep.subr.mxu0 %v4435_v54  ;;  %563 = vmatprep.subr.mxu1 %v4437_v63 }
  0x58   :  { %493 = vmatpush1.msra.mxu0 %v4441_v0  ;;  %526 = vmatprep.mubr.f32.mxu0 %v6526_v9 }
  0x59   :  { %564 = vmatpush1.msra.mxu1 %v4445_v8  ;;  %597 = vmatprep.mubr.f32.mxu1 %v6526_v9 }
  0x5a   :  { %527 = vmatmul.mubr.f32.vlgmr.msra.gmra.mxu0 %v6526_v9  ;;  %598 = vmatmul.mubr.f32.vlgmr.msra.gmra.mxu1 %v6526_v9 }
  0x5b   :  { %632 = vmatprep.subr.mxu0 %v4208_v10  ;;  %703 = vmatprep.subr.mxu1 %v4210_v11 }
  0x5c   :  { %633 = vmatpush1.msra.mxu0 %v4212_v12  ;;  %704 = vmatpush1.msra.mxu1 %v4214_v13 }
  0x5d   :  { %634 = vmatprep.subr.mxu0 %v4218_v14  ;;  %705 = vmatprep.subr.mxu1 %v4220_v15 }
  0x5e   :  { %635 = vmatpush1.msra.mxu0 %v4226_v16  ;;  %706 = vmatpush1.msra.mxu1 %v4228_v17 }
  0x5f   :  { %636 = vmatprep.subr.mxu0 %v4237_v19  ;;  %707 = vmatprep.subr.mxu1 %v4239_v20 }
  0x60   :  { %637 = vmatpush1.msra.mxu0 %v4243_v21  ;;  %708 = vmatpush1.msra.mxu1 %v4245_v22 }
  0x61   :  { %638 = vmatprep.subr.mxu0 %v4249_v23  ;;  %709 = vmatprep.subr.mxu1 %v4251_v24 }
  0x62   :  { %639 = vmatpush1.msra.mxu0 %v4257_v25  ;;  %710 = vmatpush1.msra.mxu1 %v4259_v26 }
  0x63   :  { %640 = vmatprep.subr.mxu0 %v4268_v28  ;;  %711 = vmatprep.subr.mxu1 %v4270_v29 }
  0x64   :  { %641 = vmatpush1.msra.mxu0 %v4274_v30  ;;  %712 = vmatpush1.msra.mxu1 %v4276_v31 }
  0x65   :  { %642 = vmatprep.subr.mxu0 %v4280_v32  ;;  %713 = vmatprep.subr.mxu1 %v4282_v33 }
  0x66   :  { %643 = vmatpush1.msra.mxu0 %v4288_v34  ;;  %714 = vmatpush1.msra.mxu1 %v4290_v35 }
  0x67   :  { %644 = vmatprep.subr.mxu0 %v4299_v37  ;;  %715 = vmatprep.subr.mxu1 %v4301_v38 }
  0x68   :  { %645 = vmatpush1.msra.mxu0 %v4305_v39  ;;  %716 = vmatpush1.msra.mxu1 %v4307_v40 }
  0x69   :  { %646 = vmatprep.subr.mxu0 %v4311_v41  ;;  %717 = vmatprep.subr.mxu1 %v4313_v42 }
  0x6a   :  { %647 = vmatpush1.msra.mxu0 %v4319_v43  ;;  %718 = vmatpush1.msra.mxu1 %v4321_v44 }
  0x6b   :  { %648 = vmatprep.subr.mxu0 %v4330_v46  ;;  %719 = vmatprep.subr.mxu1 %v4332_v47 }
  0x6c   :  { %649 = vmatpush1.msra.mxu0 %v4336_v48  ;;  %720 = vmatpush1.msra.mxu1 %v4338_v49 }
  0x6d   :  { %650 = vmatprep.subr.mxu0 %v4342_v50  ;;  %721 = vmatprep.subr.mxu1 %v4344_v51 }
  0x6e   :  { %651 = vmatpush1.msra.mxu0 %v4350_v52  ;;  %722 = vmatpush1.msra.mxu1 %v4352_v53 }
  0x6f   :  { %652 = vmatprep.subr.mxu0 %v4361_v55  ;;  %723 = vmatprep.subr.mxu1 %v4363_v56 }
  0x70   :  { %653 = vmatpush1.msra.mxu0 %v4367_v57  ;;  %724 = vmatpush1.msra.mxu1 %v4369_v58 }
  0x71   :  { %654 = vmatprep.subr.mxu0 %v4373_v59  ;;  %725 = vmatprep.subr.mxu1 %v4375_v60  ;;  %v6527_v59 = vld [vmem:[#allocation25_spill] sm:$0xff] }
  0x72   :  { %655 = vmatpush1.msra.mxu0 %v4381_v61  ;;  %726 = vmatpush1.msra.mxu1 %v4383_v62 }
  0x73   :  { %656 = vmatprep.subr.mxu0 %v4392_v1  ;;  %727 = vmatprep.subr.mxu1 %v4394_v2 }
  0x74   :  { %657 = vmatpush1.msra.mxu0 %v4398_v3  ;;  %728 = vmatpush1.msra.mxu1 %v4400_v4 }
  0x75   :  { %658 = vmatprep.subr.mxu0 %v4404_v5  ;;  %729 = vmatprep.subr.mxu1 %v4406_v6 }
  0x76   :  { %659 = vmatpush1.msra.mxu0 %v4412_v7  ;;  %730 = vmatpush1.msra.mxu1 %v6527_v59 }
  0x77   :  { %660 = vmatprep.subr.mxu0 %v4423_v18  ;;  %731 = vmatprep.subr.mxu1 %v4425_v27  ;;  %v91_v27 = vlaneseq }
  0x78   :  { %661 = vmatpush1.msra.mxu0 %v4429_v36  ;;  %732 = vmatpush1.msra.mxu1 %v4431_v45 }
  0x79   :  { %662 = vmatprep.subr.mxu0 %v4435_v54  ;;  %733 = vmatprep.subr.mxu1 %v4437_v63  ;;  %v4523_v36 = vshrl.u32 %v91_v27, 7 }
  0x7a   :  { %663 = vmatpush1.msra.mxu0 %v4441_v0  ;;  %696 = vmatprep.mubr.f32.mxu0 %v6526_v9 }
  0x7b   :  { %734 = vmatpush1.msra.mxu1 %v4445_v8  ;;  %767 = vmatprep.mubr.f32.mxu1 %v6526_v9  ;;  %6528 = vst [vmem:[#allocation34_spill] sm:$0xff] %v4523_v36  ;;  %v6335_v63 = vsub.s32 0, %v4523_v36  ;;  %v6338_v0 = vsub.s32 2, %v4523_v36  ;;  %v89_v8 = vld [vmem:[%s6287_s3] sm:$0xf]  ;;  %v6346_v27 = vsub.s32 3, %v4523_v36 }
  0x7c   :  { %803 = vmatprep.subr.mxu0 %v4208_v10  ;;  %874 = vmatprep.subr.mxu1 %v4210_v11  ;;  %v6345_v11 = vsub.s32 1, %v4523_v36 }
  0x7d   :  { %v94_v18 = vrot.slane %v89_v8, %v6335_v63  ;;  %v4544_v59 = vrot.slane %v89_v8, %v6338_v0  ;;  %v4550_v4 = vrot.slane %v89_v8, %v6346_v27 }
  0x7e   :  { %v98_v5 = vrot.slane %v89_v8, %v6345_v11 }
  0xea   :  { %v4525_v45 = vpop.f32.mrf.mxu0  ;;  %v4527_v54 = vpop.f32.mrf.mxu1 }
  0xec   :  { %v4534_v9 = vpop.f32.mrf.mxu0  ;;  %v4536_v10 = vpop.f32.mrf.mxu1 }
  0xf0   :  { %v208_v7 = vpop.f32.mrf.mxu0  ;;  %v321_v6 = vpop.f32.mrf.mxu1 }
  0xf1   :  { %v4552_v3 = vadd.f32 %v208_v7, %v94_v18  ;;  %v4555_v2 = vadd.f32 %v321_v6, %v4544_v59 }
  0xf2   :  { %v210_v1 = vpop.f32.mrf.mxu0  ;;  %v323_v63 = vpop.f32.mrf.mxu1 }
  0xf3   :  { %6529 = vst [vmem:[#allocation35_spill] sm:$0xff] %v4555_v2  ;;  %v4557_v62 = vadd.f32 %v210_v1, %v98_v5  ;;  %v4560_v0 = vadd.f32 %v323_v63, %v4550_v4 }
  0xf5   :  { %6530 = vst [vmem:[#allocation36_spill] sm:$0xff] %v4557_v62  ;;  %6531 = vst [vmem:[#allocation37_spill] sm:$0xff] %v4560_v0 }
  0xf6   :  { %v214_v61 = vpop.f32.mrf.mxu0  ;;  %v327_v60 = vpop.f32.mrf.mxu1 }
  0xf7   :  { %v4562_v58 = vadd.f32 %v214_v61, %v94_v18  ;;  %v4565_v11 = vadd.f32 %v327_v60, %v4544_v59 }
  0xf8   :  { %v216_v8 = vpop.f32.mrf.mxu0  ;;  %v329_v7 = vpop.f32.mrf.mxu1 }
  0xf9   :  { %6532 = vst [vmem:[#allocation38_spill] sm:$0xff] %v4562_v58  ;;  %6533 = vst [vmem:[#allocation39_spill] sm:$0xff] %v4565_v11  ;;  %v4567_v27 = vadd.f32 %v216_v8, %v98_v5  ;;  %v4570_v6 = vadd.f32 %v329_v7, %v4550_v4 }
  0xfb   :  { %6534 = vst [vmem:[#allocation40_spill] sm:$0xff] %v4567_v27  ;;  %6535 = vst [vmem:[#allocation41_spill] sm:$0xff] %v4570_v6 }
  0xfc   :  { %v220_v36 = vpop.f32.mrf.mxu0  ;;  %v333_v1 = vpop.f32.mrf.mxu1 }
  0xfd   :  { %v4572_v2 = vadd.f32 %v220_v36, %v94_v18  ;;  %v4575_v63 = vadd.f32 %v333_v1, %v4544_v59 }
  0xfe   :  { %v222_v0 = vpop.f32.mrf.mxu0  ;;  %v335_v61 = vpop.f32.mrf.mxu1 }
  0xff   :  { %6536 = vst [vmem:[#allocation42_spill] sm:$0xff] %v4572_v2  ;;  %6537 = vst [vmem:[#allocation43_spill] sm:$0xff] %v4575_v63  ;;  %v4577_v58 = vadd.f32 %v222_v0, %v98_v5  ;;  %v4580_v60 = vadd.f32 %v335_v61, %v4550_v4 }
 0x101   :  { %6538 = vst [vmem:[#allocation44_spill] sm:$0xff] %v4577_v58  ;;  %6539 = vst [vmem:[#allocation45_spill] sm:$0xff] %v4580_v60 }
 0x102   :  { %v226_v11 = vpop.f32.mrf.mxu0  ;;  %v339_v8 = vpop.f32.mrf.mxu1 }
 0x103   :  { %v4582_v27 = vadd.f32 %v226_v11, %v94_v18  ;;  %v4585_v7 = vadd.f32 %v339_v8, %v4544_v59 }
 0x104   :  { %v228_v6 = vpop.f32.mrf.mxu0  ;;  %v341_v36 = vpop.f32.mrf.mxu1 }
 0x105   :  { %6540 = vst [vmem:[#allocation46_spill] sm:$0xff] %v4582_v27  ;;  %6541 = vst [vmem:[#allocation47_spill] sm:$0xff] %v4585_v7  ;;  %v4587_v2 = vadd.f32 %v228_v6, %v98_v5  ;;  %v4590_v1 = vadd.f32 %v341_v36, %v4550_v4 }
 0x107   :  { %6542 = vst [vmem:[#allocation48_spill] sm:$0xff] %v4587_v2  ;;  %6543 = vst [vmem:[#allocation49_spill] sm:$0xff] %v4590_v1 }
 0x108   :  { %v232_v63 = vpop.f32.mrf.mxu0  ;;  %v345_v0 = vpop.f32.mrf.mxu1 }
 0x109   :  { %v4592_v58 = vadd.f32 %v232_v63, %v94_v18  ;;  %v4595_v61 = vadd.f32 %v345_v0, %v4544_v59 }
 0x10a   :  { %v234_v60 = vpop.f32.mrf.mxu0  ;;  %v347_v11 = vpop.f32.mrf.mxu1 }
 0x10b   :  { %6544 = vst [vmem:[#allocation50_spill] sm:$0xff] %v4592_v58  ;;  %6545 = vst [vmem:[#allocation51_spill] sm:$0xff] %v4595_v61  ;;  %v4597_v27 = vadd.f32 %v234_v60, %v98_v5  ;;  %v4600_v8 = vadd.f32 %v347_v11, %v4550_v4 }
 0x10d   :  { %6546 = vst [vmem:[#allocation52_spill] sm:$0xff] %v4597_v27  ;;  %6547 = vst [vmem:[#allocation53_spill] sm:$0xff] %v4600_v8 }
 0x10e   :  { %v238_v7 = vpop.f32.mrf.mxu0  ;;  %v351_v6 = vpop.f32.mrf.mxu1 }
 0x10f   :  { %v4602_v2 = vadd.f32 %v238_v7, %v94_v18  ;;  %v4605_v36 = vadd.f32 %v351_v6, %v4544_v59 }
 0x110   :  { %v240_v1 = vpop.f32.mrf.mxu0  ;;  %v353_v63 = vpop.f32.mrf.mxu1 }
 0x111   :  { %6548 = vst [vmem:[#allocation54_spill] sm:$0xff] %v4602_v2  ;;  %6549 = vst [vmem:[#allocation55_spill] sm:$0xff] %v4605_v36  ;;  %v4607_v58 = vadd.f32 %v240_v1, %v98_v5  ;;  %v4610_v0 = vadd.f32 %v353_v63, %v4550_v4  ;;  %v203_v1 = vadd.f32 %v4525_v45, %v94_v18 }
 0x112   :  { %v205_v63 = vadd.f32 %v4534_v9, %v98_v5 }
 0x113   :  { %6550 = vst [vmem:[#allocation56_spill] sm:$0xff] %v4607_v58  ;;  %6551 = vst [vmem:[#allocation57_spill] sm:$0xff] %v4610_v0 }
 0x114   :  { %v244_v61 = vpop.f32.mrf.mxu0  ;;  %v357_v60 = vpop.f32.mrf.mxu1 }
 0x115   :  { %v4612_v27 = vadd.f32 %v244_v61, %v94_v18  ;;  %v4615_v11 = vadd.f32 %v357_v60, %v4544_v59  ;;  %v316_v60 = vadd.f32 %v4527_v54, %v4544_v59 }
 0x116   :  { %v246_v8 = vpop.f32.mrf.mxu0  ;;  %v359_v7 = vpop.f32.mrf.mxu1 }
 0x117   :  { %6552 = vst [vmem:[#allocation58_spill] sm:$0xff] %v4612_v27  ;;  %6553 = vst [vmem:[#allocation59_spill] sm:$0xff] %v4615_v11  ;;  %v4617_v2 = vadd.f32 %v246_v8, %v98_v5  ;;  %v4620_v6 = vadd.f32 %v359_v7, %v4550_v4  ;;  %v318_v7 = vadd.f32 %v4536_v10, %v4550_v4 }
 0x119   :  { %6554 = vst [vmem:[#allocation60_spill] sm:$0xff] %v4617_v2  ;;  %6555 = vst [vmem:[#allocation61_spill] sm:$0xff] %v4620_v6  ;;  %v6576_v6 = vld [vmem:[#allocation32_spill] sm:$0xff] }
 0x11a   :  { %v528_v36 = vpop.f32.mrf.mxu0  ;;  %v599_v27 = vpop.f32.mrf.mxu1 }
 0x11b   :  { %v604_v0 = vadd.f32 %v528_v36, %v203_v1  ;;  %v606_v8 = vadd.f32 %v599_v27, %v316_v60  ;;  %v6558_v60 = vld [vmem:[#allocation14_spill] sm:$0xff] }
 0x11c   :  { %v530_v58 = vpop.f32.mrf.mxu0  ;;  %v601_v2 = vpop.f32.mrf.mxu1 }
 0x11d   :  { %v608_v62 = vmul.f32 0.5, %v604_v0  ;;  %v605_v61 = vadd.f32 %v530_v58, %v205_v63  ;;  %v607_v18 = vadd.f32 %v601_v2, %v318_v7  ;;  %v6560_v7 = vld [vmem:[#allocation16_spill] sm:$0xff] }
 0x11f   :  { %3761 = vtanh.f32 %v608_v62  ;;  %v612_v11 = vmul.f32 0.5, %v605_v61  ;;  %v617_v45 = vmul.f32 0.5, %v607_v18  ;;  %v6557_v61 = vld [vmem:[#allocation13_spill] sm:$0xff] }
 0x120   :  { %v6561_v18 = vld [vmem:[#allocation17_spill] sm:$0xff] }
 0x121   :  { %3763 = vtanh.f32 %v612_v11 }
 0x122   :  { %3765 = vtanh.f32 %v606_v8  ;;  %v6559_v8 = vld [vmem:[#allocation15_spill] sm:$0xff] }
 0x123   :  { %3767 = vtanh.f32 %v617_v45  ;;  %v6562_v45 = vld [vmem:[#allocation18_spill] sm:$0xff] }
 0x12c   :  { %v3762_v5 = vpop.eup %3761 }
 0x12d   :  { %v610_v9 = vmul.f32 0.5, %v3762_v5  ;;  %v6563_v5 = vld [vmem:[#allocation19_spill] sm:$0xff] }
 0x12e   :  { %v3764_v36 = vpop.eup %3763 }
 0x12f   :  { %v611_v0 = vadd.f32 0.5, %v610_v9  ;;  %v614_v58 = vmul.f32 0.5, %v3764_v36  ;;  %v3766_v63 = vpop.eup %3765  ;;  %v6564_v9 = vld [vmem:[#allocation20_spill] sm:$0xff]  ;;  %v6565_v36 = vld [vmem:[#allocation21_spill] sm:$0xff] }
 0x130   :  { %v3768_v27 = vpop.eup %3767 }
 0x131   :  { %v615_v1 = vadd.f32 0.5, %v614_v58  ;;  %v622_v62 = vmul.f32 %v3766_v63, %v611_v0  ;;  %v619_v11 = vmul.f32 0.5, %v3768_v27  ;;  %v6566_v0 = vld [vmem:[#allocation22_spill] sm:$0xff]  ;;  %v6567_v58 = vld [vmem:[#allocation23_spill] sm:$0xff]  ;;  %v6569_v63 = vld [vmem:[#allocation25_spill] sm:$0xff] }
 0x132   :  { %v6572_v27 = vld [vmem:[#allocation28_spill] sm:$0xff] }
 0x133   :  { %v621_v59 = vmul.f32 0.0, %v615_v1  ;;  %v620_v10 = vadd.f32 0.5, %v619_v11  ;;  %v6568_v1 = vld [vmem:[#allocation24_spill] sm:$0xff]  ;;  %v6573_v11 = vld [vmem:[#allocation29_spill] sm:$0xff] }
 0x135   :  { %v4628_v54 = vadd.f32 %v622_v62, %v621_v59  ;;  %v6570_v59 = vld [vmem:[#allocation26_spill] sm:$0xff]  ;;  %v6571_v62 = vld [vmem:[#allocation27_spill] sm:$0xff] }
 0x137   :  { %3769 = vtanh.f32 %v4628_v54 }
 0x144   :  { %v3770_v4 = vpop.eup %3769 }
 0x145   :  { %v4631_v2 = vmul.f32 %v3770_v4, %v620_v10  ;;  %v6574_v10 = vld [vmem:[#allocation30_spill] sm:$0xff]  ;;  %v6575_v4 = vld [vmem:[#allocation31_spill] sm:$0xff] }
 0x147   :  { %6556 = vst [vmem:[#allocation62_spill] sm:$0xff] %v4631_v2  ;;  %697 = vmatmul.mubr.f32.vlgmr.msra.gmra.mxu0 %v4631_v2  ;;  %768 = vmatmul.mubr.f32.vlgmr.msra.gmra.mxu1 %v4631_v2  ;;  %v6577_v2 = vmov 0.0  }
 0x148   :  { %804 = vmatpush1.msra.mxu0 %v4212_v12  ;;  %875 = vmatpush1.msra.mxu1 %v4214_v13 }
 0x149   :  { %805 = vmatprep.subr.mxu0 %v4218_v14  ;;  %876 = vmatprep.subr.mxu1 %v4220_v15 }
 0x14a   :  { %806 = vmatpush1.msra.mxu0 %v4226_v16  ;;  %877 = vmatpush1.msra.mxu1 %v4228_v17 }
 0x14b   :  { %807 = vmatprep.subr.mxu0 %v4237_v19  ;;  %878 = vmatprep.subr.mxu1 %v4239_v20 }
 0x14c   :  { %808 = vmatpush1.msra.mxu0 %v4243_v21  ;;  %879 = vmatpush1.msra.mxu1 %v4245_v22 }
 0x14d   :  { %809 = vmatprep.subr.mxu0 %v4249_v23  ;;  %880 = vmatprep.subr.mxu1 %v4251_v24 }
 0x14e   :  { %810 = vmatpush1.msra.mxu0 %v4257_v25  ;;  %881 = vmatpush1.msra.mxu1 %v4259_v26 }
 0x14f   :  { %811 = vmatprep.subr.mxu0 %v4268_v28  ;;  %882 = vmatprep.subr.mxu1 %v4270_v29 }
 0x150   :  { %812 = vmatpush1.msra.mxu0 %v4274_v30  ;;  %883 = vmatpush1.msra.mxu1 %v4276_v31 }
 0x151   :  { %813 = vmatprep.subr.mxu0 %v4280_v32  ;;  %884 = vmatprep.subr.mxu1 %v4282_v33 }
 0x152   :  { %814 = vmatpush1.msra.mxu0 %v4288_v34  ;;  %885 = vmatpush1.msra.mxu1 %v4290_v35 }
 0x153   :  { %815 = vmatprep.subr.mxu0 %v4299_v37  ;;  %886 = vmatprep.subr.mxu1 %v4301_v38 }
 0x154   :  { %816 = vmatpush1.msra.mxu0 %v4305_v39  ;;  %887 = vmatpush1.msra.mxu1 %v4307_v40 }
 0x155   :  { %817 = vmatprep.subr.mxu0 %v4311_v41  ;;  %888 = vmatprep.subr.mxu1 %v4313_v42 }
 0x156   :  { %818 = vmatpush1.msra.mxu0 %v4319_v43  ;;  %889 = vmatpush1.msra.mxu1 %v4321_v44 }
 0x157   :  { %819 = vmatprep.subr.mxu0 %v4330_v46  ;;  %890 = vmatprep.subr.mxu1 %v4332_v47 }
 0x158   :  { %820 = vmatpush1.msra.mxu0 %v4336_v48  ;;  %891 = vmatpush1.msra.mxu1 %v4338_v49 }
 0x159   :  { %821 = vmatprep.subr.mxu0 %v4342_v50  ;;  %892 = vmatprep.subr.mxu1 %v4344_v51 }
 0x15a   :  { %822 = vmatpush1.msra.mxu0 %v4350_v52  ;;  %893 = vmatpush1.msra.mxu1 %v4352_v53 }
 0x15b   :  { %823 = vmatprep.subr.mxu0 %v4361_v55  ;;  %894 = vmatprep.subr.mxu1 %v4363_v56 }
 0x15c   :  { %824 = vmatpush1.msra.mxu0 %v4367_v57  ;;  %895 = vmatpush1.msra.mxu1 %v6557_v61 }
 0x15d   :  { %825 = vmatprep.subr.mxu0 %v6558_v60  ;;  %896 = vmatprep.subr.mxu1 %v6559_v8 }
 0x15e   :  { %826 = vmatpush1.msra.mxu0 %v6560_v7  ;;  %897 = vmatpush1.msra.mxu1 %v6561_v18 }
 0x15f   :  { %827 = vmatprep.subr.mxu0 %v6562_v45  ;;  %898 = vmatprep.subr.mxu1 %v6563_v5 }
 0x160   :  { %828 = vmatpush1.msra.mxu0 %v6564_v9  ;;  %899 = vmatpush1.msra.mxu1 %v6565_v36 }
 0x161   :  { %829 = vmatprep.subr.mxu0 %v6566_v0  ;;  %900 = vmatprep.subr.mxu1 %v6567_v58  ;;  %v6578_v58 = vld [vmem:[#allocation33_spill] sm:$0xff]  ;;  %v6581_v0 = vld [vmem:[#allocation36_spill] sm:$0xff] }
 0x162   :  { %830 = vmatpush1.msra.mxu0 %v6568_v1  ;;  %901 = vmatpush1.msra.mxu1 %v6569_v63  ;;  %v6579_v63 = vld [vmem:[#allocation11_spill] sm:$0xff] }
 0x163   :  { %831 = vmatprep.subr.mxu0 %v6570_v59  ;;  %902 = vmatprep.subr.mxu1 %v6571_v62  ;;  %v6580_v59 = vld [vmem:[#allocation12_spill] sm:$0xff] }
 0x164   :  { %832 = vmatpush1.msra.mxu0 %v6572_v27  ;;  %903 = vmatpush1.msra.mxu1 %v6573_v11 }
 0x165   :  { %833 = vmatprep.subr.mxu0 %v6574_v10  ;;  %904 = vmatprep.subr.mxu1 %v6575_v4 }
 0x166   :  { %834 = vmatpush1.msra.mxu0 %v6576_v6  ;;  %867 = vmatprep.mubr.f32.mxu0 %v6577_v2  ;;  %v6582_v6 = vld [vmem:[#allocation35_spill] sm:$0xff] }
 0x167   :  { %905 = vmatpush1.msra.mxu1 %v6578_v58  ;;  %938 = vmatprep.mubr.f32.mxu1 %v6577_v2  ;;  %v6583_v2 = vld [vmem:[#allocation37_spill] sm:$0xff] }
 0x168   :  { %974 = vmatprep.subr.mxu0 %v6579_v63  ;;  %1045 = vmatprep.subr.mxu1 %v6580_v59 }
 0x207   :  { %v698_v62 = vpop.f32.mrf.mxu0  ;;  %v769_v11 = vpop.f32.mrf.mxu1 }
 0x208   :  { %v774_v27 = vadd.f32 %v698_v62, %v4552_v3  ;;  %v776_v36 = vadd.f32 %v769_v11, %v6582_v6  ;;  %v6608_v11 = vld [vmem:[#allocation40_spill] sm:$0xff] }
 0x209   :  { %v700_v1 = vpop.f32.mrf.mxu0  ;;  %v771_v58 = vpop.f32.mrf.mxu1 }
 0x20a   :  { %v778_v10 = vmul.f32 0.5, %v774_v27  ;;  %v775_v4 = vadd.f32 %v700_v1, %v6581_v0  ;;  %v777_v5 = vadd.f32 %v771_v58, %v6583_v2 }
 0x20c   :  { %3771 = vtanh.f32 %v778_v10  ;;  %v782_v9 = vmul.f32 0.5, %v775_v4  ;;  %v787_v63 = vmul.f32 0.5, %v777_v5  ;;  %v6609_v4 = vld [vmem:[#allocation39_spill] sm:$0xff] }
 0x20e   :  { %3773 = vtanh.f32 %v782_v9 }
 0x20f   :  { %3775 = vtanh.f32 %v776_v36 }
 0x210   :  { %3777 = vtanh.f32 %v787_v63 }
 0x219   :  { %v3772_v45 = vpop.eup %3771 }
 0x21a   :  { %v780_v59 = vmul.f32 0.5, %v3772_v45 }
 0x21b   :  { %v3774_v18 = vpop.eup %3773 }
 0x21c   :  { %v781_v7 = vadd.f32 0.5, %v780_v59  ;;  %v784_v3 = vmul.f32 0.5, %v3774_v18  ;;  %v3776_v62 = vpop.eup %3775  ;;  %v6607_v18 = vld [vmem:[#allocation38_spill] sm:$0xff] }
 0x21d   :  { %v3778_v6 = vpop.eup %3777 }
 0x21e   :  { %v785_v27 = vadd.f32 0.5, %v784_v3  ;;  %v792_v8 = vmul.f32 %v3776_v62, %v781_v7  ;;  %v789_v9 = vmul.f32 0.5, %v3778_v6 }
 0x220   :  { %v791_v0 = vmul.f32 %v785_v27, %v4628_v54  ;;  %v790_v36 = vadd.f32 0.5, %v789_v9  ;;  %v6605_v54 = vld [vmem:[#allocation11_spill] sm:$0xff] }
 0x222   :  { %v4706_v1 = vadd.f32 %v792_v8, %v791_v0  ;;  %v6606_v8 = vld [vmem:[#allocation12_spill] sm:$0xff]  ;;  %v6610_v0 = vld [vmem:[#allocation41_spill] sm:$0xff] }
 0x224   :  { %3779 = vtanh.f32 %v4706_v1 }
 0x231   :  { %v3780_v2 = vpop.eup %3779 }
 0x232   :  { %v4709_v5 = vmul.f32 %v3780_v2, %v790_v36 }
 0x234   :  { %6584 = vst [vmem:[#allocation13_spill] sm:$0xff] %v4709_v5  ;;  %868 = vmatmul.mubr.f32.vlgmr.msra.gmra.mxu0 %v4709_v5  ;;  %939 = vmatmul.mubr.f32.vlgmr.msra.gmra.mxu1 %v4709_v5 }
 0x235   :  { %975 = vmatpush1.msra.mxu0 %v4212_v12  ;;  %1046 = vmatpush1.msra.mxu1 %v4214_v13  ;;  %v6585_v12 = vld [vmem:[#allocation15_spill] sm:$0xff]  ;;  %v6586_v13 = vld [vmem:[#allocation16_spill] sm:$0xff] }
 0x236   :  { %976 = vmatprep.subr.mxu0 %v4218_v14  ;;  %1047 = vmatprep.subr.mxu1 %v4220_v15  ;;  %v6587_v14 = vld [vmem:[#allocation17_spill] sm:$0xff]  ;;  %v6588_v15 = vld [vmem:[#allocation18_spill] sm:$0xff] }
 0x237   :  { %977 = vmatpush1.msra.mxu0 %v4226_v16  ;;  %1048 = vmatpush1.msra.mxu1 %v4228_v17  ;;  %v6589_v16 = vld [vmem:[#allocation19_spill] sm:$0xff]  ;;  %v6590_v17 = vld [vmem:[#allocation20_spill] sm:$0xff] }
 0x238   :  { %978 = vmatprep.subr.mxu0 %v4237_v19  ;;  %1049 = vmatprep.subr.mxu1 %v4239_v20  ;;  %v6591_v19 = vld [vmem:[#allocation21_spill] sm:$0xff]  ;;  %v6592_v20 = vld [vmem:[#allocation22_spill] sm:$0xff] }
 0x239   :  { %979 = vmatpush1.msra.mxu0 %v4243_v21  ;;  %1050 = vmatpush1.msra.mxu1 %v4245_v22  ;;  %v6593_v21 = vld [vmem:[#allocation23_spill] sm:$0xff]  ;;  %v6594_v22 = vld [vmem:[#allocation24_spill] sm:$0xff] }
 0x23a   :  { %980 = vmatprep.subr.mxu0 %v4249_v23  ;;  %1051 = vmatprep.subr.mxu1 %v4251_v24  ;;  %v6595_v23 = vld [vmem:[#allocation25_spill] sm:$0xff]  ;;  %v6596_v24 = vld [vmem:[#allocation26_spill] sm:$0xff] }
 0x23b   :  { %981 = vmatpush1.msra.mxu0 %v4257_v25  ;;  %1052 = vmatpush1.msra.mxu1 %v4259_v26  ;;  %v6597_v25 = vld [vmem:[#allocation27_spill] sm:$0xff]  ;;  %v6598_v26 = vld [vmem:[#allocation28_spill] sm:$0xff] }
 0x23c   :  { %982 = vmatprep.subr.mxu0 %v4268_v28  ;;  %1053 = vmatprep.subr.mxu1 %v4270_v29  ;;  %v6599_v28 = vld [vmem:[#allocation29_spill] sm:$0xff]  ;;  %v6600_v29 = vld [vmem:[#allocation30_spill] sm:$0xff] }
 0x23d   :  { %983 = vmatpush1.msra.mxu0 %v4274_v30  ;;  %1054 = vmatpush1.msra.mxu1 %v4276_v31  ;;  %v6601_v30 = vld [vmem:[#allocation31_spill] sm:$0xff]  ;;  %v6602_v31 = vld [vmem:[#allocation32_spill] sm:$0xff] }
 0x23e   :  { %984 = vmatprep.subr.mxu0 %v4280_v32  ;;  %1055 = vmatprep.subr.mxu1 %v4282_v33  ;;  %v6603_v32 = vmov 0.0   ;;  %v6604_v33 = vld [vmem:[#allocation33_spill] sm:$0xff] }
 0x23f   :  { %985 = vmatpush1.msra.mxu0 %v4288_v34  ;;  %1056 = vmatpush1.msra.mxu1 %v4290_v35 }
 0x240   :  { %986 = vmatprep.subr.mxu0 %v4299_v37  ;;  %1057 = vmatprep.subr.mxu1 %v4301_v38 }
 0x241   :  { %987 = vmatpush1.msra.mxu0 %v4305_v39  ;;  %1058 = vmatpush1.msra.mxu1 %v4307_v40 }
 0x242   :  { %988 = vmatprep.subr.mxu0 %v4311_v41  ;;  %1059 = vmatprep.subr.mxu1 %v4313_v42 }
 0x243   :  { %989 = vmatpush1.msra.mxu0 %v4319_v43  ;;  %1060 = vmatpush1.msra.mxu1 %v4321_v44 }
 0x244   :  { %990 = vmatprep.subr.mxu0 %v4330_v46  ;;  %1061 = vmatprep.subr.mxu1 %v4332_v47 }
 0x245   :  { %991 = vmatpush1.msra.mxu0 %v4336_v48  ;;  %1062 = vmatpush1.msra.mxu1 %v4338_v49 }
 0x246   :  { %992 = vmatprep.subr.mxu0 %v4342_v50  ;;  %1063 = vmatprep.subr.mxu1 %v4344_v51 }
 0x247   :  { %993 = vmatpush1.msra.mxu0 %v4350_v52  ;;  %1064 = vmatpush1.msra.mxu1 %v4352_v53 }
 0x248   :  { %994 = vmatprep.subr.mxu0 %v4361_v55  ;;  %1065 = vmatprep.subr.mxu1 %v4363_v56 }
 0x249   :  { %995 = vmatpush1.msra.mxu0 %v4367_v57  ;;  %1066 = vmatpush1.msra.mxu1 %v6557_v61 }
 0x24a   :  { %996 = vmatprep.subr.mxu0 %v6558_v60  ;;  %1067 = vmatprep.subr.mxu1 %v6585_v12 }
 0x24b   :  { %997 = vmatpush1.msra.mxu0 %v6586_v13  ;;  %1068 = vmatpush1.msra.mxu1 %v6587_v14 }
 0x24c   :  { %998 = vmatprep.subr.mxu0 %v6588_v15  ;;  %1069 = vmatprep.subr.mxu1 %v6589_v16 }
 0x24d   :  { %999 = vmatpush1.msra.mxu0 %v6590_v17  ;;  %1070 = vmatpush1.msra.mxu1 %v6591_v19 }
 0x24e   :  { %1000 = vmatprep.subr.mxu0 %v6592_v20  ;;  %1071 = vmatprep.subr.mxu1 %v6593_v21 }
 0x24f   :  { %1001 = vmatpush1.msra.mxu0 %v6594_v22  ;;  %1072 = vmatpush1.msra.mxu1 %v6595_v23 }
 0x250   :  { %1002 = vmatprep.subr.mxu0 %v6596_v24  ;;  %1073 = vmatprep.subr.mxu1 %v6597_v25 }
 0x251   :  { %1003 = vmatpush1.msra.mxu0 %v6598_v26  ;;  %1074 = vmatpush1.msra.mxu1 %v6599_v28 }
 0x252   :  { %1004 = vmatprep.subr.mxu0 %v6600_v29  ;;  %1075 = vmatprep.subr.mxu1 %v6601_v30 }
 0x253   :  { %1005 = vmatpush1.msra.mxu0 %v6602_v31  ;;  %1038 = vmatprep.mubr.f32.mxu0 %v6603_v32 }
 0x254   :  { %1076 = vmatpush1.msra.mxu1 %v6604_v33  ;;  %1109 = vmatprep.mubr.f32.mxu1 %v6603_v32 }
 0x255   :  { %1145 = vmatprep.subr.mxu0 %v6605_v54  ;;  %1216 = vmatprep.subr.mxu1 %v6606_v8 }
 0x2f4   :  { %v869_v7 = vpop.f32.mrf.mxu0  ;;  %v940_v58 = vpop.f32.mrf.mxu1 }
 0x2f5   :  { %v945_v45 = vadd.f32 %v869_v7, %v6607_v18  ;;  %v947_v3 = vadd.f32 %v940_v58, %v6609_v4 }
 0x2f6   :  { %v871_v63 = vpop.f32.mrf.mxu0  ;;  %v942_v27 = vpop.f32.mrf.mxu1 }
 0x2f7   :  { %v949_v59 = vmul.f32 0.5, %v945_v45  ;;  %v946_v10 = vadd.f32 %v871_v63, %v6608_v11  ;;  %v948_v6 = vadd.f32 %v942_v27, %v6610_v0  ;;  %v4794_v27 = vld [vmem:[#allocation4 + $0x1f0] sm:$0xff]  ;;  %v4803_v0 = vld [vmem:[#allocation4 + $0x1c0] sm:$0xff] }
 0x2f9   :  { %3781 = vtanh.f32 %v949_v59  ;;  %v953_v62 = vmul.f32 0.5, %v946_v10  ;;  %v958_v9 = vmul.f32 0.5, %v948_v6  ;;  %v4806_v6 = vld [vmem:[#allocation4 + $0x1d0] sm:$0xff] }
 0x2fb   :  { %3783 = vtanh.f32 %v953_v62  ;;  %v4791_v62 = vld [vmem:[#allocation4 + $0x1e0] sm:$0xff] }
 0x2fc   :  { %3785 = vtanh.f32 %v947_v3 }
 0x2fd   :  { %3787 = vtanh.f32 %v958_v9  ;;  %v4809_v9 = vld [vmem:[#allocation4 + $0x1a8] sm:$0xff] }
 0x306   :  { %v3782_v36 = vpop.eup %3781 }
 0x307   :  { %v951_v2 = vmul.f32 0.5, %v3782_v36  ;;  %v4812_v36 = vld [vmem:[#allocation4 + $0x1b8] sm:$0xff] }
 0x308   :  { %v3784_v54 = vpop.eup %3783 }
 0x309   :  { %v952_v8 = vadd.f32 0.5, %v951_v2  ;;  %v955_v7 = vmul.f32 0.5, %v3784_v54  ;;  %v3786_v18 = vpop.eup %3785  ;;  %v4815_v2 = vld [vmem:[#allocation4 + $0x1a0] sm:$0xff]  ;;  %v4818_v54 = vld [vmem:[#allocation4 + $0x1b0] sm:$0xff] }
 0x30a   :  { %v3788_v58 = vpop.eup %3787 }
 0x30b   :  { %v956_v45 = vadd.f32 0.5, %v955_v7  ;;  %v963_v5 = vmul.f32 %v3786_v18, %v952_v8  ;;  %v960_v11 = vmul.f32 0.5, %v3788_v58  ;;  %v4821_v8 = vld [vmem:[#allocation4 + $0x188] sm:$0xff]  ;;  %v4824_v7 = vld [vmem:[#allocation4 + $0x198] sm:$0xff]  ;;  %v4827_v18 = vld [vmem:[#allocation4 + $0x180] sm:$0xff] }
 0x30c   :  { %v4836_v58 = vld [vmem:[#allocation4 + $0x178] sm:$0xff] }
 0x30d   :  { %v962_v63 = vmul.f32 %v956_v45, %v4706_v1  ;;  %v961_v10 = vadd.f32 0.5, %v960_v11  ;;  %v4797_v1 = vld [vmem:[#allocation4 + $0x1c8] sm:$0xff]  ;;  %v4830_v45 = vld [vmem:[#allocation4 + $0x190] sm:$0xff]  ;;  %v4839_v11 = vld [vmem:[#allocation4 + $0x160] sm:$0xff] }
 0x30f   :  { %v4784_v59 = vadd.f32 %v963_v5, %v962_v63  ;;  %v4800_v5 = vld [vmem:[#allocation4 + $0x1d8] sm:$0xff]  ;;  %v4833_v63 = vld [vmem:[#allocation4 + $0x168] sm:$0xff] }
 0x311   :  { %3789 = vtanh.f32 %v4784_v59 }
 0x31e   :  { %v3790_v4 = vpop.eup %3789 }
 0x31f   :  { %v4787_v3 = vmul.f32 %v3790_v4, %v961_v10  ;;  %v4842_v10 = vld [vmem:[#allocation4 + $0x170] sm:$0xff]  ;;  %v4845_v4 = vld [vmem:[#allocation4 + $0x148] sm:$0xff] }
 0x321   :  { %6611 = vst [vmem:[#allocation14_spill] sm:$0xff] %v4787_v3  ;;  %1039 = vmatmul.mubr.f32.vlgmr.msra.gmra.mxu0 %v4787_v3  ;;  %1110 = vmatmul.mubr.f32.vlgmr.msra.gmra.mxu1 %v4787_v3  ;;  %v4848_v3 = vld [vmem:[#allocation4 + $0x158] sm:$0xff] }
 0x322   :  { %1146 = vmatpush1.msra.mxu0 %v4791_v62  ;;  %1217 = vmatpush1.msra.mxu1 %v4794_v27 }
 0x323   :  { %1147 = vmatprep.subr.mxu0 %v4797_v1  ;;  %1218 = vmatprep.subr.mxu1 %v4800_v5 }
 0x324   :  { %1148 = vmatpush1.msra.mxu0 %v4803_v0  ;;  %1219 = vmatpush1.msra.mxu1 %v4806_v6 }
 0x325   :  { %1149 = vmatprep.subr.mxu0 %v4809_v9  ;;  %1220 = vmatprep.subr.mxu1 %v4812_v36 }
 0x326   :  { %1150 = vmatpush1.msra.mxu0 %v4815_v2  ;;  %1221 = vmatpush1.msra.mxu1 %v4818_v54 }
 0x327   :  { %1151 = vmatprep.subr.mxu0 %v4821_v8  ;;  %1222 = vmatprep.subr.mxu1 %v4824_v7 }
 0x328   :  { %1152 = vmatpush1.msra.mxu0 %v4827_v18  ;;  %1223 = vmatpush1.msra.mxu1 %v4830_v45 }
 0x329   :  { %1153 = vmatprep.subr.mxu0 %v4833_v63  ;;  %1224 = vmatprep.subr.mxu1 %v4836_v58 }
 0x32a   :  { %1154 = vmatpush1.msra.mxu0 %v4839_v11  ;;  %1225 = vmatpush1.msra.mxu1 %v4842_v10 }
 0x32b   :  { %1155 = vmatprep.subr.mxu0 %v4845_v4  ;;  %1226 = vmatprep.subr.mxu1 %v4848_v3 }
 0x32c   :  { %1156 = vmatpush1.msra.mxu0 %v4288_v34  ;;  %1227 = vmatpush1.msra.mxu1 %v4290_v35  ;;  %v4895_v34 = vld [vmem:[#allocation4 + $0x1e8] sm:$0xff]  ;;  %v4898_v35 = vld [vmem:[#allocation4 + $0x1f8] sm:$0xff] }
 0x32d   :  { %1157 = vmatprep.subr.mxu0 %v4299_v37  ;;  %1228 = vmatprep.subr.mxu1 %v4301_v38  ;;  %6612 = vst [vmem:[#allocation36_spill] sm:$0xff] %v4895_v34  ;;  %6613 = vst [vmem:[#allocation35_spill] sm:$0xff] %v4898_v35  ;;  %v6614_v38 = vld [vmem:[#allocation42_spill] sm:$0xff] }
 0x32e   :  { %1158 = vmatpush1.msra.mxu0 %v4305_v39  ;;  %1229 = vmatpush1.msra.mxu1 %v4307_v40 }
 0x32f   :  { %1159 = vmatprep.subr.mxu0 %v4311_v41  ;;  %1230 = vmatprep.subr.mxu1 %v4313_v42 }
 0x330   :  { %1160 = vmatpush1.msra.mxu0 %v4319_v43  ;;  %1231 = vmatpush1.msra.mxu1 %v4321_v44  ;;  %v6615_v43 = vld [vmem:[#allocation44_spill] sm:$0xff] }
 0x331   :  { %1161 = vmatprep.subr.mxu0 %v4330_v46  ;;  %1232 = vmatprep.subr.mxu1 %v4332_v47  ;;  %v6616_v46 = vld [vmem:[#allocation43_spill] sm:$0xff] }
 0x332   :  { %1162 = vmatpush1.msra.mxu0 %v4336_v48  ;;  %1233 = vmatpush1.msra.mxu1 %v4338_v49 }
 0x333   :  { %1163 = vmatprep.subr.mxu0 %v4342_v50  ;;  %1234 = vmatprep.subr.mxu1 %v4344_v51  ;;  %v6617_v50 = vld [vmem:[#allocation45_spill] sm:$0xff] }
 0x334   :  { %1164 = vmatpush1.msra.mxu0 %v4350_v52  ;;  %1235 = vmatpush1.msra.mxu1 %v4352_v53 }
 0x335   :  { %1165 = vmatprep.subr.mxu0 %v4361_v55  ;;  %1236 = vmatprep.subr.mxu1 %v4363_v56 }
 0x336   :  { %1166 = vmatpush1.msra.mxu0 %v4367_v57  ;;  %1237 = vmatpush1.msra.mxu1 %v6557_v61 }
 0x337   :  { %1167 = vmatprep.subr.mxu0 %v6558_v60  ;;  %1238 = vmatprep.subr.mxu1 %v6585_v12 }
 0x338   :  { %1168 = vmatpush1.msra.mxu0 %v6586_v13  ;;  %1239 = vmatpush1.msra.mxu1 %v6587_v14 }
 0x339   :  { %1169 = vmatprep.subr.mxu0 %v6588_v15  ;;  %1240 = vmatprep.subr.mxu1 %v6589_v16 }
 0x33a   :  { %1170 = vmatpush1.msra.mxu0 %v6590_v17  ;;  %1241 = vmatpush1.msra.mxu1 %v6591_v19 }
 0x33b   :  { %1171 = vmatprep.subr.mxu0 %v6592_v20  ;;  %1242 = vmatprep.subr.mxu1 %v6593_v21 }
 0x33c   :  { %1172 = vmatpush1.msra.mxu0 %v6594_v22  ;;  %1243 = vmatpush1.msra.mxu1 %v6595_v23  ;;  %v4933_v22 = vld [vmem:[#allocation4 + $0x140] sm:$0xff]  ;;  %v4936_v23 = vld [vmem:[#allocation4 + $0x150] sm:$0xff] }
 0x33d   :  { %1173 = vmatprep.subr.mxu0 %v6596_v24  ;;  %1244 = vmatprep.subr.mxu1 %v6597_v25  ;;  %v4939_v24 = vld [vmem:[#allocation4 + $0x128] sm:$0xff]  ;;  %v4942_v25 = vld [vmem:[#allocation4 + $0x138] sm:$0xff] }
 0x33e   :  { %1174 = vmatpush1.msra.mxu0 %v6598_v26  ;;  %1245 = vmatpush1.msra.mxu1 %v6599_v28  ;;  %v4945_v26 = vld [vmem:[#allocation4 + $0x120] sm:$0xff]  ;;  %v4948_v28 = vld [vmem:[#allocation4 + $0x130] sm:$0xff] }
 0x33f   :  { %1175 = vmatprep.subr.mxu0 %v6600_v29  ;;  %1246 = vmatprep.subr.mxu1 %v6601_v30  ;;  %v4951_v29 = vld [vmem:[#allocation4 + $0x108] sm:$0xff]  ;;  %v4954_v30 = vld [vmem:[#allocation4 + $0x118] sm:$0xff] }
 0x340   :  { %1176 = vmatpush1.msra.mxu0 %v6602_v31  ;;  %1209 = vmatprep.mubr.f32.mxu0 %v6603_v32  ;;  %v4957_v31 = vld [vmem:[#allocation4 + $0x100] sm:$0xff] }
 0x341   :  { %1247 = vmatpush1.msra.mxu1 %v6604_v33  ;;  %1280 = vmatprep.mubr.f32.mxu1 %v6603_v32  ;;  %v4960_v33 = vld [vmem:[#allocation4 + $0x110] sm:$0xff] }
 0x342   :  { %1316 = vmatprep.subr.mxu0 %v4895_v34  ;;  %1387 = vmatprep.subr.mxu1 %v4898_v35 }
 0x3e1   :  { %v1040_v37 = vpop.f32.mrf.mxu0  ;;  %v1111_v40 = vpop.f32.mrf.mxu1 }
 0x3e2   :  { %v1116_v39 = vadd.f32 %v1040_v37, %v6614_v38  ;;  %v1118_v47 = vadd.f32 %v1111_v40, %v6616_v46  ;;  %v4966_v37 = vld [vmem:[#allocation4 + $0xf8] sm:$0xff]  ;;  %v4969_v38 = vld [vmem:[#allocation4 + $0xe0] sm:$0xff]  ;;  %v4975_v40 = vld [vmem:[#allocation4 + $0xc8] sm:$0xff] }
 0x3e3   :  { %v1042_v41 = vpop.f32.mrf.mxu0  ;;  %v1113_v49 = vpop.f32.mrf.mxu1  ;;  %v4990_v46 = vld [vmem:[#allocation4 + $0xb8] sm:$0xff] }
 0x3e4   :  { %v1120_v42 = vmul.f32 0.5, %v1116_v39  ;;  %v1117_v44 = vadd.f32 %v1042_v41, %v6615_v43  ;;  %v1119_v51 = vadd.f32 %v1113_v49, %v6617_v50  ;;  %v4972_v39 = vld [vmem:[#allocation4 + $0xf0] sm:$0xff]  ;;  %v4978_v41 = vld [vmem:[#allocation4 + $0xd8] sm:$0xff]  ;;  %v4999_v49 = vld [vmem:[#allocation4 + $0x88] sm:$0xff] }
 0x3e5   :  { %v4984_v43 = vld [vmem:[#allocation4 + $0xd0] sm:$0xff]  ;;  %v5002_v50 = vld [vmem:[#allocation4 + $0x98] sm:$0xff] }
 0x3e6   :  { %3791 = vtanh.f32 %v1120_v42  ;;  %v1124_v48 = vmul.f32 0.5, %v1117_v44  ;;  %v1129_v52 = vmul.f32 0.5, %v1119_v51  ;;  %v4981_v42 = vld [vmem:[#allocation4 + $0xc0] sm:$0xff]  ;;  %v4987_v44 = vld [vmem:[#allocation4 + $0xa8] sm:$0xff]  ;;  %6619 = vst [vmem:[#allocation15_spill] sm:$0xff] %v5002_v50 }
 0x3e7   :  { %v5005_v51 = vld [vmem:[#allocation4 + $0x80] sm:$0xff] }
 0x3e8   :  { %3793 = vtanh.f32 %v1124_v48  ;;  %v4996_v48 = vld [vmem:[#allocation4 + $0xb0] sm:$0xff]  ;;  %6620 = vst [vmem:[#allocation16_spill] sm:$0xff] %v5005_v51 }
 0x3e9   :  { %3795 = vtanh.f32 %v1118_v47  ;;  %v4993_v47 = vld [vmem:[#allocation4 + $0xa0] sm:$0xff] }
 0x3ea   :  { %3797 = vtanh.f32 %v1129_v52  ;;  %v5008_v52 = vld [vmem:[#allocation4 + $0x90] sm:$0xff] }
 0x3eb   :  { %6621 = vst [vmem:[#allocation17_spill] sm:$0xff] %v5008_v52 }
 0x3f3   :  { %v3792_v53 = vpop.eup %3791 }
 0x3f4   :  { %v1122_v55 = vmul.f32 0.5, %v3792_v53  ;;  %v5011_v53 = vld [vmem:[#allocation4 + $0x68] sm:$0xff] }
 0x3f5   :  { %v3794_v56 = vpop.eup %3793  ;;  %6622 = vst [vmem:[#allocation18_spill] sm:$0xff] %v5011_v53 }
 0x3f6   :  { %v1123_v57 = vadd.f32 0.5, %v1122_v55  ;;  %v1126_v61 = vmul.f32 0.5, %v3794_v56  ;;  %v3796_v60 = vpop.eup %3795  ;;  %v5014_v55 = vld [vmem:[#allocation4 + $0x78] sm:$0xff]  ;;  %v5017_v56 = vld [vmem:[#allocation4 + $0x60] sm:$0xff] }
 0x3f7   :  { %v3798_v16 = vpop.eup %3797  ;;  %6623 = vst [vmem:[#allocation19_spill] sm:$0xff] %v5014_v55  ;;  %6624 = vst [vmem:[#allocation20_spill] sm:$0xff] %v5017_v56 }
 0x3f8   :  { %v1127_v12 = vadd.f32 0.5, %v1126_v61  ;;  %v1134_v13 = vmul.f32 %v3796_v60, %v1123_v57  ;;  %v1131_v17 = vmul.f32 0.5, %v3798_v16  ;;  %v5020_v57 = vld [vmem:[#allocation4 + $0x70] sm:$0xff]  ;;  %v5023_v61 = vld [vmem:[#allocation4 + $0x48] sm:$0xff]  ;;  %v5026_v60 = vld [vmem:[#allocation4 + $0x58] sm:$0xff] }
 0x3f9   :  { %6625 = vst [vmem:[#allocation21_spill] sm:$0xff] %v5020_v57  ;;  %6626 = vst [vmem:[#allocation22_spill] sm:$0xff] %v5023_v61  ;;  %v5038_v16 = vld [vmem:[#allocation4 + $0x38] sm:$0xff] }
 0x3fa   :  { %v1133_v14 = vmul.f32 %v1127_v12, %v4784_v59  ;;  %v1132_v19 = vadd.f32 0.5, %v1131_v17  ;;  %v4963_v59 = vld [vmem:[#allocation4 + $0xe8] sm:$0xff]  ;;  %6627 = vst [vmem:[#allocation23_spill] sm:$0xff] %v5026_v60  ;;  %v5029_v12 = vld [vmem:[#allocation4 + $0x40] sm:$0xff]  ;;  %6631 = vst [vmem:[#allocation27_spill] sm:$0xff] %v5038_v16 }
 0x3fb   :  { %6628 = vst [vmem:[#allocation24_spill] sm:$0xff] %v5029_v12  ;;  %v5041_v17 = vld [vmem:[#allocation4 + $0x20] sm:$0xff] }
 0x3fc   :  { %v4906_v15 = vadd.f32 %v1134_v13, %v1133_v14  ;;  %v5032_v13 = vld [vmem:[#allocation4 + $0x50] sm:$0xff]  ;;  %v5035_v14 = vld [vmem:[#allocation4 + $0x28] sm:$0xff]  ;;  %6632 = vst [vmem:[#allocation28_spill] sm:$0xff] %v5041_v17 }
 0x3fd   :  { %6629 = vst [vmem:[#allocation25_spill] sm:$0xff] %v5032_v13  ;;  %6630 = vst [vmem:[#allocation26_spill] sm:$0xff] %v5035_v14 }
 0x3fe   :  { %3799 = vtanh.f32 %v4906_v15 }
 0x40b   :  { %v3800_v20 = vpop.eup %3799 }
 0x40c   :  { %v4909_v21 = vmul.f32 %v3800_v20, %v1132_v19  ;;  %v5044_v19 = vld [vmem:[#allocation4 + $0x30] sm:$0xff]  ;;  %v5047_v20 = vld [vmem:[#allocation4 + $0x8] sm:$0xff] }
 0x40d   :  { %6633 = vst [vmem:[#allocation29_spill] sm:$0xff] %v5044_v19  ;;  %6634 = vst [vmem:[#allocation30_spill] sm:$0xff] %v5047_v20 }
 0x40e   :  { %6618 = vst [vmem:[#allocation37_spill] sm:$0xff] %v4909_v21  ;;  %1210 = vmatmul.mubr.f32.vlgmr.msra.gmra.mxu0 %v4909_v21  ;;  %1281 = vmatmul.mubr.f32.vlgmr.msra.gmra.mxu1 %v4909_v21  ;;  %v5050_v21 = vld [vmem:[#allocation4 + $0x18] sm:$0xff] }
 0x40f   :  { %1317 = vmatpush1.msra.mxu0 %v4791_v62  ;;  %1388 = vmatpush1.msra.mxu1 %v4794_v27  ;;  %6635 = vst [vmem:[#allocation31_spill] sm:$0xff] %v5050_v21 }
 0x410   :  { %1318 = vmatprep.subr.mxu0 %v4797_v1  ;;  %1389 = vmatprep.subr.mxu1 %v4800_v5 }
 0x411   :  { %1319 = vmatpush1.msra.mxu0 %v4803_v0  ;;  %1390 = vmatpush1.msra.mxu1 %v4806_v6 }
 0x412   :  { %1320 = vmatprep.subr.mxu0 %v4809_v9  ;;  %1391 = vmatprep.subr.mxu1 %v4812_v36 }
 0x413   :  { %1321 = vmatpush1.msra.mxu0 %v4815_v2  ;;  %1392 = vmatpush1.msra.mxu1 %v4818_v54 }
 0x414   :  { %1322 = vmatprep.subr.mxu0 %v4821_v8  ;;  %1393 = vmatprep.subr.mxu1 %v4824_v7 }
 0x415   :  { %1323 = vmatpush1.msra.mxu0 %v4827_v18  ;;  %1394 = vmatpush1.msra.mxu1 %v4830_v45 }
 0x416   :  { %1324 = vmatprep.subr.mxu0 %v4833_v63  ;;  %1395 = vmatprep.subr.mxu1 %v4836_v58 }
 0x417   :  { %1325 = vmatpush1.msra.mxu0 %v4839_v11  ;;  %1396 = vmatpush1.msra.mxu1 %v4842_v10 }
 0x418   :  { %1326 = vmatprep.subr.mxu0 %v4845_v4  ;;  %1397 = vmatprep.subr.mxu1 %v4848_v3 }
 0x419   :  { %1327 = vmatpush1.msra.mxu0 %v4933_v22  ;;  %1398 = vmatpush1.msra.mxu1 %v4936_v23 }
 0x41a   :  { %1328 = vmatprep.subr.mxu0 %v4939_v24  ;;  %1399 = vmatprep.subr.mxu1 %v4942_v25 }
 0x41b   :  { %1329 = vmatpush1.msra.mxu0 %v4945_v26  ;;  %1400 = vmatpush1.msra.mxu1 %v4948_v28 }
 0x41c   :  { %1330 = vmatprep.subr.mxu0 %v4951_v29  ;;  %1401 = vmatprep.subr.mxu1 %v4954_v30 }
 0x41d   :  { %1331 = vmatpush1.msra.mxu0 %v4957_v31  ;;  %1402 = vmatpush1.msra.mxu1 %v4960_v33 }
 0x41e   :  { %1332 = vmatprep.subr.mxu0 %v4963_v59  ;;  %1403 = vmatprep.subr.mxu1 %v4966_v37 }
 0x41f   :  { %1333 = vmatpush1.msra.mxu0 %v4969_v38  ;;  %1404 = vmatpush1.msra.mxu1 %v4972_v39 }
 0x420   :  { %1334 = vmatprep.subr.mxu0 %v4975_v40  ;;  %1405 = vmatprep.subr.mxu1 %v4978_v41 }
 0x421   :  { %1335 = vmatpush1.msra.mxu0 %v4981_v42  ;;  %1406 = vmatpush1.msra.mxu1 %v4984_v43 }
 0x422   :  { %1336 = vmatprep.subr.mxu0 %v4987_v44  ;;  %1407 = vmatprep.subr.mxu1 %v4990_v46 }
 0x423   :  { %1337 = vmatpush1.msra.mxu0 %v4993_v47  ;;  %1408 = vmatpush1.msra.mxu1 %v4996_v48 }
 0x424   :  { %1338 = vmatprep.subr.mxu0 %v4999_v49  ;;  %1409 = vmatprep.subr.mxu1 %v5002_v50 }
 0x425   :  { %1339 = vmatpush1.msra.mxu0 %v5005_v51  ;;  %1410 = vmatpush1.msra.mxu1 %v5008_v52 }
 0x426   :  { %1340 = vmatprep.subr.mxu0 %v5011_v53  ;;  %1411 = vmatprep.subr.mxu1 %v5014_v55 }
 0x427   :  { %1341 = vmatpush1.msra.mxu0 %v5017_v56  ;;  %1412 = vmatpush1.msra.mxu1 %v5020_v57 }
 0x428   :  { %1342 = vmatprep.subr.mxu0 %v5023_v61  ;;  %1413 = vmatprep.subr.mxu1 %v5026_v60  ;;  %v6639_v60 = vld [vmem:[#allocation48_spill] sm:$0xff]  ;;  %v6640_v61 = vld [vmem:[#allocation47_spill] sm:$0xff] }
 0x429   :  { %1343 = vmatpush1.msra.mxu0 %v5029_v12  ;;  %1414 = vmatpush1.msra.mxu1 %v5032_v13 }
 0x42a   :  { %1344 = vmatprep.subr.mxu0 %v5035_v14  ;;  %1415 = vmatprep.subr.mxu1 %v5038_v16  ;;  %v5053_v14 = vld [vmem:[#allocation4] sm:$0xff]  ;;  %v5057_v16 = vld [vmem:[#allocation4 + $0x10] sm:$0xff] }
 0x42b   :  { %1345 = vmatpush1.msra.mxu0 %v5041_v17  ;;  %1416 = vmatpush1.msra.mxu1 %v5044_v19  ;;  %6636 = vst [vmem:[#allocation32_spill] sm:$0xff] %v5053_v14  ;;  %6637 = vst [vmem:[#allocation33_spill] sm:$0xff] %v5057_v16  ;;  %v6638_v19 = vld [vmem:[#allocation46_spill] sm:$0xff] }
 0x42c   :  { %1346 = vmatprep.subr.mxu0 %v5047_v20  ;;  %1417 = vmatprep.subr.mxu1 %v5050_v21 }
 0x42d   :  { %1347 = vmatpush1.msra.mxu0 %v5053_v14  ;;  %1380 = vmatprep.mubr.f32.mxu0 %v6603_v32 }
 0x42e   :  { %1418 = vmatpush1.msra.mxu1 %v5057_v16  ;;  %1451 = vmatprep.mubr.f32.mxu1 %v6603_v32  ;;  %v6641_v32 = vld [vmem:[#allocation49_spill] sm:$0xff] }
 0x42f   :  { %1487 = vmatprep.subr.mxu0 %v4895_v34  ;;  %1558 = vmatprep.subr.mxu1 %v4898_v35 }
 0x4ce   :  { %v1211_v20 = vpop.f32.mrf.mxu0  ;;  %v1282_v21 = vpop.f32.mrf.mxu1 }
 0x4cf   :  { %v1287_v17 = vadd.f32 %v1211_v20, %v6638_v19  ;;  %v1289_v57 = vadd.f32 %v1282_v21, %v6640_v61  ;;  %v6650_v61 = vld [vmem:[#allocation22_spill] sm:$0xff] }
 0x4d0   :  { %v1213_v13 = vpop.f32.mrf.mxu0  ;;  %v1284_v16 = vpop.f32.mrf.mxu1 }
 0x4d1   :  { %v1291_v12 = vmul.f32 0.5, %v1287_v17  ;;  %v1288_v14 = vadd.f32 %v1213_v13, %v6639_v60  ;;  %v1290_v55 = vadd.f32 %v1284_v16, %v6641_v32  ;;  %v6651_v13 = vld [vmem:[#allocation23_spill] sm:$0xff]  ;;  %v6653_v16 = vld [vmem:[#allocation25_spill] sm:$0xff] }
 0x4d3   :  { %3801 = vtanh.f32 %v1291_v12  ;;  %v1295_v56 = vmul.f32 0.5, %v1288_v14  ;;  %v1300_v34 = vmul.f32 0.5, %v1290_v55  ;;  %v6652_v14 = vld [vmem:[#allocation24_spill] sm:$0xff] }
 0x4d5   :  { %3803 = vtanh.f32 %v1295_v56 }
 0x4d6   :  { %3805 = vtanh.f32 %v1289_v57 }
 0x4d7   :  { %3807 = vtanh.f32 %v1300_v34  ;;  %v6643_v34 = vld [vmem:[#allocation15_spill] sm:$0xff] }
 0x4e0   :  { %v3802_v53 = vpop.eup %3801 }
 0x4e1   :  { %v1293_v35 = vmul.f32 0.5, %v3802_v53  ;;  %v6649_v53 = vld [vmem:[#allocation21_spill] sm:$0xff] }
 0x4e2   :  { %v3804_v52 = vpop.eup %3803 }
 0x4e3   :  { %v1294_v51 = vadd.f32 0.5, %v1293_v35  ;;  %v1297_v19 = vmul.f32 0.5, %v3804_v52  ;;  %v3806_v20 = vpop.eup %3805  ;;  %v6644_v35 = vld [vmem:[#allocation16_spill] sm:$0xff] }
 0x4e4   :  { %v3808_v21 = vpop.eup %3807  ;;  %v6648_v52 = vld [vmem:[#allocation20_spill] sm:$0xff] }
 0x4e5   :  { %v1298_v17 = vadd.f32 0.5, %v1297_v19  ;;  %v1305_v50 = vmul.f32 %v3806_v20, %v1294_v51  ;;  %v1302_v56 = vmul.f32 0.5, %v3808_v21  ;;  %v6647_v51 = vld [vmem:[#allocation19_spill] sm:$0xff]  ;;  %v6654_v19 = vld [vmem:[#allocation26_spill] sm:$0xff] }
 0x4e6   :  { %v6655_v20 = vld [vmem:[#allocation27_spill] sm:$0xff]  ;;  %v6658_v21 = vld [vmem:[#allocation30_spill] sm:$0xff] }
 0x4e7   :  { %v1304_v60 = vmul.f32 %v1298_v17, %v4906_v15  ;;  %v1303_v57 = vadd.f32 0.5, %v1302_v56  ;;  %v6645_v15 = vld [vmem:[#allocation17_spill] sm:$0xff]  ;;  %v6656_v17 = vld [vmem:[#allocation28_spill] sm:$0xff]  ;;  %v6659_v56 = vld [vmem:[#allocation31_spill] sm:$0xff] }
 0x4e9   :  { %v5068_v12 = vadd.f32 %v1305_v50, %v1304_v60  ;;  %v6646_v50 = vld [vmem:[#allocation18_spill] sm:$0xff]  ;;  %v6657_v60 = vld [vmem:[#allocation29_spill] sm:$0xff] }
 0x4eb   :  { %3809 = vtanh.f32 %v5068_v12 }
 0x4f8   :  { %v3810_v32 = vpop.eup %3809 }
 0x4f9   :  { %v5071_v55 = vmul.f32 %v3810_v32, %v1303_v57  ;;  %v6660_v57 = vld [vmem:[#allocation32_spill] sm:$0xff]  ;;  %v6661_v32 = vmov 0.0  }
 0x4fb   :  { %6642 = vst [vmem:[#allocation11_spill] sm:$0xff] %v5071_v55  ;;  %1381 = vmatmul.mubr.f32.vlgmr.msra.gmra.mxu0 %v5071_v55  ;;  %1452 = vmatmul.mubr.f32.vlgmr.msra.gmra.mxu1 %v5071_v55  ;;  %v6662_v55 = vld [vmem:[#allocation33_spill] sm:$0xff] }
 0x4fc   :  { %1488 = vmatpush1.msra.mxu0 %v4791_v62  ;;  %1559 = vmatpush1.msra.mxu1 %v4794_v27 }
 0x4fd   :  { %1489 = vmatprep.subr.mxu0 %v4797_v1  ;;  %1560 = vmatprep.subr.mxu1 %v4800_v5 }
 0x4fe   :  { %1490 = vmatpush1.msra.mxu0 %v4803_v0  ;;  %1561 = vmatpush1.msra.mxu1 %v4806_v6 }
 0x4ff   :  { %1491 = vmatprep.subr.mxu0 %v4809_v9  ;;  %1562 = vmatprep.subr.mxu1 %v4812_v36 }
 0x500   :  { %1492 = vmatpush1.msra.mxu0 %v4815_v2  ;;  %1563 = vmatpush1.msra.mxu1 %v4818_v54 }
 0x501   :  { %1493 = vmatprep.subr.mxu0 %v4821_v8  ;;  %1564 = vmatprep.subr.mxu1 %v4824_v7 }
 0x502   :  { %1494 = vmatpush1.msra.mxu0 %v4827_v18  ;;  %1565 = vmatpush1.msra.mxu1 %v4830_v45 }
 0x503   :  { %1495 = vmatprep.subr.mxu0 %v4833_v63  ;;  %1566 = vmatprep.subr.mxu1 %v4836_v58 }
 0x504   :  { %1496 = vmatpush1.msra.mxu0 %v4839_v11  ;;  %1567 = vmatpush1.msra.mxu1 %v4842_v10 }
 0x505   :  { %1497 = vmatprep.subr.mxu0 %v4845_v4  ;;  %1568 = vmatprep.subr.mxu1 %v4848_v3 }
 0x506   :  { %1498 = vmatpush1.msra.mxu0 %v4933_v22  ;;  %1569 = vmatpush1.msra.mxu1 %v4936_v23 }
 0x507   :  { %1499 = vmatprep.subr.mxu0 %v4939_v24  ;;  %1570 = vmatprep.subr.mxu1 %v4942_v25 }
 0x508   :  { %1500 = vmatpush1.msra.mxu0 %v4945_v26  ;;  %1571 = vmatpush1.msra.mxu1 %v4948_v28 }
 0x509   :  { %1501 = vmatprep.subr.mxu0 %v4951_v29  ;;  %1572 = vmatprep.subr.mxu1 %v4954_v30 }
 0x50a   :  { %1502 = vmatpush1.msra.mxu0 %v4957_v31  ;;  %1573 = vmatpush1.msra.mxu1 %v4960_v33 }
 0x50b   :  { %1503 = vmatprep.subr.mxu0 %v4963_v59  ;;  %1574 = vmatprep.subr.mxu1 %v4966_v37 }
 0x50c   :  { %1504 = vmatpush1.msra.mxu0 %v4969_v38  ;;  %1575 = vmatpush1.msra.mxu1 %v4972_v39 }
 0x50d   :  { %1505 = vmatprep.subr.mxu0 %v4975_v40  ;;  %1576 = vmatprep.subr.mxu1 %v4978_v41 }
 0x50e   :  { %1506 = vmatpush1.msra.mxu0 %v4981_v42  ;;  %1577 = vmatpush1.msra.mxu1 %v4984_v43 }
 0x50f   :  { %1507 = vmatprep.subr.mxu0 %v4987_v44  ;;  %1578 = vmatprep.subr.mxu1 %v4990_v46 }
 0x510   :  { %1508 = vmatpush1.msra.mxu0 %v4993_v47  ;;  %1579 = vmatpush1.msra.mxu1 %v4996_v48 }
 0x511   :  { %1509 = vmatprep.subr.mxu0 %v4999_v49  ;;  %1580 = vmatprep.subr.mxu1 %v6643_v34 }
 0x512   :  { %1510 = vmatpush1.msra.mxu0 %v6644_v35  ;;  %1581 = vmatpush1.msra.mxu1 %v6645_v15 }
 0x513   :  { %1511 = vmatprep.subr.mxu0 %v6646_v50  ;;  %1582 = vmatprep.subr.mxu1 %v6647_v51 }
 0x514   :  { %1512 = vmatpush1.msra.mxu0 %v6648_v52  ;;  %1583 = vmatpush1.msra.mxu1 %v6649_v53 }
 0x515   :  { %1513 = vmatprep.subr.mxu0 %v6650_v61  ;;  %1584 = vmatprep.subr.mxu1 %v6651_v13  ;;  %v6666_v61 = vld [vmem:[#allocation52_spill] sm:$0xff] }
 0x516   :  { %1514 = vmatpush1.msra.mxu0 %v6652_v14  ;;  %1585 = vmatpush1.msra.mxu1 %v6653_v16  ;;  %v6663_v16 = vld [vmem:[#allocation36_spill] sm:$0xff] }
 0x517   :  { %1515 = vmatprep.subr.mxu0 %v6654_v19  ;;  %1586 = vmatprep.subr.mxu1 %v6655_v20  ;;  %v6664_v19 = vld [vmem:[#allocation35_spill] sm:$0xff] }
 0x518   :  { %1516 = vmatpush1.msra.mxu0 %v6656_v17  ;;  %1587 = vmatpush1.msra.mxu1 %v6657_v60  ;;  %v6665_v17 = vld [vmem:[#allocation50_spill] sm:$0xff] }
 0x519   :  { %1517 = vmatprep.subr.mxu0 %v6658_v21  ;;  %1588 = vmatprep.subr.mxu1 %v6659_v56 }
 0x51a   :  { %1518 = vmatpush1.msra.mxu0 %v6660_v57  ;;  %1551 = vmatprep.mubr.f32.mxu0 %v6661_v32  ;;  %v6667_v57 = vld [vmem:[#allocation51_spill] sm:$0xff] }
 0x51b   :  { %1589 = vmatpush1.msra.mxu1 %v6662_v55  ;;  %1622 = vmatprep.mubr.f32.mxu1 %v6661_v32  ;;  %v6668_v32 = vld [vmem:[#allocation53_spill] sm:$0xff] }
 0x51c   :  { %1658 = vmatprep.subr.mxu0 %v6663_v16  ;;  %1729 = vmatprep.subr.mxu1 %v6664_v19 }
 0x5bb   :  { %v1382_v20 = vpop.f32.mrf.mxu0  ;;  %v1453_v60 = vpop.f32.mrf.mxu1 }
 0x5bc   :  { %v1458_v14 = vadd.f32 %v1382_v20, %v6665_v17  ;;  %v1460_v53 = vadd.f32 %v1453_v60, %v6667_v57 }
 0x5bd   :  { %v1384_v13 = vpop.f32.mrf.mxu0  ;;  %v1455_v55 = vpop.f32.mrf.mxu1 }
 0x5be   :  { %v1462_v21 = vmul.f32 0.5, %v1458_v14  ;;  %v1459_v56 = vadd.f32 %v1384_v13, %v6666_v61  ;;  %v1461_v51 = vadd.f32 %v1455_v55, %v6668_v32 }
 0x5c0   :  { %3811 = vtanh.f32 %v1462_v21  ;;  %v1466_v52 = vmul.f32 0.5, %v1459_v56  ;;  %v1471_v16 = vmul.f32 0.5, %v1461_v51 }
 0x5c2   :  { %3813 = vtanh.f32 %v1466_v52 }
 0x5c3   :  { %3815 = vtanh.f32 %v1460_v53 }
 0x5c4   :  { %3817 = vtanh.f32 %v1471_v16  ;;  %v1892_v16 = vld [vmem:[#allocation6 + $0x1e0] sm:$0xff] }
 0x5cd   :  { %v3812_v50 = vpop.eup %3811 }
 0x5ce   :  { %v1464_v19 = vmul.f32 0.5, %v3812_v50 }
 0x5cf   :  { %v3814_v15 = vpop.eup %3813 }
 0x5d0   :  { %v1465_v35 = vadd.f32 0.5, %v1464_v19  ;;  %v1468_v20 = vmul.f32 0.5, %v3814_v15  ;;  %v3816_v17 = vpop.eup %3815  ;;  %v1894_v19 = vld [vmem:[#allocation6 + $0x1f0] sm:$0xff] }
 0x5d1   :  { %v3818_v52 = vpop.eup %3817 }
 0x5d2   :  { %v1469_v14 = vadd.f32 0.5, %v1468_v20  ;;  %v1476_v34 = vmul.f32 %v3816_v17, %v1465_v35  ;;  %v1473_v53 = vmul.f32 0.5, %v3818_v52  ;;  %v1889_v20 = vld [vmem:[#allocation6 + $0x1c8] sm:$0xff]  ;;  %v1891_v17 = vld [vmem:[#allocation6 + $0x1d8] sm:$0xff] }
 0x5d3   :  { %v1887_v52 = vld [vmem:[#allocation6 + $0x1b8] sm:$0xff] }
 0x5d4   :  { %v1475_v61 = vmul.f32 %v1469_v14, %v5068_v12  ;;  %v1474_v60 = vadd.f32 0.5, %v1473_v53  ;;  %v1888_v14 = vld [vmem:[#allocation6 + $0x1c0] sm:$0xff] }
 0x5d5   :  { %v1884_v53 = vld [vmem:[#allocation6 + $0x1a0] sm:$0xff] }
 0x5d6   :  { %v5146_v13 = vadd.f32 %v1476_v34, %v1475_v61  ;;  %v1890_v61 = vld [vmem:[#allocation6 + $0x1d0] sm:$0xff] }
 0x5d8   :  { %3819 = vtanh.f32 %v5146_v13 }
 0x5e5   :  { %v3820_v55 = vpop.eup %3819 }
 0x5e6   :  { %v5149_v51 = vmul.f32 %v3820_v55, %v1474_v60  ;;  %v1886_v60 = vld [vmem:[#allocation6 + $0x1b0] sm:$0xff]  ;;  %v1881_v55 = vld [vmem:[#allocation6 + $0x188] sm:$0xff] }
 0x5e8   :  { %1552 = vmatmul.mubr.f32.vlgmr.msra.gmra.mxu0 %v5149_v51  ;;  %1623 = vmatmul.mubr.f32.vlgmr.msra.gmra.mxu1 %v5149_v51 }
 0x5e9   :  { %1659 = vmatpush1.msra.mxu0 %v4791_v62  ;;  %1730 = vmatpush1.msra.mxu1 %v4794_v27  ;;  %v6670_v62 = vld [vmem:[#allocation16_spill] sm:$0xff]  ;;  %v6671_v27 = vld [vmem:[#allocation17_spill] sm:$0xff] }
 0x5ea   :  { %1660 = vmatprep.subr.mxu0 %v4797_v1  ;;  %1731 = vmatprep.subr.mxu1 %v4800_v5  ;;  %v6672_v1 = vld [vmem:[#allocation18_spill] sm:$0xff]  ;;  %v6673_v5 = vld [vmem:[#allocation19_spill] sm:$0xff] }
 0x5eb   :  { %1661 = vmatpush1.msra.mxu0 %v4803_v0  ;;  %1732 = vmatpush1.msra.mxu1 %v4806_v6  ;;  %v6674_v0 = vld [vmem:[#allocation20_spill] sm:$0xff]  ;;  %v6675_v6 = vld [vmem:[#allocation21_spill] sm:$0xff] }
 0x5ec   :  { %1662 = vmatprep.subr.mxu0 %v4809_v9  ;;  %1733 = vmatprep.subr.mxu1 %v4812_v36  ;;  %v6676_v9 = vld [vmem:[#allocation22_spill] sm:$0xff]  ;;  %v6677_v36 = vld [vmem:[#allocation23_spill] sm:$0xff] }
 0x5ed   :  { %1663 = vmatpush1.msra.mxu0 %v4815_v2  ;;  %1734 = vmatpush1.msra.mxu1 %v4818_v54  ;;  %v6678_v2 = vld [vmem:[#allocation24_spill] sm:$0xff]  ;;  %v6679_v54 = vld [vmem:[#allocation25_spill] sm:$0xff] }
 0x5ee   :  { %1664 = vmatprep.subr.mxu0 %v4821_v8  ;;  %1735 = vmatprep.subr.mxu1 %v4824_v7  ;;  %v6680_v8 = vld [vmem:[#allocation26_spill] sm:$0xff]  ;;  %v6681_v7 = vld [vmem:[#allocation27_spill] sm:$0xff] }
 0x5ef   :  { %1665 = vmatpush1.msra.mxu0 %v4827_v18  ;;  %1736 = vmatpush1.msra.mxu1 %v4830_v45  ;;  %v6682_v18 = vld [vmem:[#allocation28_spill] sm:$0xff]  ;;  %v6683_v45 = vld [vmem:[#allocation29_spill] sm:$0xff] }
 0x5f0   :  { %1666 = vmatprep.subr.mxu0 %v4833_v63  ;;  %1737 = vmatprep.subr.mxu1 %v4836_v58  ;;  %v6684_v63 = vld [vmem:[#allocation30_spill] sm:$0xff]  ;;  %v6685_v58 = vld [vmem:[#allocation31_spill] sm:$0xff] }
 0x5f1   :  { %1667 = vmatpush1.msra.mxu0 %v4839_v11  ;;  %1738 = vmatpush1.msra.mxu1 %v4842_v10  ;;  %v6686_v11 = vld [vmem:[#allocation32_spill] sm:$0xff]  ;;  %v6687_v10 = vld [vmem:[#allocation33_spill] sm:$0xff] }
 0x5f2   :  { %1668 = vmatprep.subr.mxu0 %v4845_v4  ;;  %1739 = vmatprep.subr.mxu1 %v4848_v3  ;;  %v6669_v3 = vld [vmem:[#allocation15_spill] sm:$0xff]  ;;  %v6688_v4 = vmov 0.0  }
 0x5f3   :  { %1669 = vmatpush1.msra.mxu0 %v4933_v22  ;;  %1740 = vmatpush1.msra.mxu1 %v4936_v23  ;;  %v1893_v22 = vld [vmem:[#allocation6 + $0x1e8] sm:$0xff]  ;;  %v1895_v23 = vld [vmem:[#allocation6 + $0x1f8] sm:$0xff] }
 0x5f4   :  { %1670 = vmatprep.subr.mxu0 %v4939_v24  ;;  %1741 = vmatprep.subr.mxu1 %v4942_v25  ;;  %v6689_v25 = vld [vmem:[#allocation54_spill] sm:$0xff] }
 0x5f5   :  { %1671 = vmatpush1.msra.mxu0 %v4945_v26  ;;  %1742 = vmatpush1.msra.mxu1 %v4948_v28 }
 0x5f6   :  { %1672 = vmatprep.subr.mxu0 %v4951_v29  ;;  %1743 = vmatprep.subr.mxu1 %v4954_v30 }
 0x5f7   :  { %1673 = vmatpush1.msra.mxu0 %v4957_v31  ;;  %1744 = vmatpush1.msra.mxu1 %v4960_v33  ;;  %v6690_v31 = vld [vmem:[#allocation56_spill] sm:$0xff] }
 0x5f8   :  { %1674 = vmatprep.subr.mxu0 %v4963_v59  ;;  %1745 = vmatprep.subr.mxu1 %v4966_v37  ;;  %v6691_v59 = vld [vmem:[#allocation55_spill] sm:$0xff] }
 0x5f9   :  { %1675 = vmatpush1.msra.mxu0 %v4969_v38  ;;  %1746 = vmatpush1.msra.mxu1 %v4972_v39 }
 0x5fa   :  { %1676 = vmatprep.subr.mxu0 %v4975_v40  ;;  %1747 = vmatprep.subr.mxu1 %v4978_v41  ;;  %v6692_v40 = vld [vmem:[#allocation57_spill] sm:$0xff] }
 0x5fb   :  { %1677 = vmatpush1.msra.mxu0 %v4981_v42  ;;  %1748 = vmatpush1.msra.mxu1 %v4984_v43 }
 0x5fc   :  { %1678 = vmatprep.subr.mxu0 %v4987_v44  ;;  %1749 = vmatprep.subr.mxu1 %v4990_v46 }
 0x5fd   :  { %1679 = vmatpush1.msra.mxu0 %v4993_v47  ;;  %1750 = vmatpush1.msra.mxu1 %v4996_v48 }
 0x5fe   :  { %1680 = vmatprep.subr.mxu0 %v4999_v49  ;;  %1751 = vmatprep.subr.mxu1 %v6669_v3  ;;  %v1883_v3 = vld [vmem:[#allocation6 + $0x198] sm:$0xff] }
 0x5ff   :  { %1681 = vmatpush1.msra.mxu0 %v6670_v62  ;;  %1752 = vmatpush1.msra.mxu1 %v6671_v27  ;;  %v1880_v62 = vld [vmem:[#allocation6 + $0x180] sm:$0xff]  ;;  %v1882_v27 = vld [vmem:[#allocation6 + $0x190] sm:$0xff] }
 0x600   :  { %1682 = vmatprep.subr.mxu0 %v6672_v1  ;;  %1753 = vmatprep.subr.mxu1 %v6673_v5  ;;  %v1877_v1 = vld [vmem:[#allocation6 + $0x168] sm:$0xff]  ;;  %v1879_v5 = vld [vmem:[#allocation6 + $0x178] sm:$0xff] }
 0x601   :  { %1683 = vmatpush1.msra.mxu0 %v6674_v0  ;;  %1754 = vmatpush1.msra.mxu1 %v6675_v6  ;;  %v1876_v0 = vld [vmem:[#allocation6 + $0x160] sm:$0xff]  ;;  %v1878_v6 = vld [vmem:[#allocation6 + $0x170] sm:$0xff] }
 0x602   :  { %1684 = vmatprep.subr.mxu0 %v6676_v9  ;;  %1755 = vmatprep.subr.mxu1 %v6677_v36  ;;  %v1873_v9 = vld [vmem:[#allocation6 + $0x148] sm:$0xff]  ;;  %v1875_v36 = vld [vmem:[#allocation6 + $0x158] sm:$0xff] }
 0x603   :  { %1685 = vmatpush1.msra.mxu0 %v6678_v2  ;;  %1756 = vmatpush1.msra.mxu1 %v6679_v54  ;;  %v1872_v2 = vld [vmem:[#allocation6 + $0x140] sm:$0xff]  ;;  %v1874_v54 = vld [vmem:[#allocation6 + $0x150] sm:$0xff] }
 0x604   :  { %1686 = vmatprep.subr.mxu0 %v6680_v8  ;;  %1757 = vmatprep.subr.mxu1 %v6681_v7  ;;  %v1869_v8 = vld [vmem:[#allocation6 + $0x128] sm:$0xff]  ;;  %v1871_v7 = vld [vmem:[#allocation6 + $0x138] sm:$0xff] }
 0x605   :  { %1687 = vmatpush1.msra.mxu0 %v6682_v18  ;;  %1758 = vmatpush1.msra.mxu1 %v6683_v45  ;;  %v1868_v18 = vld [vmem:[#allocation6 + $0x120] sm:$0xff]  ;;  %v1870_v45 = vld [vmem:[#allocation6 + $0x130] sm:$0xff] }
 0x606   :  { %1688 = vmatprep.subr.mxu0 %v6684_v63  ;;  %1759 = vmatprep.subr.mxu1 %v6685_v58  ;;  %v1865_v63 = vld [vmem:[#allocation6 + $0x108] sm:$0xff]  ;;  %v1867_v58 = vld [vmem:[#allocation6 + $0x118] sm:$0xff] }
 0x607   :  { %1689 = vmatpush1.msra.mxu0 %v6686_v11  ;;  %1760 = vmatpush1.msra.mxu1 %v6687_v10  ;;  %v1864_v11 = vld [vmem:[#allocation6 + $0x100] sm:$0xff]  ;;  %v1866_v10 = vld [vmem:[#allocation6 + $0x110] sm:$0xff] }
 0x608   :  { %1722 = vmatprep.mubr.f32.mxu0 %v6688_v4  ;;  %1793 = vmatprep.mubr.f32.mxu1 %v6688_v4 }
 0x609   :  { %1918 = vmatprep.subr.mxu0 %v1893_v22  ;;  %2031 = vmatprep.subr.mxu1 %v1895_v23  ;;  %v1861_v22 = vld [vmem:[#allocation6 + $0xe8] sm:$0xff]  ;;  %v1863_v23 = vld [vmem:[#allocation6 + $0xf8] sm:$0xff] }
 0x6a8   :  { %v1553_v24 = vpop.f32.mrf.mxu0  ;;  %v1624_v28 = vpop.f32.mrf.mxu1 }
 0x6a9   :  { %v1629_v26 = vadd.f32 %v1553_v24, %v6689_v25  ;;  %v1631_v37 = vadd.f32 %v1624_v28, %v6691_v59  ;;  %v1860_v24 = vld [vmem:[#allocation6 + $0xe0] sm:$0xff]  ;;  %v1862_v25 = vld [vmem:[#allocation6 + $0xf0] sm:$0xff]  ;;  %v1859_v28 = vld [vmem:[#allocation6 + $0xd8] sm:$0xff] }
 0x6aa   :  { %v1555_v29 = vpop.f32.mrf.mxu0  ;;  %v1626_v39 = vpop.f32.mrf.mxu1  ;;  %v1852_v59 = vld [vmem:[#allocation6 + $0xa0] sm:$0xff] }
 0x6ab   :  { %v1633_v30 = vmul.f32 0.5, %v1629_v26  ;;  %v1630_v33 = vadd.f32 %v1555_v29, %v6690_v31  ;;  %v1632_v41 = vadd.f32 %v1626_v39, %v6692_v40  ;;  %v1857_v26 = vld [vmem:[#allocation6 + $0xc8] sm:$0xff]  ;;  %v1856_v29 = vld [vmem:[#allocation6 + $0xc0] sm:$0xff]  ;;  %v1851_v39 = vld [vmem:[#allocation6 + $0x98] sm:$0xff] }
 0x6ac   :  { %v1853_v31 = vld [vmem:[#allocation6 + $0xa8] sm:$0xff]  ;;  %v1848_v40 = vld [vmem:[#allocation6 + $0x80] sm:$0xff] }
 0x6ad   :  { %3821 = vtanh.f32 %v1633_v30  ;;  %v1637_v38 = vmul.f32 0.5, %v1630_v33  ;;  %v1642_v42 = vmul.f32 0.5, %v1632_v41  ;;  %v1858_v30 = vld [vmem:[#allocation6 + $0xd0] sm:$0xff]  ;;  %v1855_v33 = vld [vmem:[#allocation6 + $0xb8] sm:$0xff] }
 0x6ae   :  { %v1850_v41 = vld [vmem:[#allocation6 + $0x90] sm:$0xff] }
 0x6af   :  { %3823 = vtanh.f32 %v1637_v38  ;;  %v1849_v38 = vld [vmem:[#allocation6 + $0x88] sm:$0xff] }
 0x6b0   :  { %3825 = vtanh.f32 %v1631_v37  ;;  %v1854_v37 = vld [vmem:[#allocation6 + $0xb0] sm:$0xff] }
 0x6b1   :  { %3827 = vtanh.f32 %v1642_v42  ;;  %v1845_v42 = vld [vmem:[#allocation6 + $0x68] sm:$0xff] }
 0x6ba   :  { %v3822_v43 = vpop.eup %3821 }
 0x6bb   :  { %v1635_v44 = vmul.f32 0.5, %v3822_v43  ;;  %v1847_v43 = vld [vmem:[#allocation6 + $0x78] sm:$0xff] }
 0x6bc   :  { %v3824_v46 = vpop.eup %3823 }
 0x6bd   :  { %v1636_v47 = vadd.f32 0.5, %v1635_v44  ;;  %v1639_v48 = vmul.f32 0.5, %v3824_v46  ;;  %v3826_v49 = vpop.eup %3825  ;;  %v1844_v44 = vld [vmem:[#allocation6 + $0x60] sm:$0xff]  ;;  %v1846_v46 = vld [vmem:[#allocation6 + $0x70] sm:$0xff] }
 0x6be   :  { %v3828_v50 = vpop.eup %3827 }
 0x6bf   :  { %v1640_v12 = vadd.f32 0.5, %v1639_v48  ;;  %v1647_v34 = vmul.f32 %v3826_v49, %v1636_v47  ;;  %v1644_v21 = vmul.f32 0.5, %v3828_v50  ;;  %v1841_v47 = vld [vmem:[#allocation6 + $0x48] sm:$0xff]  ;;  %v1843_v48 = vld [vmem:[#allocation6 + $0x58] sm:$0xff]  ;;  %v1840_v49 = vld [vmem:[#allocation6 + $0x40] sm:$0xff] }
 0x6c0   :  { %v1836_v50 = vld [vmem:[#allocation6 + $0x20] sm:$0xff] }
 0x6c1   :  { %v1646_v35 = vmul.f32 %v1640_v12, %v5146_v13  ;;  %v1645_v56 = vadd.f32 0.5, %v1644_v21  ;;  %v1885_v13 = vld [vmem:[#allocation6 + $0x1a8] sm:$0xff]  ;;  %v1842_v12 = vld [vmem:[#allocation6 + $0x50] sm:$0xff] }
 0x6c2   :  { %v1838_v21 = vld [vmem:[#allocation6 + $0x30] sm:$0xff] }
 0x6c3   :  { %v5222_v15 = vadd.f32 %v1647_v34, %v1646_v35  ;;  %v1837_v34 = vld [vmem:[#allocation6 + $0x28] sm:$0xff]  ;;  %v1839_v35 = vld [vmem:[#allocation6 + $0x38] sm:$0xff] }
 0x6c5   :  { %3829 = vtanh.f32 %v5222_v15 }
 0x6d2   :  { %v3830_v57 = vpop.eup %3829 }
 0x6d3   :  { %v5225_v32 = vmul.f32 %v3830_v57, %v1645_v56  ;;  %v1833_v56 = vld [vmem:[#allocation6 + $0x8] sm:$0xff]  ;;  %v1835_v57 = vld [vmem:[#allocation6 + $0x18] sm:$0xff] }
 0x6d5   :  { %1723 = vmatmul.mubr.f32.vlgmr.msra.gmra.mxu0 %v5225_v32  ;;  %1794 = vmatmul.mubr.f32.vlgmr.msra.gmra.mxu1 %v5225_v32 }
 0x6d6   :  { %1919 = vmatpush1.msra.mxu0 %v1892_v16  ;;  %2032 = vmatpush1.msra.mxu1 %v1894_v19  ;;  %v1832_v16 = vld [vmem:[#allocation6] sm:$0xff]  ;;  %v1834_v19 = vld [vmem:[#allocation6 + $0x10] sm:$0xff] }
 0x6d7   :  { %1920 = vmatprep.subr.mxu0 %v1889_v20  ;;  %2033 = vmatprep.subr.mxu1 %v1891_v17  ;;  %v6693_v20 = vld [vmem:[#allocation62_spill] sm:$0xff]  ;;  %v6694_v17 = vld [vmem:[#allocation13_spill] sm:$0xff] }
 0x6d8   :  { %1921 = vmatpush1.msra.mxu0 %v1888_v14  ;;  %2034 = vmatpush1.msra.mxu1 %v1890_v61  ;;  %v6695_v14 = vld [vmem:[#allocation14_spill] sm:$0xff]  ;;  %v6696_v61 = vld [vmem:[#allocation37_spill] sm:$0xff] }
 0x6d9   :  { %1922 = vmatprep.subr.mxu0 %v1885_v13  ;;  %2035 = vmatprep.subr.mxu1 %v1887_v52  ;;  %v6697_v13 = vld [vmem:[#allocation11_spill] sm:$0xff]  ;;  %v5259_v52 = vld [vmem:[#allocation8 + $0x1e8] sm:$0xff] }
 0x6da   :  { %1923 = vmatpush1.msra.mxu0 %v1884_v53  ;;  %2036 = vmatpush1.msra.mxu1 %v1886_v60  ;;  %6698 = vst [vmem:[#allocation12_spill] sm:$0xff] %v5259_v52  ;;  %v5261_v53 = vld [vmem:[#allocation8 + $0x1f8] sm:$0xff]  ;;  %v5267_v60 = vld [vmem:[#allocation8 + $0x1f0] sm:$0xff] }
 0x6db   :  { %1924 = vmatprep.subr.mxu0 %v1881_v55  ;;  %2037 = vmatprep.subr.mxu1 %v1883_v3  ;;  %6699 = vst [vmem:[#allocation38_spill] sm:$0xff] %v5261_v53  ;;  %v5273_v55 = vld [vmem:[#allocation8 + $0x1d8] sm:$0xff]  ;;  %v5277_v3 = vld [vmem:[#allocation8 + $0x1c0] sm:$0xff] }
 0x6dc   :  { %1925 = vmatpush1.msra.mxu0 %v1880_v62  ;;  %2038 = vmatpush1.msra.mxu1 %v1882_v27  ;;  %v5279_v62 = vld [vmem:[#allocation8 + $0x1d0] sm:$0xff]  ;;  %v5283_v27 = vld [vmem:[#allocation8 + $0x1a8] sm:$0xff] }
 0x6dd   :  { %1926 = vmatprep.subr.mxu0 %v1877_v1  ;;  %2039 = vmatprep.subr.mxu1 %v1879_v5  ;;  %v5285_v1 = vld [vmem:[#allocation8 + $0x1b8] sm:$0xff]  ;;  %v5289_v5 = vld [vmem:[#allocation8 + $0x1a0] sm:$0xff] }
 0x6de   :  { %1927 = vmatpush1.msra.mxu0 %v1876_v0  ;;  %2040 = vmatpush1.msra.mxu1 %v1878_v6  ;;  %v5291_v0 = vld [vmem:[#allocation8 + $0x1b0] sm:$0xff]  ;;  %v5295_v6 = vld [vmem:[#allocation8 + $0x188] sm:$0xff] }
 0x6df   :  { %1928 = vmatprep.subr.mxu0 %v1873_v9  ;;  %2041 = vmatprep.subr.mxu1 %v1875_v36  ;;  %v5297_v9 = vld [vmem:[#allocation8 + $0x198] sm:$0xff]  ;;  %v5301_v36 = vld [vmem:[#allocation8 + $0x180] sm:$0xff] }
 0x6e0   :  { %1929 = vmatpush1.msra.mxu0 %v1872_v2  ;;  %2042 = vmatpush1.msra.mxu1 %v1874_v54  ;;  %v5303_v2 = vld [vmem:[#allocation8 + $0x190] sm:$0xff]  ;;  %v5307_v54 = vld [vmem:[#allocation8 + $0x168] sm:$0xff] }
 0x6e1   :  { %1930 = vmatprep.subr.mxu0 %v1869_v8  ;;  %2043 = vmatprep.subr.mxu1 %v1871_v7  ;;  %v5309_v8 = vld [vmem:[#allocation8 + $0x178] sm:$0xff]  ;;  %v5313_v7 = vld [vmem:[#allocation8 + $0x160] sm:$0xff] }
 0x6e2   :  { %1931 = vmatpush1.msra.mxu0 %v1868_v18  ;;  %2044 = vmatpush1.msra.mxu1 %v1870_v45  ;;  %v5315_v18 = vld [vmem:[#allocation8 + $0x170] sm:$0xff]  ;;  %v5319_v45 = vld [vmem:[#allocation8 + $0x148] sm:$0xff] }
 0x6e3   :  { %1932 = vmatprep.subr.mxu0 %v1865_v63  ;;  %2045 = vmatprep.subr.mxu1 %v1867_v58  ;;  %v5321_v63 = vld [vmem:[#allocation8 + $0x158] sm:$0xff]  ;;  %v5325_v58 = vld [vmem:[#allocation8 + $0x140] sm:$0xff] }
 0x6e4   :  { %1933 = vmatpush1.msra.mxu0 %v1864_v11  ;;  %2046 = vmatpush1.msra.mxu1 %v1866_v10  ;;  %v5327_v11 = vld [vmem:[#allocation8 + $0x150] sm:$0xff]  ;;  %v5329_v10 = vld [vmem:[#allocation8 + $0x128] sm:$0xff] }
 0x6e5   :  { %1934 = vmatprep.subr.mxu0 %v1861_v22  ;;  %2047 = vmatprep.subr.mxu1 %v1863_v23  ;;  %v5333_v22 = vld [vmem:[#allocation8 + $0x138] sm:$0xff]  ;;  %v5335_v23 = vld [vmem:[#allocation8 + $0x120] sm:$0xff] }
 0x6e6   :  { %1935 = vmatpush1.msra.mxu0 %v1860_v24  ;;  %2048 = vmatpush1.msra.mxu1 %v1862_v25  ;;  %v5337_v24 = vld [vmem:[#allocation8 + $0x130] sm:$0xff]  ;;  %v5343_v25 = vld [vmem:[#allocation8 + $0x108] sm:$0xff] }
 0x6e7   :  { %1936 = vmatprep.subr.mxu0 %v1857_v26  ;;  %2049 = vmatprep.subr.mxu1 %v1859_v28  ;;  %v5345_v26 = vld [vmem:[#allocation8 + $0x118] sm:$0xff]  ;;  %v5349_v28 = vld [vmem:[#allocation8 + $0x100] sm:$0xff] }
 0x6e8   :  { %1937 = vmatpush1.msra.mxu0 %v1856_v29  ;;  %2050 = vmatpush1.msra.mxu1 %v1858_v30  ;;  %v5351_v29 = vld [vmem:[#allocation8 + $0x110] sm:$0xff]  ;;  %v5355_v30 = vld [vmem:[#allocation8 + $0xe8] sm:$0xff] }
 0x6e9   :  { %1938 = vmatprep.subr.mxu0 %v1853_v31  ;;  %2051 = vmatprep.subr.mxu1 %v1855_v33  ;;  %v5357_v31 = vld [vmem:[#allocation8 + $0xf8] sm:$0xff]  ;;  %v5361_v33 = vld [vmem:[#allocation8 + $0xe0] sm:$0xff] }
 0x6ea   :  { %1939 = vmatpush1.msra.mxu0 %v1852_v59  ;;  %2052 = vmatpush1.msra.mxu1 %v1854_v37  ;;  %v5363_v59 = vld [vmem:[#allocation8 + $0xf0] sm:$0xff]  ;;  %v5367_v37 = vld [vmem:[#allocation8 + $0xc8] sm:$0xff] }
 0x6eb   :  { %1940 = vmatprep.subr.mxu0 %v1849_v38  ;;  %2053 = vmatprep.subr.mxu1 %v1851_v39  ;;  %v5369_v38 = vld [vmem:[#allocation8 + $0xd8] sm:$0xff]  ;;  %v5373_v39 = vld [vmem:[#allocation8 + $0xc0] sm:$0xff] }
 0x6ec   :  { %1941 = vmatpush1.msra.mxu0 %v1848_v40  ;;  %2054 = vmatpush1.msra.mxu1 %v1850_v41  ;;  %v5375_v40 = vld [vmem:[#allocation8 + $0xd0] sm:$0xff]  ;;  %v5379_v41 = vld [vmem:[#allocation8 + $0xa8] sm:$0xff] }
 0x6ed   :  { %1942 = vmatprep.subr.mxu0 %v1845_v42  ;;  %2055 = vmatprep.subr.mxu1 %v1847_v43  ;;  %v5381_v42 = vld [vmem:[#allocation8 + $0xb8] sm:$0xff]  ;;  %v5385_v43 = vld [vmem:[#allocation8 + $0xa0] sm:$0xff] }
 0x6ee   :  { %1943 = vmatpush1.msra.mxu0 %v1844_v44  ;;  %2056 = vmatpush1.msra.mxu1 %v1846_v46  ;;  %v5387_v44 = vld [vmem:[#allocation8 + $0xb0] sm:$0xff]  ;;  %v5391_v46 = vld [vmem:[#allocation8 + $0x88] sm:$0xff] }
 0x6ef   :  { %1944 = vmatprep.subr.mxu0 %v1841_v47  ;;  %2057 = vmatprep.subr.mxu1 %v1843_v48  ;;  %6700 = vst [vmem:[#allocation40_spill] sm:$0xff] %v5387_v44  ;;  %6701 = vst [vmem:[#allocation39_spill] sm:$0xff] %v5391_v46  ;;  %v5393_v47 = vld [vmem:[#allocation8 + $0x98] sm:$0xff]  ;;  %v5397_v48 = vld [vmem:[#allocation8 + $0x80] sm:$0xff] }
 0x6f0   :  { %1945 = vmatpush1.msra.mxu0 %v1840_v49  ;;  %2058 = vmatpush1.msra.mxu1 %v1842_v12  ;;  %6702 = vst [vmem:[#allocation41_spill] sm:$0xff] %v5393_v47  ;;  %6703 = vst [vmem:[#allocation42_spill] sm:$0xff] %v5397_v48  ;;  %v5399_v49 = vld [vmem:[#allocation8 + $0x90] sm:$0xff]  ;;  %v5403_v12 = vld [vmem:[#allocation8 + $0x68] sm:$0xff] }
 0x6f1   :  { %1946 = vmatprep.subr.mxu0 %v1837_v34  ;;  %2059 = vmatprep.subr.mxu1 %v1839_v35  ;;  %6704 = vst [vmem:[#allocation44_spill] sm:$0xff] %v5399_v49  ;;  %6705 = vst [vmem:[#allocation43_spill] sm:$0xff] %v5403_v12  ;;  %v5405_v34 = vld [vmem:[#allocation8 + $0x78] sm:$0xff]  ;;  %v5409_v35 = vld [vmem:[#allocation8 + $0x60] sm:$0xff] }
 0x6f2   :  { %1947 = vmatpush1.msra.mxu0 %v1836_v50  ;;  %2060 = vmatpush1.msra.mxu1 %v1838_v21  ;;  %6706 = vst [vmem:[#allocation45_spill] sm:$0xff] %v5405_v34  ;;  %6707 = vst [vmem:[#allocation46_spill] sm:$0xff] %v5409_v35  ;;  %v5411_v50 = vld [vmem:[#allocation8 + $0x70] sm:$0xff]  ;;  %v5415_v21 = vld [vmem:[#allocation8 + $0x48] sm:$0xff] }
 0x6f3   :  { %1948 = vmatprep.subr.mxu0 %v1833_v56  ;;  %2061 = vmatprep.subr.mxu1 %v1835_v57  ;;  %6708 = vst [vmem:[#allocation48_spill] sm:$0xff] %v5411_v50  ;;  %6709 = vst [vmem:[#allocation47_spill] sm:$0xff] %v5415_v21  ;;  %v5417_v56 = vld [vmem:[#allocation8 + $0x58] sm:$0xff]  ;;  %v5421_v57 = vld [vmem:[#allocation8 + $0x40] sm:$0xff] }
 0x6f4   :  { %1949 = vmatpush1.msra.mxu0 %v1832_v16  ;;  %1982 = vmatprep.mubr.f32.mxu0 %v6688_v4  ;;  %6710 = vst [vmem:[#allocation49_spill] sm:$0xff] %v5417_v56  ;;  %6711 = vst [vmem:[#allocation36_spill] sm:$0xff] %v5421_v57  ;;  %v5423_v16 = vld [vmem:[#allocation8 + $0x50] sm:$0xff] }
 0x6f5   :  { %2062 = vmatpush1.msra.mxu1 %v1834_v19  ;;  %2095 = vmatprep.mubr.f32.mxu1 %v6688_v4  ;;  %6712 = vst [vmem:[#allocation35_spill] sm:$0xff] %v5423_v16  ;;  %v5427_v19 = vld [vmem:[#allocation8 + $0x28] sm:$0xff] }
 0x6f6   :  { %1983 = vmatmul.mubr.f32.vlgmr.msra.gmra.mxu0 %v6693_v20  ;;  %2096 = vmatmul.mubr.f32.vlgmr.msra.gmra.mxu1 %v6693_v20  ;;  %6713 = vst [vmem:[#allocation50_spill] sm:$0xff] %v5427_v19  ;;  %v5429_v20 = vld [vmem:[#allocation8 + $0x38] sm:$0xff] }
 0x6f7   :  { %1988 = vmatprep.mubr.f32.mxu0 %v6688_v4  ;;  %2101 = vmatprep.mubr.f32.mxu1 %v6688_v4  ;;  %6714 = vst [vmem:[#allocation52_spill] sm:$0xff] %v5429_v20 }
 0x6f8   :  { %2244 = vmatprep.subr.mxu0 %v5259_v52  ;;  %2315 = vmatprep.subr.mxu1 %v5261_v53 }
 0x6f9   :  { %2316 = vmatpush1.msra.mxu1 %v5267_v60 }
 0x6fa   :  { %1989 = vmatmul.mubr.f32.gmra.mxu0 %v6694_v17  ;;  %2102 = vmatmul.mubr.f32.gmra.mxu1 %v6694_v17  ;;  %v5433_v17 = vld [vmem:[#allocation8 + $0x20] sm:$0xff] }
 0x6fb   :  { %1994 = vmatprep.mubr.f32.mxu0 %v6688_v4  ;;  %2107 = vmatprep.mubr.f32.mxu1 %v6688_v4  ;;  %6715 = vst [vmem:[#allocation51_spill] sm:$0xff] %v5433_v17 }
 0x6fc   :  { %2317 = vmatprep.subr.mxu1 %v5273_v55 }
 0x6fd   :  { %2318 = vmatpush1.msra.mxu1 %v5279_v62 }
 0x6fe   :  { %1995 = vmatmul.mubr.f32.gmra.mxu0 %v6695_v14  ;;  %2108 = vmatmul.mubr.f32.gmra.mxu1 %v6695_v14  ;;  %v5435_v14 = vld [vmem:[#allocation8 + $0x30] sm:$0xff] }
 0x6ff   :  { %2000 = vmatprep.mubr.f32.mxu0 %v6688_v4  ;;  %2113 = vmatprep.mubr.f32.mxu1 %v6688_v4  ;;  %6716 = vst [vmem:[#allocation53_spill] sm:$0xff] %v5435_v14 }
 0x700   :  { %2319 = vmatprep.subr.mxu1 %v5285_v1 }
 0x701   :  { %2320 = vmatpush1.msra.mxu1 %v5291_v0 }
 0x702   :  { %2001 = vmatmul.mubr.f32.gmra.mxu0 %v6696_v61  ;;  %2114 = vmatmul.mubr.f32.gmra.mxu1 %v6696_v61  ;;  %v5439_v61 = vld [vmem:[#allocation8 + $0x8] sm:$0xff] }
 0x703   :  { %2006 = vmatprep.mubr.f32.mxu0 %v6688_v4  ;;  %2119 = vmatprep.mubr.f32.mxu1 %v6688_v4  ;;  %6717 = vst [vmem:[#allocation15_spill] sm:$0xff] %v5439_v61 }
 0x704   :  { %2321 = vmatprep.subr.mxu1 %v5297_v9 }
 0x705   :  { %2322 = vmatpush1.msra.mxu1 %v5303_v2 }
 0x706   :  { %2007 = vmatmul.mubr.f32.gmra.mxu0 %v6697_v13  ;;  %2120 = vmatmul.mubr.f32.gmra.mxu1 %v6697_v13  ;;  %v5441_v13 = vld [vmem:[#allocation8 + $0x18] sm:$0xff] }
 0x707   :  { %2012 = vmatprep.mubr.f32.mxu0 %v6688_v4  ;;  %2125 = vmatprep.mubr.f32.mxu1 %v6688_v4  ;;  %6718 = vst [vmem:[#allocation16_spill] sm:$0xff] %v5441_v13 }
 0x708   :  { %2323 = vmatprep.subr.mxu1 %v5309_v8 }
 0x709   :  { %2324 = vmatpush1.msra.mxu1 %v5315_v18 }
 0x70a   :  { %2013 = vmatmul.mubr.f32.gmra.mxu0 %v5149_v51  ;;  %2126 = vmatmul.mubr.f32.gmra.mxu1 %v5149_v51  ;;  %v5265_v51 = vld [vmem:[#allocation8 + $0x1e0] sm:$0xff] }
 0x70b   :  { %2018 = vmatprep.mubr.f32.mxu0 %v6688_v4  ;;  %2131 = vmatprep.mubr.f32.mxu1 %v6688_v4 }
 0x70c   :  { %2245 = vmatpush1.msra.mxu0 %v5265_v51  ;;  %2325 = vmatprep.subr.mxu1 %v5321_v63 }
 0x70d   :  { %2326 = vmatpush1.msra.mxu1 %v5327_v11 }
 0x70e   :  { %2019 = vmatmul.mubr.f32.gmra.mxu0 %v5225_v32  ;;  %2132 = vmatmul.mubr.f32.gmra.mxu1 %v5225_v32  ;;  %v5271_v32 = vld [vmem:[#allocation8 + $0x1c8] sm:$0xff] }
 0x70f   :  { %2024 = vmatprep.mubr.f32.mxu0 %v6688_v4  ;;  %2137 = vmatprep.mubr.f32.mxu1 %v6688_v4 }
 0x710   :  { %2246 = vmatprep.subr.mxu0 %v5271_v32  ;;  %2327 = vmatprep.subr.mxu1 %v5333_v22 }
 0x711   :  { %2247 = vmatpush1.msra.mxu0 %v5277_v3  ;;  %2328 = vmatpush1.msra.mxu1 %v5337_v24 }
 0x712   :  { %2248 = vmatprep.subr.mxu0 %v5283_v27  ;;  %2329 = vmatprep.subr.mxu1 %v5345_v26 }
 0x713   :  { %2249 = vmatpush1.msra.mxu0 %v5289_v5  ;;  %2330 = vmatpush1.msra.mxu1 %v5351_v29 }
 0x714   :  { %2250 = vmatprep.subr.mxu0 %v5295_v6  ;;  %2331 = vmatprep.subr.mxu1 %v5357_v31 }
 0x715   :  { %2251 = vmatpush1.msra.mxu0 %v5301_v36  ;;  %2332 = vmatpush1.msra.mxu1 %v5363_v59 }
 0x716   :  { %2252 = vmatprep.subr.mxu0 %v5307_v54  ;;  %2333 = vmatprep.subr.mxu1 %v5369_v38 }
 0x717   :  { %2253 = vmatpush1.msra.mxu0 %v5313_v7  ;;  %2334 = vmatpush1.msra.mxu1 %v5375_v40 }
 0x718   :  { %2254 = vmatprep.subr.mxu0 %v5319_v45  ;;  %2335 = vmatprep.subr.mxu1 %v5381_v42 }
 0x719   :  { %2255 = vmatpush1.msra.mxu0 %v5325_v58  ;;  %2336 = vmatpush1.msra.mxu1 %v5387_v44 }
 0x71a   :  { %2256 = vmatprep.subr.mxu0 %v5329_v10  ;;  %2337 = vmatprep.subr.mxu1 %v5393_v47 }
 0x71b   :  { %2257 = vmatpush1.msra.mxu0 %v5335_v23  ;;  %2338 = vmatpush1.msra.mxu1 %v5399_v49 }
 0x71c   :  { %2258 = vmatprep.subr.mxu0 %v5343_v25  ;;  %2339 = vmatprep.subr.mxu1 %v5405_v34 }
 0x71d   :  { %2259 = vmatpush1.msra.mxu0 %v5349_v28  ;;  %2340 = vmatpush1.msra.mxu1 %v5411_v50  ;;  %v6723_v50 = vld [vmem:[#allocation59_spill] sm:$0xff] }
 0x71e   :  { %2260 = vmatprep.subr.mxu0 %v5355_v30  ;;  %2341 = vmatprep.subr.mxu1 %v5417_v56 }
 0x71f   :  { %2261 = vmatpush1.msra.mxu0 %v5361_v33  ;;  %2342 = vmatpush1.msra.mxu1 %v5423_v16  ;;  %v5445_v16 = vld [vmem:[#allocation8] sm:$0xff] }
 0x720   :  { %2262 = vmatprep.subr.mxu0 %v5367_v37  ;;  %2343 = vmatprep.subr.mxu1 %v5429_v20  ;;  %6719 = vst [vmem:[#allocation17_spill] sm:$0xff] %v5445_v16 }
 0x721   :  { %2263 = vmatpush1.msra.mxu0 %v5373_v39  ;;  %2344 = vmatpush1.msra.mxu1 %v5435_v14 }
 0x722   :  { %2264 = vmatprep.subr.mxu0 %v5379_v41  ;;  %2345 = vmatprep.subr.mxu1 %v5441_v13 }
 0x723   :  { %2265 = vmatpush1.msra.mxu0 %v5385_v43 }
 0x724   :  { %2266 = vmatprep.subr.mxu0 %v5391_v46 }
 0x725   :  { %2267 = vmatpush1.msra.mxu0 %v5397_v48 }
 0x726   :  { %2268 = vmatprep.subr.mxu0 %v5403_v12 }
 0x727   :  { %2269 = vmatpush1.msra.mxu0 %v5409_v35 }
 0x728   :  { %2270 = vmatprep.subr.mxu0 %v5415_v21  ;;  %v6722_v21 = vld [vmem:[#allocation60_spill] sm:$0xff] }
 0x729   :  { %2271 = vmatpush1.msra.mxu0 %v5421_v57 }
 0x72a   :  { %2272 = vmatprep.subr.mxu0 %v5427_v19  ;;  %v5447_v19 = vld [vmem:[#allocation8 + $0x10] sm:$0xff] }
 0x72b   :  { %2273 = vmatpush1.msra.mxu0 %v5433_v17  ;;  %6720 = vst [vmem:[#allocation18_spill] sm:$0xff] %v5447_v19  ;;  %2346 = vmatpush1.msra.mxu1 %v5447_v19  ;;  %v6721_v17 = vld [vmem:[#allocation58_spill] sm:$0xff]  ;;  %v6724_v19 = vld [vmem:[#allocation61_spill] sm:$0xff] }
 0x72c   :  { %2274 = vmatprep.subr.mxu0 %v5439_v61  ;;  %2483 = vmatprep.subr.mxu1 %v5261_v53 }
 0x72d   :  { %2275 = vmatpush1.msra.mxu0 %v5445_v16 }
 0x72e   :  { %2412 = vmatprep.subr.mxu0 %v5259_v52 }
 0x795   :  { %v1724_v14 = vpop.f32.mrf.mxu0  ;;  %v1795_v57 = vpop.f32.mrf.mxu1 }
 0x796   :  { %v1800_v20 = vadd.f32 %v1724_v14, %v6721_v17  ;;  %v1802_v35 = vadd.f32 %v1795_v57, %v6723_v50 }
 0x797   :  { %v1726_v56 = vpop.f32.mrf.mxu0  ;;  %v1797_v16 = vpop.f32.mrf.mxu1 }
 0x798   :  { %v1804_v61 = vmul.f32 0.5, %v1800_v20  ;;  %v1801_v13 = vadd.f32 %v1726_v56, %v6722_v21  ;;  %v1803_v12 = vadd.f32 %v1797_v16, %v6724_v19  ;;  %v6733_v16 = vld [vmem:[#allocation47_spill] sm:$0xff]  ;;  %v6734_v19 = vld [vmem:[#allocation49_spill] sm:$0xff] }
 0x79a   :  { %3831 = vtanh.f32 %v1804_v61  ;;  %v1808_v34 = vmul.f32 0.5, %v1801_v13  ;;  %v1813_v52 = vmul.f32 0.5, %v1803_v12  ;;  %v6732_v12 = vld [vmem:[#allocation48_spill] sm:$0xff] }
 0x79b   :  { %v6735_v13 = vld [vmem:[#allocation36_spill] sm:$0xff] }
 0x79c   :  { %3833 = vtanh.f32 %v1808_v34 }
 0x79d   :  { %3835 = vtanh.f32 %v1802_v35 }
 0x79e   :  { %3837 = vtanh.f32 %v1813_v52  ;;  %v6726_v52 = vld [vmem:[#allocation41_spill] sm:$0xff] }
 0x7a7   :  { %v3832_v49 = vpop.eup %3831 }
 0x7a8   :  { %v1806_v53 = vmul.f32 0.5, %v3832_v49  ;;  %v6731_v49 = vld [vmem:[#allocation46_spill] sm:$0xff] }
 0x7a9   :  { %v3834_v48 = vpop.eup %3833 }
 0x7aa   :  { %v1807_v47 = vadd.f32 0.5, %v1806_v53  ;;  %v1810_v17 = vmul.f32 0.5, %v3834_v48  ;;  %v3836_v14 = vpop.eup %3835  ;;  %v6727_v53 = vld [vmem:[#allocation42_spill] sm:$0xff]  ;;  %v6730_v48 = vld [vmem:[#allocation45_spill] sm:$0xff] }
 0x7ab   :  { %v3838_v50 = vpop.eup %3837 }
 0x7ac   :  { %v1811_v20 = vadd.f32 0.5, %v1810_v17  ;;  %v1818_v46 = vmul.f32 %v3836_v14, %v1807_v47  ;;  %v1815_v34 = vmul.f32 0.5, %v3838_v50  ;;  %v6729_v47 = vld [vmem:[#allocation43_spill] sm:$0xff]  ;;  %v6737_v14 = vld [vmem:[#allocation50_spill] sm:$0xff] }
 0x7ad   :  { %v6736_v17 = vld [vmem:[#allocation35_spill] sm:$0xff] }
 0x7ae   :  { %v1817_v21 = vmul.f32 %v1811_v20, %v5222_v15  ;;  %v1816_v35 = vadd.f32 0.5, %v1815_v34  ;;  %v6725_v15 = vld [vmem:[#allocation39_spill] sm:$0xff]  ;;  %v6738_v20 = vld [vmem:[#allocation52_spill] sm:$0xff] }
 0x7af   :  { %v6741_v50 = vld [vmem:[#allocation15_spill] sm:$0xff]  ;;  %v6742_v34 = vld [vmem:[#allocation16_spill] sm:$0xff] }
 0x7b0   :  { %v1819_v56 = vadd.f32 %v1818_v46, %v1817_v21  ;;  %v6728_v46 = vld [vmem:[#allocation44_spill] sm:$0xff]  ;;  %v6739_v21 = vld [vmem:[#allocation51_spill] sm:$0xff] }
 0x7b2   :  { %3839 = vtanh.f32 %v1819_v56  ;;  %v6740_v56 = vld [vmem:[#allocation53_spill] sm:$0xff] }
 0x7bf   :  { %v3840_v57 = vpop.eup %3839 }
 0x7c0   :  { %v1821_v61 = vmul.f32 %v3840_v57, %v1816_v35  ;;  %v6743_v35 = vld [vmem:[#allocation17_spill] sm:$0xff]  ;;  %v6744_v57 = vld [vmem:[#allocation18_spill] sm:$0xff] }
 0x7c2   :  { %2025 = vmatmul.mubr.f32.gmra.mxu0 %v1821_v61  ;;  %2138 = vmatmul.mubr.f32.gmra.mxu1 %v1821_v61  ;;  %v6745_v61 = vld [vmem:[#allocation12_spill] sm:$0xff] }
 0x7c3   :  { %2308 = vmatprep.mubr.f32.mxu0 %v6688_v4  ;;  %2379 = vmatprep.mubr.f32.mxu1 %v6688_v4 }
 0x7c6   :  { %2309 = vmatmul.mubr.f32.vlgmr.msra.gmra.mxu0 %v6688_v4  ;;  %2380 = vmatmul.mubr.f32.vlgmr.msra.gmra.mxu1 %v6688_v4 }
 0x7c7   :  { %2413 = vmatpush1.msra.mxu0 %v5265_v51  ;;  %2484 = vmatpush1.msra.mxu1 %v5267_v60 }
 0x7c8   :  { %2414 = vmatprep.subr.mxu0 %v5271_v32  ;;  %2485 = vmatprep.subr.mxu1 %v5273_v55 }
 0x7c9   :  { %2415 = vmatpush1.msra.mxu0 %v5277_v3  ;;  %2486 = vmatpush1.msra.mxu1 %v5279_v62 }
 0x7ca   :  { %2416 = vmatprep.subr.mxu0 %v5283_v27  ;;  %2487 = vmatprep.subr.mxu1 %v5285_v1 }
 0x7cb   :  { %2417 = vmatpush1.msra.mxu0 %v5289_v5  ;;  %2488 = vmatpush1.msra.mxu1 %v5291_v0 }
 0x7cc   :  { %2418 = vmatprep.subr.mxu0 %v5295_v6  ;;  %2489 = vmatprep.subr.mxu1 %v5297_v9 }
 0x7cd   :  { %2419 = vmatpush1.msra.mxu0 %v5301_v36  ;;  %2490 = vmatpush1.msra.mxu1 %v5303_v2 }
 0x7ce   :  { %2420 = vmatprep.subr.mxu0 %v5307_v54  ;;  %2491 = vmatprep.subr.mxu1 %v5309_v8 }
 0x7cf   :  { %2421 = vmatpush1.msra.mxu0 %v5313_v7  ;;  %2492 = vmatpush1.msra.mxu1 %v5315_v18 }
 0x7d0   :  { %2422 = vmatprep.subr.mxu0 %v5319_v45  ;;  %2493 = vmatprep.subr.mxu1 %v5321_v63 }
 0x7d1   :  { %2423 = vmatpush1.msra.mxu0 %v5325_v58  ;;  %2494 = vmatpush1.msra.mxu1 %v5327_v11 }
 0x7d2   :  { %2424 = vmatprep.subr.mxu0 %v5329_v10  ;;  %2495 = vmatprep.subr.mxu1 %v5333_v22 }
 0x7d3   :  { %2425 = vmatpush1.msra.mxu0 %v5335_v23  ;;  %2496 = vmatpush1.msra.mxu1 %v5337_v24 }
 0x7d4   :  { %2426 = vmatprep.subr.mxu0 %v5343_v25  ;;  %2497 = vmatprep.subr.mxu1 %v5345_v26 }
 0x7d5   :  { %2427 = vmatpush1.msra.mxu0 %v5349_v28  ;;  %2498 = vmatpush1.msra.mxu1 %v5351_v29 }
 0x7d6   :  { %2428 = vmatprep.subr.mxu0 %v5355_v30  ;;  %2499 = vmatprep.subr.mxu1 %v5357_v31 }
 0x7d7   :  { %2429 = vmatpush1.msra.mxu0 %v5361_v33  ;;  %2500 = vmatpush1.msra.mxu1 %v5363_v59 }
 0x7d8   :  { %2430 = vmatprep.subr.mxu0 %v5367_v37  ;;  %2501 = vmatprep.subr.mxu1 %v5369_v38 }
 0x7d9   :  { %2431 = vmatpush1.msra.mxu0 %v5373_v39  ;;  %2502 = vmatpush1.msra.mxu1 %v5375_v40 }
 0x7da   :  { %2432 = vmatprep.subr.mxu0 %v5379_v41  ;;  %2503 = vmatprep.subr.mxu1 %v5381_v42 }
 0x7db   :  { %2433 = vmatpush1.msra.mxu0 %v5385_v43  ;;  %2504 = vmatpush1.msra.mxu1 %v5387_v44 }
 0x7dc   :  { %2434 = vmatprep.subr.mxu0 %v6725_v15  ;;  %2505 = vmatprep.subr.mxu1 %v6726_v52 }
 0x7dd   :  { %2435 = vmatpush1.msra.mxu0 %v6727_v53  ;;  %2506 = vmatpush1.msra.mxu1 %v6728_v46 }
 0x7de   :  { %2436 = vmatprep.subr.mxu0 %v6729_v47  ;;  %2507 = vmatprep.subr.mxu1 %v6730_v48 }
 0x7df   :  { %2437 = vmatpush1.msra.mxu0 %v6731_v49  ;;  %2508 = vmatpush1.msra.mxu1 %v6732_v12 }
 0x7e0   :  { %2438 = vmatprep.subr.mxu0 %v6733_v16  ;;  %2509 = vmatprep.subr.mxu1 %v6734_v19 }
 0x7e1   :  { %2439 = vmatpush1.msra.mxu0 %v6735_v13  ;;  %2510 = vmatpush1.msra.mxu1 %v6736_v17 }
 0x7e2   :  { %2440 = vmatprep.subr.mxu0 %v6737_v14  ;;  %2511 = vmatprep.subr.mxu1 %v6738_v20  ;;  %v6746_v14 = vld [vmem:[#allocation38_spill] sm:$0xff]  ;;  %v1984_v20 = vpop.f32.mrf.mxu0 }
 0x7e3   :  { %2441 = vmatpush1.msra.mxu0 %v6739_v21  ;;  %2512 = vmatpush1.msra.mxu1 %v6740_v56  ;;  %v2097_v21 = vpop.f32.mrf.mxu1 }
 0x7e4   :  { %2442 = vmatprep.subr.mxu0 %v6741_v50  ;;  %2513 = vmatprep.subr.mxu1 %v6742_v34  ;;  %v1986_v17 = vpop.f32.mrf.mxu0 }
 0x7e5   :  { %2443 = vmatpush1.msra.mxu0 %v6743_v35  ;;  %2476 = vmatprep.mubr.f32.mxu0 %v6688_v4  ;;  %v2099_v56 = vpop.f32.mrf.mxu1 }
 0x7e6   :  { %2514 = vmatpush1.msra.mxu1 %v6744_v57  ;;  %2547 = vmatprep.mubr.f32.mxu1 %v6688_v4  ;;  %v5528_v13 = vpop.f32.mrf.mxu0 }
 0x7e7   :  { %2580 = vmatprep.subr.mxu0 %v6745_v61  ;;  %2651 = vmatprep.subr.mxu1 %v6746_v14  ;;  %6747 = vst [vmem:[#allocation19_spill] sm:$0xff] %v5528_v13  ;;  %v5530_v50 = vpop.f32.mrf.mxu1 }
 0x7e8   :  { %6748 = vst [vmem:[#allocation20_spill] sm:$0xff] %v5530_v50  ;;  %v5532_v34 = vpop.f32.mrf.mxu0 }
 0x7e9   :  { %6749 = vst [vmem:[#allocation21_spill] sm:$0xff] %v5532_v34  ;;  %v5534_v35 = vpop.f32.mrf.mxu1 }
 0x7ea   :  { %6750 = vst [vmem:[#allocation22_spill] sm:$0xff] %v5534_v35  ;;  %v5536_v19 = vpop.f32.mrf.mxu0 }
 0x7eb   :  { %6751 = vst [vmem:[#allocation23_spill] sm:$0xff] %v5536_v19  ;;  %v5538_v57 = vpop.f32.mrf.mxu1 }
 0x7ec   :  { %6752 = vst [vmem:[#allocation24_spill] sm:$0xff] %v5538_v57  ;;  %v5540_v4 = vpop.f32.mrf.mxu0 }
 0x7ed   :  { %6753 = vst [vmem:[#allocation25_spill] sm:$0xff] %v5540_v4  ;;  %v5542_v61 = vpop.f32.mrf.mxu1 }
 0x7ee   :  { %6754 = vst [vmem:[#allocation26_spill] sm:$0xff] %v5542_v61  ;;  %v5544_v14 = vpop.f32.mrf.mxu0 }
 0x7ef   :  { %6755 = vst [vmem:[#allocation27_spill] sm:$0xff] %v5544_v14  ;;  %v5546_v16 = vpop.f32.mrf.mxu1 }
 0x7f0   :  { %6756 = vst [vmem:[#allocation28_spill] sm:$0xff] %v5546_v16  ;;  %v5548_v12 = vpop.f32.mrf.mxu0 }
 0x7f1   :  { %6757 = vst [vmem:[#allocation29_spill] sm:$0xff] %v5548_v12  ;;  %v5550_v13 = vpop.f32.mrf.mxu1 }
 0x7f2   :  { %6758 = vst [vmem:[#allocation30_spill] sm:$0xff] %v5550_v13  ;;  %v5552_v50 = vpop.f32.mrf.mxu0 }
 0x7f3   :  { %6759 = vst [vmem:[#allocation31_spill] sm:$0xff] %v5552_v50  ;;  %v5554_v34 = vpop.f32.mrf.mxu1 }
 0x7f4   :  { %6760 = vst [vmem:[#allocation32_spill] sm:$0xff] %v5554_v34  ;;  %v5556_v35 = vpop.f32.mrf.mxu0  ;;  %v1896_v34 = vld [vmem:[%s6290_s6] sm:$0xf] }
 0x7f5   :  { %6761 = vst [vmem:[#allocation33_spill] sm:$0xff] %v5556_v35  ;;  %v5558_v19 = vpop.f32.mrf.mxu1 }
 0x7f6   :  { %6762 = vst [vmem:[#allocation54_spill] sm:$0xff] %v5558_v19  ;;  %v5560_v57 = vpop.f32.mrf.mxu0  ;;  %v6771_v19 = vld [vmem:[#allocation34_spill] sm:$0xff] }
 0x7f7   :  { %6763 = vst [vmem:[#allocation56_spill] sm:$0xff] %v5560_v57  ;;  %v5562_v4 = vpop.f32.mrf.mxu1  ;;  %v6772_v57 = vsub.s32 0, %v6771_v19 }
 0x7f8   :  { %6764 = vst [vmem:[#allocation55_spill] sm:$0xff] %v5562_v4  ;;  %v5564_v61 = vpop.f32.mrf.mxu0 }
 0x7f9   :  { %6765 = vst [vmem:[#allocation57_spill] sm:$0xff] %v5564_v61  ;;  %v5566_v14 = vpop.f32.mrf.mxu1  ;;  %v5581_v13 = vrot.slane %v1896_v34, %v6772_v57 }
 0x7fa   :  { %6766 = vst [vmem:[#allocation62_spill] sm:$0xff] %v5566_v14  ;;  %v5568_v16 = vpop.f32.mrf.mxu0 }
 0x7fb   :  { %6767 = vst [vmem:[#allocation13_spill] sm:$0xff] %v5568_v16  ;;  %v5570_v12 = vpop.f32.mrf.mxu1  ;;  %6773 = vst [vmem:[#allocation58_spill] sm:$0xff] %v5581_v13  ;;  %v6776_v16 = vsub.s32 1, %v6771_v19  ;;  %v1985_v49 = vadd.f32 %v1984_v20, %v5581_v13  ;;  %v6781_v20 = vsub.s32 3, %v6771_v19 }
 0x7fc   :  { %6768 = vst [vmem:[#allocation14_spill] sm:$0xff] %v5570_v12  ;;  %v5575_v50 = vpop.f32.mrf.mxu0 }
 0x7fd   :  { %6769 = vst [vmem:[#allocation37_spill] sm:$0xff] %v5575_v50  ;;  %v5577_v35 = vpop.f32.mrf.mxu1  ;;  %v5589_v14 = vrot.slane %v1896_v34, %v6776_v16  ;;  %v5604_v13 = vrot.slane %v1896_v34, %v6781_v20  ;;  %v6784_v20 = vld [vmem:[#allocation42_spill] sm:$0xff] }
 0x7fe   :  { %6770 = vst [vmem:[#allocation11_spill] sm:$0xff] %v5577_v35  ;;  %v6780_v35 = vsub.s32 2, %v6771_v19 }
 0x7ff   :  { %6777 = vst [vmem:[#allocation61_spill] sm:$0xff] %v5589_v14  ;;  %v1987_v57 = vadd.f32 %v1986_v17, %v5589_v14 }
 0x800   :  { %v5598_v47 = vrot.slane %v1896_v34, %v6780_v35  ;;  %v2100_v35 = vadd.f32 %v2099_v56, %v5604_v13 }
 0x802   :  { %v2098_v16 = vadd.f32 %v2097_v21, %v5598_v47 }
 0x882   :  { %v5583_v4 = vpop.f32.mrf.mxu0  ;;  %v5585_v61 = vpop.f32.mrf.mxu1 }
 0x883   :  { %6774 = vst [vmem:[#allocation60_spill] sm:$0xff] %v5583_v4  ;;  %6775 = vst [vmem:[#allocation59_spill] sm:$0xff] %v5585_v61 }
 0x884   :  { %v5591_v12 = vpop.f32.mrf.mxu0  ;;  %v5594_v48 = vpop.f32.mrf.mxu1 }
 0x885   :  { %6778 = vst [vmem:[#allocation34_spill] sm:$0xff] %v5591_v12  ;;  %6779 = vst [vmem:[#allocation63_spill] sm:$0xff] %v5594_v48 }
 0x886   :  { %v2310_v50 = vpop.f32.mrf.mxu0  ;;  %v2381_v52 = vpop.f32.mrf.mxu1 }
 0x887   :  { %v2386_v4 = vadd.f32 %v2310_v50, %v1985_v49  ;;  %v2388_v48 = vadd.f32 %v2381_v52, %v2098_v16  ;;  %v6783_v16 = vld [vmem:[#allocation41_spill] sm:$0xff] }
 0x888   :  { %v2312_v46 = vpop.f32.mrf.mxu0  ;;  %v2383_v15 = vpop.f32.mrf.mxu1 }
 0x889   :  { %v2390_v61 = vmul.f32 0.5, %v2386_v4  ;;  %v2387_v53 = vadd.f32 %v2312_v46, %v1987_v57  ;;  %v2389_v17 = vadd.f32 %v2383_v15, %v2100_v35  ;;  %v6785_v35 = vld [vmem:[#allocation44_spill] sm:$0xff] }
 0x88b   :  { %3841 = vtanh.f32 %v2390_v61  ;;  %v2394_v12 = vmul.f32 0.5, %v2387_v53  ;;  %v2399_v49 = vmul.f32 0.5, %v2389_v17  ;;  %v6786_v17 = vld [vmem:[#allocation43_spill] sm:$0xff] }
 0x88d   :  { %3843 = vtanh.f32 %v2394_v12 }
 0x88e   :  { %3845 = vtanh.f32 %v2388_v48 }
 0x88f   :  { %3847 = vtanh.f32 %v2399_v49  ;;  %v6787_v49 = vld [vmem:[#allocation45_spill] sm:$0xff] }
 0x898   :  { %v3842_v50 = vpop.eup %3841 }
 0x899   :  { %v2392_v4 = vmul.f32 0.5, %v3842_v50  ;;  %v6788_v50 = vld [vmem:[#allocation46_spill] sm:$0xff] }
 0x89a   :  { %v3844_v46 = vpop.eup %3843 }
 0x89b   :  { %v2393_v57 = vadd.f32 0.5, %v2392_v4  ;;  %v2396_v14 = vmul.f32 0.5, %v3844_v46  ;;  %v3846_v53 = vpop.eup %3845  ;;  %v6789_v4 = vld [vmem:[#allocation48_spill] sm:$0xff]  ;;  %v6790_v46 = vld [vmem:[#allocation47_spill] sm:$0xff] }
 0x89c   :  { %v3848_v52 = vpop.eup %3847 }
 0x89d   :  { %v2397_v21 = vadd.f32 0.5, %v2396_v14  ;;  %v2404_v19 = vmul.f32 %v3846_v53, %v2393_v57  ;;  %v2401_v12 = vmul.f32 0.5, %v3848_v52  ;;  %v6782_v14 = vld [vmem:[#allocation39_spill] sm:$0xff]  ;;  %v6791_v57 = vld [vmem:[#allocation49_spill] sm:$0xff] }
 0x89e   :  { %v6793_v53 = vld [vmem:[#allocation35_spill] sm:$0xff] }
 0x89f   :  { %v2403_v61 = vmul.f32 0.0, %v2397_v21  ;;  %v2402_v56 = vadd.f32 0.5, %v2401_v12  ;;  %v6792_v21 = vld [vmem:[#allocation36_spill] sm:$0xff]  ;;  %v6796_v52 = vld [vmem:[#allocation51_spill] sm:$0xff]  ;;  %v6797_v12 = vld [vmem:[#allocation53_spill] sm:$0xff] }
 0x8a1   :  { %v5607_v34 = vadd.f32 %v2404_v19, %v2403_v61  ;;  %v6794_v61 = vld [vmem:[#allocation50_spill] sm:$0xff]  ;;  %v6795_v19 = vld [vmem:[#allocation52_spill] sm:$0xff] }
 0x8a3   :  { %3849 = vtanh.f32 %v5607_v34 }
 0x8b0   :  { %v3850_v48 = vpop.eup %3849 }
 0x8b1   :  { %v2407_v15 = vmul.f32 %v3850_v48, %v2402_v56  ;;  %v6798_v56 = vld [vmem:[#allocation15_spill] sm:$0xff]  ;;  %v6799_v48 = vld [vmem:[#allocation16_spill] sm:$0xff] }
 0x8b3   :  { %2477 = vmatmul.mubr.f32.vlgmr.msra.gmra.mxu0 %v2407_v15  ;;  %2548 = vmatmul.mubr.f32.vlgmr.msra.gmra.mxu1 %v2407_v15  ;;  %v6800_v15 = vld [vmem:[#allocation17_spill] sm:$0xff] }
 0x8b4   :  { %2581 = vmatpush1.msra.mxu0 %v5265_v51  ;;  %2652 = vmatpush1.msra.mxu1 %v5267_v60 }
 0x8b5   :  { %2582 = vmatprep.subr.mxu0 %v5271_v32  ;;  %2653 = vmatprep.subr.mxu1 %v5273_v55 }
 0x8b6   :  { %2583 = vmatpush1.msra.mxu0 %v5277_v3  ;;  %2654 = vmatpush1.msra.mxu1 %v5279_v62 }
 0x8b7   :  { %2584 = vmatprep.subr.mxu0 %v5283_v27  ;;  %2655 = vmatprep.subr.mxu1 %v5285_v1 }
 0x8b8   :  { %2585 = vmatpush1.msra.mxu0 %v5289_v5  ;;  %2656 = vmatpush1.msra.mxu1 %v5291_v0 }
 0x8b9   :  { %2586 = vmatprep.subr.mxu0 %v5295_v6  ;;  %2657 = vmatprep.subr.mxu1 %v5297_v9 }
 0x8ba   :  { %2587 = vmatpush1.msra.mxu0 %v5301_v36  ;;  %2658 = vmatpush1.msra.mxu1 %v5303_v2 }
 0x8bb   :  { %2588 = vmatprep.subr.mxu0 %v5307_v54  ;;  %2659 = vmatprep.subr.mxu1 %v5309_v8 }
 0x8bc   :  { %2589 = vmatpush1.msra.mxu0 %v5313_v7  ;;  %2660 = vmatpush1.msra.mxu1 %v5315_v18 }
 0x8bd   :  { %2590 = vmatprep.subr.mxu0 %v5319_v45  ;;  %2661 = vmatprep.subr.mxu1 %v5321_v63 }
 0x8be   :  { %2591 = vmatpush1.msra.mxu0 %v5325_v58  ;;  %2662 = vmatpush1.msra.mxu1 %v5327_v11 }
 0x8bf   :  { %2592 = vmatprep.subr.mxu0 %v5329_v10  ;;  %2663 = vmatprep.subr.mxu1 %v5333_v22 }
 0x8c0   :  { %2593 = vmatpush1.msra.mxu0 %v5335_v23  ;;  %2664 = vmatpush1.msra.mxu1 %v5337_v24 }
 0x8c1   :  { %2594 = vmatprep.subr.mxu0 %v5343_v25  ;;  %2665 = vmatprep.subr.mxu1 %v5345_v26 }
 0x8c2   :  { %2595 = vmatpush1.msra.mxu0 %v5349_v28  ;;  %2666 = vmatpush1.msra.mxu1 %v5351_v29 }
 0x8c3   :  { %2596 = vmatprep.subr.mxu0 %v5355_v30  ;;  %2667 = vmatprep.subr.mxu1 %v5357_v31 }
 0x8c4   :  { %2597 = vmatpush1.msra.mxu0 %v5361_v33  ;;  %2668 = vmatpush1.msra.mxu1 %v5363_v59 }
 0x8c5   :  { %2598 = vmatprep.subr.mxu0 %v5367_v37  ;;  %2669 = vmatprep.subr.mxu1 %v5369_v38 }
 0x8c6   :  { %2599 = vmatpush1.msra.mxu0 %v5373_v39  ;;  %2670 = vmatpush1.msra.mxu1 %v5375_v40 }
 0x8c7   :  { %2600 = vmatprep.subr.mxu0 %v5379_v41  ;;  %2671 = vmatprep.subr.mxu1 %v5381_v42 }
 0x8c8   :  { %2601 = vmatpush1.msra.mxu0 %v5385_v43  ;;  %2672 = vmatpush1.msra.mxu1 %v5387_v44 }
 0x8c9   :  { %2602 = vmatprep.subr.mxu0 %v6782_v14  ;;  %2673 = vmatprep.subr.mxu1 %v6783_v16 }
 0x8ca   :  { %2603 = vmatpush1.msra.mxu0 %v6784_v20  ;;  %2674 = vmatpush1.msra.mxu1 %v6785_v35 }
 0x8cb   :  { %2604 = vmatprep.subr.mxu0 %v6786_v17  ;;  %2675 = vmatprep.subr.mxu1 %v6787_v49  ;;  %v6809_v17 = vld [vmem:[#allocation20_spill] sm:$0xff] }
 0x8cc   :  { %2605 = vmatpush1.msra.mxu0 %v6788_v50  ;;  %2676 = vmatpush1.msra.mxu1 %v6789_v4  ;;  %v6807_v4 = vld [vmem:[#allocation61_spill] sm:$0xff]  ;;  %v2104_v35 = vadd.f32 %v6809_v17, %v5598_v47 }
 0x8cd   :  { %2606 = vmatprep.subr.mxu0 %v6790_v46  ;;  %2677 = vmatprep.subr.mxu1 %v6791_v57  ;;  %v6801_v46 = vmov 0.0   ;;  %v6802_v57 = vld [vmem:[#allocation18_spill] sm:$0xff] }
 0x8ce   :  { %2607 = vmatpush1.msra.mxu0 %v6792_v21  ;;  %2678 = vmatpush1.msra.mxu1 %v6793_v53  ;;  %v6803_v53 = vld [vmem:[#allocation12_spill] sm:$0xff] }
 0x8cf   :  { %2608 = vmatprep.subr.mxu0 %v6794_v61  ;;  %2679 = vmatprep.subr.mxu1 %v6795_v19  ;;  %v6804_v61 = vld [vmem:[#allocation38_spill] sm:$0xff] }
 0x8d0   :  { %2609 = vmatpush1.msra.mxu0 %v6796_v52  ;;  %2680 = vmatpush1.msra.mxu1 %v6797_v12  ;;  %v6805_v19 = vld [vmem:[#allocation58_spill] sm:$0xff]  ;;  %v6806_v52 = vld [vmem:[#allocation19_spill] sm:$0xff] }
 0x8d1   :  { %2610 = vmatprep.subr.mxu0 %v6798_v56  ;;  %2681 = vmatprep.subr.mxu1 %v6799_v48  ;;  %v1991_v21 = vadd.f32 %v6806_v52, %v6805_v19  ;;  %v6808_v56 = vld [vmem:[#allocation21_spill] sm:$0xff]  ;;  %v6810_v52 = vld [vmem:[#allocation22_spill] sm:$0xff] }
 0x8d2   :  { %2611 = vmatpush1.msra.mxu0 %v6800_v15  ;;  %2644 = vmatprep.mubr.f32.mxu0 %v6801_v46  ;;  %v1993_v50 = vadd.f32 %v6808_v56, %v6807_v4  ;;  %v2106_v19 = vadd.f32 %v6810_v52, %v5604_v13  ;;  %v6818_v52 = vld [vmem:[#allocation46_spill] sm:$0xff] }
 0x8d3   :  { %2682 = vmatpush1.msra.mxu1 %v6802_v57  ;;  %2715 = vmatprep.mubr.f32.mxu1 %v6801_v46 }
 0x8d4   :  { %2748 = vmatprep.subr.mxu0 %v6803_v53  ;;  %2819 = vmatprep.subr.mxu1 %v6804_v61 }
 0x973   :  { %v2478_v12 = vpop.f32.mrf.mxu0  ;;  %v2549_v49 = vpop.f32.mrf.mxu1 }
 0x974   :  { %v2554_v48 = vadd.f32 %v2478_v12, %v1991_v21  ;;  %v2556_v46 = vadd.f32 %v2549_v49, %v2104_v35 }
 0x975   :  { %v2480_v15 = vpop.f32.mrf.mxu0  ;;  %v2551_v61 = vpop.f32.mrf.mxu1 }
 0x976   :  { %v2558_v57 = vmul.f32 0.5, %v2554_v48  ;;  %v2555_v20 = vadd.f32 %v2480_v15, %v1993_v50  ;;  %v2557_v16 = vadd.f32 %v2551_v61, %v2106_v19  ;;  %v6815_v61 = vld [vmem:[#allocation44_spill] sm:$0xff]  ;;  %v6816_v19 = vld [vmem:[#allocation43_spill] sm:$0xff]  ;;  %v6817_v15 = vld [vmem:[#allocation45_spill] sm:$0xff] }
 0x978   :  { %3851 = vtanh.f32 %v2558_v57  ;;  %v2562_v53 = vmul.f32 0.5, %v2555_v20  ;;  %v2567_v14 = vmul.f32 0.5, %v2557_v16 }
 0x97a   :  { %3853 = vtanh.f32 %v2562_v53 }
 0x97b   :  { %3855 = vtanh.f32 %v2556_v46 }
 0x97c   :  { %3857 = vtanh.f32 %v2567_v14  ;;  %v6813_v14 = vld [vmem:[#allocation41_spill] sm:$0xff] }
 0x985   :  { %v3852_v56 = vpop.eup %3851 }
 0x986   :  { %v2560_v21 = vmul.f32 0.5, %v3852_v56  ;;  %v6819_v56 = vld [vmem:[#allocation48_spill] sm:$0xff] }
 0x987   :  { %v3854_v12 = vpop.eup %3853 }
 0x988   :  { %v2561_v4 = vadd.f32 0.5, %v2560_v21  ;;  %v2564_v44 = vmul.f32 0.5, %v3854_v12  ;;  %v3856_v17 = vpop.eup %3855  ;;  %v6820_v21 = vld [vmem:[#allocation47_spill] sm:$0xff]  ;;  %v6821_v12 = vld [vmem:[#allocation49_spill] sm:$0xff] }
 0x989   :  { %v3858_v49 = vpop.eup %3857 }
 0x98a   :  { %v2565_v48 = vadd.f32 0.5, %v2564_v44  ;;  %v2572_v50 = vmul.f32 %v3856_v17, %v2561_v4  ;;  %v2569_v46 = vmul.f32 0.5, %v3858_v49  ;;  %v6811_v44 = vld [vmem:[#allocation40_spill] sm:$0xff]  ;;  %v6814_v4 = vld [vmem:[#allocation42_spill] sm:$0xff]  ;;  %v6826_v49 = vld [vmem:[#allocation51_spill] sm:$0xff] }
 0x98b   :  { %v6822_v17 = vld [vmem:[#allocation36_spill] sm:$0xff] }
 0x98c   :  { %v2571_v35 = vmul.f32 %v2565_v48, %v5607_v34  ;;  %v2570_v57 = vadd.f32 0.5, %v2569_v46  ;;  %v6812_v34 = vld [vmem:[#allocation39_spill] sm:$0xff]  ;;  %v6827_v46 = vld [vmem:[#allocation53_spill] sm:$0xff] }
 0x98d   :  { %v6823_v48 = vld [vmem:[#allocation35_spill] sm:$0xff] }
 0x98e   :  { %v5685_v20 = vadd.f32 %v2572_v50, %v2571_v35  ;;  %v6824_v50 = vld [vmem:[#allocation50_spill] sm:$0xff]  ;;  %v6825_v35 = vld [vmem:[#allocation52_spill] sm:$0xff] }
 0x990   :  { %3859 = vtanh.f32 %v5685_v20 }
 0x99d   :  { %v3860_v53 = vpop.eup %3859 }
 0x99e   :  { %v2575_v16 = vmul.f32 %v3860_v53, %v2570_v57  ;;  %v6828_v57 = vld [vmem:[#allocation15_spill] sm:$0xff]  ;;  %v6829_v53 = vld [vmem:[#allocation16_spill] sm:$0xff] }
 0x9a0   :  { %2645 = vmatmul.mubr.f32.vlgmr.msra.gmra.mxu0 %v2575_v16  ;;  %2716 = vmatmul.mubr.f32.vlgmr.msra.gmra.mxu1 %v2575_v16  ;;  %v6830_v16 = vld [vmem:[#allocation17_spill] sm:$0xff] }
 0x9a1   :  { %2749 = vmatpush1.msra.mxu0 %v5265_v51  ;;  %2820 = vmatpush1.msra.mxu1 %v5267_v60 }
 0x9a2   :  { %2750 = vmatprep.subr.mxu0 %v5271_v32  ;;  %2821 = vmatprep.subr.mxu1 %v5273_v55 }
 0x9a3   :  { %2751 = vmatpush1.msra.mxu0 %v5277_v3  ;;  %2822 = vmatpush1.msra.mxu1 %v5279_v62 }
 0x9a4   :  { %2752 = vmatprep.subr.mxu0 %v5283_v27  ;;  %2823 = vmatprep.subr.mxu1 %v5285_v1 }
 0x9a5   :  { %2753 = vmatpush1.msra.mxu0 %v5289_v5  ;;  %2824 = vmatpush1.msra.mxu1 %v5291_v0 }
 0x9a6   :  { %2754 = vmatprep.subr.mxu0 %v5295_v6  ;;  %2825 = vmatprep.subr.mxu1 %v5297_v9 }
 0x9a7   :  { %2755 = vmatpush1.msra.mxu0 %v5301_v36  ;;  %2826 = vmatpush1.msra.mxu1 %v5303_v2 }
 0x9a8   :  { %2756 = vmatprep.subr.mxu0 %v5307_v54  ;;  %2827 = vmatprep.subr.mxu1 %v5309_v8 }
 0x9a9   :  { %2757 = vmatpush1.msra.mxu0 %v5313_v7  ;;  %2828 = vmatpush1.msra.mxu1 %v5315_v18 }
 0x9aa   :  { %2758 = vmatprep.subr.mxu0 %v5319_v45  ;;  %2829 = vmatprep.subr.mxu1 %v5321_v63 }
 0x9ab   :  { %2759 = vmatpush1.msra.mxu0 %v5325_v58  ;;  %2830 = vmatpush1.msra.mxu1 %v5327_v11 }
 0x9ac   :  { %2760 = vmatprep.subr.mxu0 %v5329_v10  ;;  %2831 = vmatprep.subr.mxu1 %v5333_v22 }
 0x9ad   :  { %2761 = vmatpush1.msra.mxu0 %v5335_v23  ;;  %2832 = vmatpush1.msra.mxu1 %v5337_v24 }
 0x9ae   :  { %2762 = vmatprep.subr.mxu0 %v5343_v25  ;;  %2833 = vmatprep.subr.mxu1 %v5345_v26 }
 0x9af   :  { %2763 = vmatpush1.msra.mxu0 %v5349_v28  ;;  %2834 = vmatpush1.msra.mxu1 %v5351_v29 }
 0x9b0   :  { %2764 = vmatprep.subr.mxu0 %v5355_v30  ;;  %2835 = vmatprep.subr.mxu1 %v5357_v31 }
 0x9b1   :  { %2765 = vmatpush1.msra.mxu0 %v5361_v33  ;;  %2836 = vmatpush1.msra.mxu1 %v5363_v59 }
 0x9b2   :  { %2766 = vmatprep.subr.mxu0 %v5367_v37  ;;  %2837 = vmatprep.subr.mxu1 %v5369_v38 }
 0x9b3   :  { %2767 = vmatpush1.msra.mxu0 %v5373_v39  ;;  %2838 = vmatpush1.msra.mxu1 %v5375_v40 }
 0x9b4   :  { %2768 = vmatprep.subr.mxu0 %v5379_v41  ;;  %2839 = vmatprep.subr.mxu1 %v5381_v42 }
 0x9b5   :  { %2769 = vmatpush1.msra.mxu0 %v5385_v43  ;;  %2840 = vmatpush1.msra.mxu1 %v6811_v44 }
 0x9b6   :  { %2770 = vmatprep.subr.mxu0 %v6812_v34  ;;  %2841 = vmatprep.subr.mxu1 %v6813_v14 }
 0x9b7   :  { %2771 = vmatpush1.msra.mxu0 %v6814_v4  ;;  %2842 = vmatpush1.msra.mxu1 %v6815_v61 }
 0x9b8   :  { %2772 = vmatprep.subr.mxu0 %v6816_v19  ;;  %2843 = vmatprep.subr.mxu1 %v6817_v15  ;;  %v6839_v19 = vld [vmem:[#allocation24_spill] sm:$0xff] }
 0x9b9   :  { %2773 = vmatpush1.msra.mxu0 %v6818_v52  ;;  %2844 = vmatpush1.msra.mxu1 %v6819_v56  ;;  %v6837_v56 = vld [vmem:[#allocation61_spill] sm:$0xff]  ;;  %v2110_v61 = vadd.f32 %v6839_v19, %v5598_v47 }
 0x9ba   :  { %2774 = vmatprep.subr.mxu0 %v6820_v21  ;;  %2845 = vmatprep.subr.mxu1 %v6821_v12  ;;  %v6831_v21 = vmov 0.0   ;;  %v6832_v12 = vld [vmem:[#allocation18_spill] sm:$0xff] }
 0x9bb   :  { %2775 = vmatpush1.msra.mxu0 %v6822_v17  ;;  %2846 = vmatpush1.msra.mxu1 %v6823_v48  ;;  %v6833_v48 = vld [vmem:[#allocation12_spill] sm:$0xff] }
 0x9bc   :  { %2776 = vmatprep.subr.mxu0 %v6824_v50  ;;  %2847 = vmatprep.subr.mxu1 %v6825_v35  ;;  %v6834_v50 = vld [vmem:[#allocation38_spill] sm:$0xff] }
 0x9bd   :  { %2777 = vmatpush1.msra.mxu0 %v6826_v49  ;;  %2848 = vmatpush1.msra.mxu1 %v6827_v46  ;;  %v6835_v35 = vld [vmem:[#allocation58_spill] sm:$0xff]  ;;  %v6836_v49 = vld [vmem:[#allocation23_spill] sm:$0xff] }
 0x9be   :  { %2778 = vmatprep.subr.mxu0 %v6828_v57  ;;  %2849 = vmatprep.subr.mxu1 %v6829_v53  ;;  %v1997_v17 = vadd.f32 %v6836_v49, %v6835_v35  ;;  %v6838_v57 = vld [vmem:[#allocation25_spill] sm:$0xff]  ;;  %v6840_v49 = vld [vmem:[#allocation26_spill] sm:$0xff] }
 0x9bf   :  { %2779 = vmatpush1.msra.mxu0 %v6830_v16  ;;  %2812 = vmatprep.mubr.f32.mxu0 %v6831_v21  ;;  %v1999_v52 = vadd.f32 %v6838_v57, %v6837_v56  ;;  %v2112_v35 = vadd.f32 %v6840_v49, %v5604_v13 }
 0x9c0   :  { %2850 = vmatpush1.msra.mxu1 %v6832_v12  ;;  %2883 = vmatprep.mubr.f32.mxu1 %v6831_v21 }
 0x9c1   :  { %2916 = vmatprep.subr.mxu0 %v6833_v48  ;;  %2987 = vmatprep.subr.mxu1 %v6834_v50 }
 0xa60   :  { %v2646_v46 = vpop.f32.mrf.mxu0  ;;  %v2717_v15 = vpop.f32.mrf.mxu1 }
 0xa61   :  { %v2722_v53 = vadd.f32 %v2646_v46, %v1997_v17  ;;  %v2724_v21 = vadd.f32 %v2717_v15, %v2110_v61 }
 0xa62   :  { %v2648_v16 = vpop.f32.mrf.mxu0  ;;  %v2719_v50 = vpop.f32.mrf.mxu1 }
 0xa63   :  { %v2726_v12 = vmul.f32 0.5, %v2722_v53  ;;  %v2723_v4 = vadd.f32 %v2648_v16, %v1999_v52  ;;  %v2725_v14 = vadd.f32 %v2719_v50, %v2112_v35 }
 0xa65   :  { %3861 = vtanh.f32 %v2726_v12  ;;  %v2730_v48 = vmul.f32 0.5, %v2723_v4  ;;  %v2735_v34 = vmul.f32 0.5, %v2725_v14 }
 0xa67   :  { %3863 = vtanh.f32 %v2730_v48 }
 0xa68   :  { %3865 = vtanh.f32 %v2724_v21 }
 0xa69   :  { %3867 = vtanh.f32 %v2735_v34 }
 0xa72   :  { %v3862_v57 = vpop.eup %3861 }
 0xa73   :  { %v2728_v17 = vmul.f32 0.5, %v3862_v57 }
 0xa74   :  { %v3864_v46 = vpop.eup %3863 }
 0xa75   :  { %v2729_v56 = vadd.f32 0.5, %v2728_v17  ;;  %v2732_v44 = vmul.f32 0.5, %v3864_v46  ;;  %v3866_v19 = vpop.eup %3865 }
 0xa76   :  { %v3868_v15 = vpop.eup %3867 }
 0xa77   :  { %v2733_v53 = vadd.f32 0.5, %v2732_v44  ;;  %v2740_v52 = vmul.f32 %v3866_v19, %v2729_v56  ;;  %v2737_v21 = vmul.f32 0.5, %v3868_v15 }
 0xa79   :  { %v2739_v61 = vmul.f32 %v2733_v53, %v5685_v20  ;;  %v2738_v12 = vadd.f32 0.5, %v2737_v21  ;;  %v6870_v20 = vld [vmem:[#allocation30_spill] sm:$0xff] }
 0xa7a   :  { %v2118_v44 = vadd.f32 %v6870_v20, %v5604_v13  ;;  %v5962_v20 = vld [vmem:[#allocation8 + $0xa8] sm:$0xff] }
 0xa7b   :  { %v5763_v4 = vadd.f32 %v2740_v52, %v2739_v61 }
 0xa7d   :  { %3869 = vtanh.f32 %v5763_v4 }
 0xa8a   :  { %v3870_v35 = vpop.eup %3869 }
 0xa8b   :  { %v2743_v14 = vmul.f32 %v3870_v35, %v2738_v12 }
 0xa8d   :  { %2813 = vmatmul.mubr.f32.vlgmr.msra.gmra.mxu0 %v2743_v14  ;;  %2884 = vmatmul.mubr.f32.vlgmr.msra.gmra.mxu1 %v2743_v14  ;;  %v5848_v14 = vld [vmem:[#allocation8 + $0x1e0] sm:$0xff] }
 0xa8e   :  { %2917 = vmatpush1.msra.mxu0 %v5265_v51  ;;  %2988 = vmatpush1.msra.mxu1 %v5267_v60  ;;  %v6841_v51 = vld [vmem:[#allocation40_spill] sm:$0xff]  ;;  %v6842_v60 = vld [vmem:[#allocation39_spill] sm:$0xff] }
 0xa8f   :  { %2918 = vmatprep.subr.mxu0 %v5271_v32  ;;  %2989 = vmatprep.subr.mxu1 %v5273_v55  ;;  %v6843_v32 = vld [vmem:[#allocation41_spill] sm:$0xff]  ;;  %v6844_v55 = vld [vmem:[#allocation42_spill] sm:$0xff] }
 0xa90   :  { %2919 = vmatpush1.msra.mxu0 %v5277_v3  ;;  %2990 = vmatpush1.msra.mxu1 %v5279_v62  ;;  %v6845_v3 = vld [vmem:[#allocation44_spill] sm:$0xff]  ;;  %v6846_v62 = vld [vmem:[#allocation43_spill] sm:$0xff] }
 0xa91   :  { %2920 = vmatprep.subr.mxu0 %v5283_v27  ;;  %2991 = vmatprep.subr.mxu1 %v5285_v1  ;;  %v6847_v27 = vld [vmem:[#allocation45_spill] sm:$0xff]  ;;  %v6848_v1 = vld [vmem:[#allocation46_spill] sm:$0xff] }
 0xa92   :  { %2921 = vmatpush1.msra.mxu0 %v5289_v5  ;;  %2992 = vmatpush1.msra.mxu1 %v5291_v0  ;;  %v6849_v5 = vld [vmem:[#allocation48_spill] sm:$0xff]  ;;  %v6850_v0 = vld [vmem:[#allocation47_spill] sm:$0xff] }
 0xa93   :  { %2922 = vmatprep.subr.mxu0 %v5295_v6  ;;  %2993 = vmatprep.subr.mxu1 %v5297_v9  ;;  %v6851_v6 = vld [vmem:[#allocation49_spill] sm:$0xff]  ;;  %v6852_v9 = vld [vmem:[#allocation36_spill] sm:$0xff] }
 0xa94   :  { %2923 = vmatpush1.msra.mxu0 %v5301_v36  ;;  %2994 = vmatpush1.msra.mxu1 %v5303_v2  ;;  %v6853_v36 = vld [vmem:[#allocation35_spill] sm:$0xff]  ;;  %v6854_v2 = vld [vmem:[#allocation50_spill] sm:$0xff] }
 0xa95   :  { %2924 = vmatprep.subr.mxu0 %v5307_v54  ;;  %2995 = vmatprep.subr.mxu1 %v5309_v8  ;;  %v6855_v54 = vld [vmem:[#allocation52_spill] sm:$0xff]  ;;  %v6856_v8 = vld [vmem:[#allocation51_spill] sm:$0xff] }
 0xa96   :  { %2925 = vmatpush1.msra.mxu0 %v5313_v7  ;;  %2996 = vmatpush1.msra.mxu1 %v5315_v18  ;;  %v6857_v7 = vld [vmem:[#allocation53_spill] sm:$0xff]  ;;  %v6858_v18 = vld [vmem:[#allocation15_spill] sm:$0xff] }
 0xa97   :  { %2926 = vmatprep.subr.mxu0 %v5319_v45  ;;  %2997 = vmatprep.subr.mxu1 %v5321_v63  ;;  %v6859_v45 = vld [vmem:[#allocation16_spill] sm:$0xff]  ;;  %v6860_v63 = vld [vmem:[#allocation17_spill] sm:$0xff] }
 0xa98   :  { %2927 = vmatpush1.msra.mxu0 %v5325_v58  ;;  %2998 = vmatpush1.msra.mxu1 %v5327_v11  ;;  %v6861_v58 = vmov 0.0   ;;  %v6862_v11 = vld [vmem:[#allocation18_spill] sm:$0xff] }
 0xa99   :  { %2928 = vmatprep.subr.mxu0 %v5329_v10  ;;  %2999 = vmatprep.subr.mxu1 %v5333_v22  ;;  %v5830_v10 = vld [vmem:[#allocation8 + $0x1e8] sm:$0xff]  ;;  %v5833_v22 = vld [vmem:[#allocation8 + $0x1f8] sm:$0xff] }
 0xa9a   :  { %2929 = vmatpush1.msra.mxu0 %v5335_v23  ;;  %3000 = vmatpush1.msra.mxu1 %v5337_v24  ;;  %6863 = vst [vmem:[#allocation19_spill] sm:$0xff] %v5830_v10  ;;  %6864 = vst [vmem:[#allocation21_spill] sm:$0xff] %v5833_v22  ;;  %v6865_v23 = vld [vmem:[#allocation58_spill] sm:$0xff]  ;;  %v6866_v24 = vld [vmem:[#allocation27_spill] sm:$0xff] }
 0xa9b   :  { %2930 = vmatprep.subr.mxu0 %v5343_v25  ;;  %3001 = vmatprep.subr.mxu1 %v5345_v26  ;;  %v2003_v25 = vadd.f32 %v6866_v24, %v6865_v23  ;;  %v5917_v24 = vld [vmem:[#allocation8 + $0x138] sm:$0xff] }
 0xa9c   :  { %2931 = vmatpush1.msra.mxu0 %v5349_v28  ;;  %3002 = vmatpush1.msra.mxu1 %v5351_v29  ;;  %v6867_v28 = vld [vmem:[#allocation61_spill] sm:$0xff] }
 0xa9d   :  { %2932 = vmatprep.subr.mxu0 %v5355_v30  ;;  %3003 = vmatprep.subr.mxu1 %v5357_v31  ;;  %v6868_v29 = vld [vmem:[#allocation29_spill] sm:$0xff] }
 0xa9e   :  { %2933 = vmatpush1.msra.mxu0 %v5361_v33  ;;  %3004 = vmatpush1.msra.mxu1 %v5363_v59  ;;  %v2005_v30 = vadd.f32 %v6868_v29, %v6867_v28  ;;  %v5926_v29 = vld [vmem:[#allocation8 + $0x108] sm:$0xff] }
 0xa9f   :  { %2934 = vmatprep.subr.mxu0 %v5367_v37  ;;  %3005 = vmatprep.subr.mxu1 %v5369_v38  ;;  %v6869_v37 = vld [vmem:[#allocation28_spill] sm:$0xff] }
 0xaa0   :  { %2935 = vmatpush1.msra.mxu0 %v5373_v39  ;;  %3006 = vmatpush1.msra.mxu1 %v5375_v40  ;;  %v2116_v38 = vadd.f32 %v6869_v37, %v5598_v47  ;;  %v5941_v37 = vld [vmem:[#allocation8 + $0xf8] sm:$0xff] }
 0xaa1   :  { %2936 = vmatprep.subr.mxu0 %v5379_v41  ;;  %3007 = vmatprep.subr.mxu1 %v5381_v42 }
 0xaa2   :  { %2937 = vmatpush1.msra.mxu0 %v5385_v43  ;;  %3008 = vmatpush1.msra.mxu1 %v6841_v51  ;;  %v5851_v51 = vld [vmem:[#allocation8 + $0x1f0] sm:$0xff] }
 0xaa3   :  { %2938 = vmatprep.subr.mxu0 %v6842_v60  ;;  %3009 = vmatprep.subr.mxu1 %v6843_v32  ;;  %v5857_v60 = vld [vmem:[#allocation8 + $0x1d8] sm:$0xff]  ;;  %v5860_v32 = vld [vmem:[#allocation8 + $0x1c0] sm:$0xff] }
 0xaa4   :  { %2939 = vmatpush1.msra.mxu0 %v6844_v55  ;;  %3010 = vmatpush1.msra.mxu1 %v6845_v3  ;;  %v5863_v55 = vld [vmem:[#allocation8 + $0x1d0] sm:$0xff]  ;;  %v5866_v3 = vld [vmem:[#allocation8 + $0x1a8] sm:$0xff] }
 0xaa5   :  { %2940 = vmatprep.subr.mxu0 %v6846_v62  ;;  %3011 = vmatprep.subr.mxu1 %v6847_v27  ;;  %v5869_v62 = vld [vmem:[#allocation8 + $0x1b8] sm:$0xff]  ;;  %v5872_v27 = vld [vmem:[#allocation8 + $0x1a0] sm:$0xff] }
 0xaa6   :  { %2941 = vmatpush1.msra.mxu0 %v6848_v1  ;;  %3012 = vmatpush1.msra.mxu1 %v6849_v5  ;;  %v5875_v1 = vld [vmem:[#allocation8 + $0x1b0] sm:$0xff]  ;;  %v5878_v5 = vld [vmem:[#allocation8 + $0x188] sm:$0xff] }
 0xaa7   :  { %2942 = vmatprep.subr.mxu0 %v6850_v0  ;;  %3013 = vmatprep.subr.mxu1 %v6851_v6  ;;  %v5881_v0 = vld [vmem:[#allocation8 + $0x198] sm:$0xff]  ;;  %v5884_v6 = vld [vmem:[#allocation8 + $0x180] sm:$0xff] }
 0xaa8   :  { %2943 = vmatpush1.msra.mxu0 %v6852_v9  ;;  %3014 = vmatpush1.msra.mxu1 %v6853_v36  ;;  %v5887_v9 = vld [vmem:[#allocation8 + $0x190] sm:$0xff]  ;;  %v5890_v36 = vld [vmem:[#allocation8 + $0x168] sm:$0xff] }
 0xaa9   :  { %2944 = vmatprep.subr.mxu0 %v6854_v2  ;;  %3015 = vmatprep.subr.mxu1 %v6855_v54  ;;  %v5893_v2 = vld [vmem:[#allocation8 + $0x178] sm:$0xff]  ;;  %v5896_v54 = vld [vmem:[#allocation8 + $0x160] sm:$0xff] }
 0xaaa   :  { %2945 = vmatpush1.msra.mxu0 %v6856_v8  ;;  %3016 = vmatpush1.msra.mxu1 %v6857_v7  ;;  %v5899_v8 = vld [vmem:[#allocation8 + $0x170] sm:$0xff]  ;;  %v5902_v7 = vld [vmem:[#allocation8 + $0x148] sm:$0xff] }
 0xaab   :  { %2946 = vmatprep.subr.mxu0 %v6858_v18  ;;  %3017 = vmatprep.subr.mxu1 %v6859_v45  ;;  %v5905_v18 = vld [vmem:[#allocation8 + $0x158] sm:$0xff]  ;;  %v5908_v45 = vld [vmem:[#allocation8 + $0x140] sm:$0xff] }
 0xaac   :  { %2947 = vmatpush1.msra.mxu0 %v6860_v63  ;;  %2980 = vmatprep.mubr.f32.mxu0 %v6861_v58  ;;  %v5911_v63 = vld [vmem:[#allocation8 + $0x150] sm:$0xff] }
 0xaad   :  { %3018 = vmatpush1.msra.mxu1 %v6862_v11  ;;  %3051 = vmatprep.mubr.f32.mxu1 %v6861_v58  ;;  %v5914_v11 = vld [vmem:[#allocation8 + $0x128] sm:$0xff] }
 0xaae   :  { %3084 = vmatprep.subr.mxu0 %v5830_v10  ;;  %3155 = vmatprep.subr.mxu1 %v5833_v22 }
 0xb4d   :  { %v2814_v26 = vpop.f32.mrf.mxu0  ;;  %v2885_v33 = vpop.f32.mrf.mxu1 }
 0xb4e   :  { %v2890_v31 = vadd.f32 %v2814_v26, %v2003_v25  ;;  %v2892_v41 = vadd.f32 %v2885_v33, %v2116_v38  ;;  %v5920_v25 = vld [vmem:[#allocation8 + $0x120] sm:$0xff]  ;;  %v5923_v26 = vld [vmem:[#allocation8 + $0x130] sm:$0xff] }
 0xb4f   :  { %v2816_v59 = vpop.f32.mrf.mxu0  ;;  %v2887_v43 = vpop.f32.mrf.mxu1  ;;  %v5935_v33 = vld [vmem:[#allocation8 + $0x110] sm:$0xff]  ;;  %v5944_v38 = vld [vmem:[#allocation8 + $0xe0] sm:$0xff] }
 0xb50   :  { %v2894_v39 = vmul.f32 0.5, %v2890_v31  ;;  %v2891_v40 = vadd.f32 %v2816_v59, %v2005_v30  ;;  %v2893_v34 = vadd.f32 %v2887_v43, %v2118_v44  ;;  %v5929_v30 = vld [vmem:[#allocation8 + $0x118] sm:$0xff]  ;;  %v5932_v31 = vld [vmem:[#allocation8 + $0x100] sm:$0xff]  ;;  %v5938_v59 = vld [vmem:[#allocation8 + $0xe8] sm:$0xff] }
 0xb51   :  { %v5959_v43 = vld [vmem:[#allocation8 + $0xd0] sm:$0xff]  ;;  %v5965_v44 = vld [vmem:[#allocation8 + $0xb8] sm:$0xff] }
 0xb52   :  { %3871 = vtanh.f32 %v2894_v39  ;;  %v2898_v42 = vmul.f32 0.5, %v2891_v40  ;;  %v2903_v56 = vmul.f32 0.5, %v2893_v34  ;;  %v5947_v39 = vld [vmem:[#allocation8 + $0xf0] sm:$0xff]  ;;  %v5950_v40 = vld [vmem:[#allocation8 + $0xc8] sm:$0xff]  ;;  %v5968_v34 = vld [vmem:[#allocation8 + $0xa0] sm:$0xff] }
 0xb54   :  { %3873 = vtanh.f32 %v2898_v42  ;;  %v5956_v42 = vld [vmem:[#allocation8 + $0xc0] sm:$0xff] }
 0xb55   :  { %3875 = vtanh.f32 %v2892_v41  ;;  %v5953_v41 = vld [vmem:[#allocation8 + $0xd8] sm:$0xff] }
 0xb56   :  { %3877 = vtanh.f32 %v2903_v56  ;;  %v5971_v56 = vld [vmem:[#allocation8 + $0xb0] sm:$0xff] }
 0xb57   :  { %6871 = vst [vmem:[#allocation20_spill] sm:$0xff] %v5971_v56 }
 0xb5f   :  { %v3872_v16 = vpop.eup %3871 }
 0xb60   :  { %v2896_v48 = vmul.f32 0.5, %v3872_v16  ;;  %v5974_v16 = vld [vmem:[#allocation8 + $0x88] sm:$0xff] }
 0xb61   :  { %v3874_v50 = vpop.eup %3873  ;;  %6872 = vst [vmem:[#allocation22_spill] sm:$0xff] %v5974_v16 }
 0xb62   :  { %v2897_v49 = vadd.f32 0.5, %v2896_v48  ;;  %v2900_v57 = vmul.f32 0.5, %v3874_v50  ;;  %v3876_v17 = vpop.eup %3875  ;;  %v5977_v48 = vld [vmem:[#allocation8 + $0x98] sm:$0xff]  ;;  %v5980_v50 = vld [vmem:[#allocation8 + $0x80] sm:$0xff] }
 0xb63   :  { %v3878_v61 = vpop.eup %3877  ;;  %6873 = vst [vmem:[#allocation12_spill] sm:$0xff] %v5977_v48  ;;  %6874 = vst [vmem:[#allocation38_spill] sm:$0xff] %v5980_v50 }
 0xb64   :  { %v2901_v46 = vadd.f32 0.5, %v2900_v57  ;;  %v2908_v19 = vmul.f32 %v3876_v17, %v2897_v49  ;;  %v2905_v15 = vmul.f32 0.5, %v3878_v61  ;;  %v5983_v49 = vld [vmem:[#allocation8 + $0x90] sm:$0xff]  ;;  %v5986_v57 = vld [vmem:[#allocation8 + $0x68] sm:$0xff]  ;;  %v5989_v17 = vld [vmem:[#allocation8 + $0x78] sm:$0xff] }
 0xb65   :  { %6875 = vst [vmem:[#allocation23_spill] sm:$0xff] %v5983_v49  ;;  %6876 = vst [vmem:[#allocation25_spill] sm:$0xff] %v5986_v57  ;;  %v6001_v61 = vld [vmem:[#allocation8 + $0x58] sm:$0xff] }
 0xb66   :  { %v2907_v53 = vmul.f32 %v2901_v46, %v5763_v4  ;;  %v2906_v21 = vadd.f32 0.5, %v2905_v15  ;;  %v5854_v4 = vld [vmem:[#allocation8 + $0x1c8] sm:$0xff]  ;;  %6877 = vst [vmem:[#allocation24_spill] sm:$0xff] %v5989_v17  ;;  %v5992_v46 = vld [vmem:[#allocation8 + $0x60] sm:$0xff]  ;;  %6881 = vst [vmem:[#allocation41_spill] sm:$0xff] %v6001_v61 }
 0xb67   :  { %6878 = vst [vmem:[#allocation26_spill] sm:$0xff] %v5992_v46  ;;  %v6004_v15 = vld [vmem:[#allocation8 + $0x40] sm:$0xff] }
 0xb68   :  { %v5845_v52 = vadd.f32 %v2908_v19, %v2907_v53  ;;  %v5995_v19 = vld [vmem:[#allocation8 + $0x70] sm:$0xff]  ;;  %v5998_v53 = vld [vmem:[#allocation8 + $0x48] sm:$0xff]  ;;  %6882 = vst [vmem:[#allocation42_spill] sm:$0xff] %v6004_v15 }
 0xb69   :  { %6879 = vst [vmem:[#allocation40_spill] sm:$0xff] %v5995_v19  ;;  %6880 = vst [vmem:[#allocation39_spill] sm:$0xff] %v5998_v53 }
 0xb6a   :  { %3879 = vtanh.f32 %v5845_v52 }
 0xb77   :  { %v3880_v12 = vpop.eup %3879 }
 0xb78   :  { %v2911_v35 = vmul.f32 %v3880_v12, %v2906_v21  ;;  %v6007_v21 = vld [vmem:[#allocation8 + $0x50] sm:$0xff]  ;;  %v6010_v12 = vld [vmem:[#allocation8 + $0x28] sm:$0xff] }
 0xb79   :  { %6883 = vst [vmem:[#allocation44_spill] sm:$0xff] %v6007_v21  ;;  %6884 = vst [vmem:[#allocation43_spill] sm:$0xff] %v6010_v12 }
 0xb7a   :  { %2981 = vmatmul.mubr.f32.vlgmr.msra.gmra.mxu0 %v2911_v35  ;;  %3052 = vmatmul.mubr.f32.vlgmr.msra.gmra.mxu1 %v2911_v35  ;;  %v6013_v35 = vld [vmem:[#allocation8 + $0x38] sm:$0xff] }
 0xb7b   :  { %3085 = vmatpush1.msra.mxu0 %v5848_v14  ;;  %3156 = vmatpush1.msra.mxu1 %v5851_v51  ;;  %6885 = vst [vmem:[#allocation45_spill] sm:$0xff] %v6013_v35 }
 0xb7c   :  { %3086 = vmatprep.subr.mxu0 %v5854_v4  ;;  %3157 = vmatprep.subr.mxu1 %v5857_v60 }
 0xb7d   :  { %3087 = vmatpush1.msra.mxu0 %v5860_v32  ;;  %3158 = vmatpush1.msra.mxu1 %v5863_v55 }
 0xb7e   :  { %3088 = vmatprep.subr.mxu0 %v5866_v3  ;;  %3159 = vmatprep.subr.mxu1 %v5869_v62 }
 0xb7f   :  { %3089 = vmatpush1.msra.mxu0 %v5872_v27  ;;  %3160 = vmatpush1.msra.mxu1 %v5875_v1 }
 0xb80   :  { %3090 = vmatprep.subr.mxu0 %v5878_v5  ;;  %3161 = vmatprep.subr.mxu1 %v5881_v0 }
 0xb81   :  { %3091 = vmatpush1.msra.mxu0 %v5884_v6  ;;  %3162 = vmatpush1.msra.mxu1 %v5887_v9 }
 0xb82   :  { %3092 = vmatprep.subr.mxu0 %v5890_v36  ;;  %3163 = vmatprep.subr.mxu1 %v5893_v2 }
 0xb83   :  { %3093 = vmatpush1.msra.mxu0 %v5896_v54  ;;  %3164 = vmatpush1.msra.mxu1 %v5899_v8 }
 0xb84   :  { %3094 = vmatprep.subr.mxu0 %v5902_v7  ;;  %3165 = vmatprep.subr.mxu1 %v5905_v18 }
 0xb85   :  { %3095 = vmatpush1.msra.mxu0 %v5908_v45  ;;  %3166 = vmatpush1.msra.mxu1 %v5911_v63 }
 0xb86   :  { %3096 = vmatprep.subr.mxu0 %v5914_v11  ;;  %3167 = vmatprep.subr.mxu1 %v5917_v24 }
 0xb87   :  { %3097 = vmatpush1.msra.mxu0 %v5920_v25  ;;  %3168 = vmatpush1.msra.mxu1 %v5923_v26 }
 0xb88   :  { %3098 = vmatprep.subr.mxu0 %v5926_v29  ;;  %3169 = vmatprep.subr.mxu1 %v5929_v30 }
 0xb89   :  { %3099 = vmatpush1.msra.mxu0 %v5932_v31  ;;  %3170 = vmatpush1.msra.mxu1 %v5935_v33 }
 0xb8a   :  { %3100 = vmatprep.subr.mxu0 %v5938_v59  ;;  %3171 = vmatprep.subr.mxu1 %v5941_v37 }
 0xb8b   :  { %3101 = vmatpush1.msra.mxu0 %v5944_v38  ;;  %3172 = vmatpush1.msra.mxu1 %v5947_v39 }
 0xb8c   :  { %3102 = vmatprep.subr.mxu0 %v5950_v40  ;;  %3173 = vmatprep.subr.mxu1 %v5953_v41 }
 0xb8d   :  { %3103 = vmatpush1.msra.mxu0 %v5956_v42  ;;  %3174 = vmatpush1.msra.mxu1 %v5959_v43 }
 0xb8e   :  { %3104 = vmatprep.subr.mxu0 %v5962_v20  ;;  %3175 = vmatprep.subr.mxu1 %v5965_v44 }
 0xb8f   :  { %3105 = vmatpush1.msra.mxu0 %v5968_v34  ;;  %3176 = vmatpush1.msra.mxu1 %v5971_v56 }
 0xb90   :  { %3106 = vmatprep.subr.mxu0 %v5974_v16  ;;  %3177 = vmatprep.subr.mxu1 %v5977_v48 }
 0xb91   :  { %3107 = vmatpush1.msra.mxu0 %v5980_v50  ;;  %3178 = vmatpush1.msra.mxu1 %v5983_v49 }
 0xb92   :  { %3108 = vmatprep.subr.mxu0 %v5986_v57  ;;  %3179 = vmatprep.subr.mxu1 %v5989_v17  ;;  %v6894_v57 = vld [vmem:[#allocation32_spill] sm:$0xff] }
 0xb93   :  { %3109 = vmatpush1.msra.mxu0 %v5992_v46  ;;  %3180 = vmatpush1.msra.mxu1 %v5995_v19  ;;  %v2122_v49 = vadd.f32 %v6894_v57, %v5598_v47 }
 0xb94   :  { %3110 = vmatprep.subr.mxu0 %v5998_v53  ;;  %3181 = vmatprep.subr.mxu1 %v6001_v61  ;;  %v6016_v53 = vld [vmem:[#allocation8 + $0x20] sm:$0xff]  ;;  %v6019_v61 = vld [vmem:[#allocation8 + $0x30] sm:$0xff] }
 0xb95   :  { %3111 = vmatpush1.msra.mxu0 %v6004_v15  ;;  %3182 = vmatpush1.msra.mxu1 %v6007_v21  ;;  %6886 = vst [vmem:[#allocation46_spill] sm:$0xff] %v6016_v53  ;;  %6887 = vst [vmem:[#allocation48_spill] sm:$0xff] %v6019_v61  ;;  %v6022_v15 = vld [vmem:[#allocation8 + $0x8] sm:$0xff]  ;;  %v6025_v21 = vld [vmem:[#allocation8 + $0x18] sm:$0xff] }
 0xb96   :  { %3112 = vmatprep.subr.mxu0 %v6010_v12  ;;  %3183 = vmatprep.subr.mxu1 %v6013_v35  ;;  %6888 = vst [vmem:[#allocation47_spill] sm:$0xff] %v6022_v15  ;;  %6889 = vst [vmem:[#allocation49_spill] sm:$0xff] %v6025_v21  ;;  %v6028_v12 = vld [vmem:[#allocation8] sm:$0xff]  ;;  %v6032_v35 = vld [vmem:[#allocation8 + $0x10] sm:$0xff] }
 0xb97   :  { %3113 = vmatpush1.msra.mxu0 %v6016_v53  ;;  %3184 = vmatpush1.msra.mxu1 %v6019_v61  ;;  %6890 = vst [vmem:[#allocation36_spill] sm:$0xff] %v6028_v12  ;;  %6891 = vst [vmem:[#allocation35_spill] sm:$0xff] %v6032_v35  ;;  %v6893_v53 = vld [vmem:[#allocation33_spill] sm:$0xff] }
 0xb98   :  { %3114 = vmatprep.subr.mxu0 %v6022_v15  ;;  %3185 = vmatprep.subr.mxu1 %v6025_v21  ;;  %v6892_v15 = vld [vmem:[#allocation31_spill] sm:$0xff]  ;;  %v2011_v19 = vadd.f32 %v6893_v53, %v6867_v28 }
 0xb99   :  { %3115 = vmatpush1.msra.mxu0 %v6028_v12  ;;  %3148 = vmatprep.mubr.f32.mxu0 %v6861_v58  ;;  %v2009_v61 = vadd.f32 %v6892_v15, %v6865_v23  ;;  %v6895_v15 = vld [vmem:[#allocation54_spill] sm:$0xff] }
 0xb9a   :  { %3186 = vmatpush1.msra.mxu1 %v6032_v35  ;;  %3219 = vmatprep.mubr.f32.mxu1 %v6861_v58  ;;  %v2124_v23 = vadd.f32 %v6895_v15, %v5604_v13  ;;  %v6903_v15 = vld [vmem:[#allocation26_spill] sm:$0xff] }
 0xb9b   :  { %3252 = vmatprep.subr.mxu0 %v5830_v10  ;;  %3323 = vmatprep.subr.mxu1 %v5833_v22 }
 0xc3a   :  { %v2982_v21 = vpop.f32.mrf.mxu0  ;;  %v3053_v46 = vpop.f32.mrf.mxu1 }
 0xc3b   :  { %v3058_v12 = vadd.f32 %v2982_v21, %v2009_v61  ;;  %v3060_v58 = vadd.f32 %v3053_v46, %v2122_v49 }
 0xc3c   :  { %v2984_v17 = vpop.f32.mrf.mxu0  ;;  %v3055_v22 = vpop.f32.mrf.mxu1 }
 0xc3d   :  { %v3062_v35 = vmul.f32 0.5, %v3058_v12  ;;  %v3059_v50 = vadd.f32 %v2984_v17, %v2011_v19  ;;  %v3061_v48 = vadd.f32 %v3055_v22, %v2124_v23  ;;  %v6901_v19 = vld [vmem:[#allocation25_spill] sm:$0xff] }
 0xc3f   :  { %3881 = vtanh.f32 %v3062_v35  ;;  %v3066_v10 = vmul.f32 0.5, %v3059_v50  ;;  %v3071_v16 = vmul.f32 0.5, %v3061_v48  ;;  %v6900_v48 = vld [vmem:[#allocation23_spill] sm:$0xff]  ;;  %v6902_v35 = vld [vmem:[#allocation24_spill] sm:$0xff] }
 0xc41   :  { %3883 = vtanh.f32 %v3066_v10 }
 0xc42   :  { %3885 = vtanh.f32 %v3060_v58 }
 0xc43   :  { %3887 = vtanh.f32 %v3071_v16  ;;  %v6899_v16 = vld [vmem:[#allocation38_spill] sm:$0xff] }
 0xc4c   :  { %v3882_v53 = vpop.eup %3881 }
 0xc4d   :  { %v3064_v61 = vmul.f32 0.5, %v3882_v53  ;;  %v6904_v53 = vld [vmem:[#allocation40_spill] sm:$0xff] }
 0xc4e   :  { %v3884_v21 = vpop.eup %3883 }
 0xc4f   :  { %v3065_v28 = vadd.f32 0.5, %v3064_v61  ;;  %v3068_v56 = vmul.f32 0.5, %v3884_v21  ;;  %v3886_v57 = vpop.eup %3885  ;;  %v6905_v61 = vld [vmem:[#allocation39_spill] sm:$0xff]  ;;  %v6906_v21 = vld [vmem:[#allocation41_spill] sm:$0xff] }
 0xc50   :  { %v3888_v58 = vpop.eup %3887 }
 0xc51   :  { %v3069_v12 = vadd.f32 0.5, %v3068_v56  ;;  %v3076_v17 = vmul.f32 %v3886_v57, %v3065_v28  ;;  %v3073_v10 = vmul.f32 0.5, %v3888_v58  ;;  %v6896_v28 = vld [vmem:[#allocation20_spill] sm:$0xff]  ;;  %v6907_v57 = vld [vmem:[#allocation42_spill] sm:$0xff] }
 0xc52   :  { %v6898_v56 = vld [vmem:[#allocation12_spill] sm:$0xff]  ;;  %v6911_v58 = vld [vmem:[#allocation46_spill] sm:$0xff] }
 0xc53   :  { %v3075_v49 = vmul.f32 %v3069_v12, %v5845_v52  ;;  %v3074_v46 = vadd.f32 0.5, %v3073_v10  ;;  %v6897_v52 = vld [vmem:[#allocation22_spill] sm:$0xff]  ;;  %v6908_v12 = vld [vmem:[#allocation44_spill] sm:$0xff] }
 0xc54   :  { %v6912_v10 = vld [vmem:[#allocation48_spill] sm:$0xff] }
 0xc55   :  { %v6047_v50 = vadd.f32 %v3076_v17, %v3075_v49  ;;  %v6909_v17 = vld [vmem:[#allocation43_spill] sm:$0xff]  ;;  %v6910_v49 = vld [vmem:[#allocation45_spill] sm:$0xff] }
 0xc57   :  { %3889 = vtanh.f32 %v6047_v50 }
 0xc64   :  { %v3890_v22 = vpop.eup %3889 }
 0xc65   :  { %v3079_v23 = vmul.f32 %v3890_v22, %v3074_v46  ;;  %v6913_v46 = vld [vmem:[#allocation47_spill] sm:$0xff]  ;;  %v6914_v22 = vld [vmem:[#allocation49_spill] sm:$0xff] }
 0xc67   :  { %3149 = vmatmul.mubr.f32.vlgmr.msra.gmra.mxu0 %v3079_v23  ;;  %3220 = vmatmul.mubr.f32.vlgmr.msra.gmra.mxu1 %v3079_v23  ;;  %v6915_v23 = vld [vmem:[#allocation36_spill] sm:$0xff] }
 0xc68   :  { %3253 = vmatpush1.msra.mxu0 %v5848_v14  ;;  %3324 = vmatpush1.msra.mxu1 %v5851_v51 }
 0xc69   :  { %3254 = vmatprep.subr.mxu0 %v5854_v4  ;;  %3325 = vmatprep.subr.mxu1 %v5857_v60 }
 0xc6a   :  { %3255 = vmatpush1.msra.mxu0 %v5860_v32  ;;  %3326 = vmatpush1.msra.mxu1 %v5863_v55 }
 0xc6b   :  { %3256 = vmatprep.subr.mxu0 %v5866_v3  ;;  %3327 = vmatprep.subr.mxu1 %v5869_v62 }
 0xc6c   :  { %3257 = vmatpush1.msra.mxu0 %v5872_v27  ;;  %3328 = vmatpush1.msra.mxu1 %v5875_v1 }
 0xc6d   :  { %3258 = vmatprep.subr.mxu0 %v5878_v5  ;;  %3329 = vmatprep.subr.mxu1 %v5881_v0 }
 0xc6e   :  { %3259 = vmatpush1.msra.mxu0 %v5884_v6  ;;  %3330 = vmatpush1.msra.mxu1 %v5887_v9 }
 0xc6f   :  { %3260 = vmatprep.subr.mxu0 %v5890_v36  ;;  %3331 = vmatprep.subr.mxu1 %v5893_v2 }
 0xc70   :  { %3261 = vmatpush1.msra.mxu0 %v5896_v54  ;;  %3332 = vmatpush1.msra.mxu1 %v5899_v8 }
 0xc71   :  { %3262 = vmatprep.subr.mxu0 %v5902_v7  ;;  %3333 = vmatprep.subr.mxu1 %v5905_v18 }
 0xc72   :  { %3263 = vmatpush1.msra.mxu0 %v5908_v45  ;;  %3334 = vmatpush1.msra.mxu1 %v5911_v63 }
 0xc73   :  { %3264 = vmatprep.subr.mxu0 %v5914_v11  ;;  %3335 = vmatprep.subr.mxu1 %v5917_v24 }
 0xc74   :  { %3265 = vmatpush1.msra.mxu0 %v5920_v25  ;;  %3336 = vmatpush1.msra.mxu1 %v5923_v26 }
 0xc75   :  { %3266 = vmatprep.subr.mxu0 %v5926_v29  ;;  %3337 = vmatprep.subr.mxu1 %v5929_v30 }
 0xc76   :  { %3267 = vmatpush1.msra.mxu0 %v5932_v31  ;;  %3338 = vmatpush1.msra.mxu1 %v5935_v33 }
 0xc77   :  { %3268 = vmatprep.subr.mxu0 %v5938_v59  ;;  %3339 = vmatprep.subr.mxu1 %v5941_v37 }
 0xc78   :  { %3269 = vmatpush1.msra.mxu0 %v5944_v38  ;;  %3340 = vmatpush1.msra.mxu1 %v5947_v39 }
 0xc79   :  { %3270 = vmatprep.subr.mxu0 %v5950_v40  ;;  %3341 = vmatprep.subr.mxu1 %v5953_v41 }
 0xc7a   :  { %3271 = vmatpush1.msra.mxu0 %v5956_v42  ;;  %3342 = vmatpush1.msra.mxu1 %v5959_v43 }
 0xc7b   :  { %3272 = vmatprep.subr.mxu0 %v5962_v20  ;;  %3343 = vmatprep.subr.mxu1 %v5965_v44 }
 0xc7c   :  { %3273 = vmatpush1.msra.mxu0 %v5968_v34  ;;  %3344 = vmatpush1.msra.mxu1 %v6896_v28 }
 0xc7d   :  { %3274 = vmatprep.subr.mxu0 %v6897_v52  ;;  %3345 = vmatprep.subr.mxu1 %v6898_v56 }
 0xc7e   :  { %3275 = vmatpush1.msra.mxu0 %v6899_v16  ;;  %3346 = vmatpush1.msra.mxu1 %v6900_v48 }
 0xc7f   :  { %3276 = vmatprep.subr.mxu0 %v6901_v19  ;;  %3347 = vmatprep.subr.mxu1 %v6902_v35  ;;  %v6924_v19 = vld [vmem:[#allocation55_spill] sm:$0xff] }
 0xc80   :  { %3277 = vmatpush1.msra.mxu0 %v6903_v15  ;;  %3348 = vmatpush1.msra.mxu1 %v6904_v53  ;;  %v6922_v53 = vld [vmem:[#allocation61_spill] sm:$0xff]  ;;  %v2128_v48 = vadd.f32 %v6924_v19, %v5598_v47 }
 0xc81   :  { %3278 = vmatprep.subr.mxu0 %v6905_v61  ;;  %3349 = vmatprep.subr.mxu1 %v6906_v21  ;;  %v6916_v61 = vmov 0.0   ;;  %v6917_v21 = vld [vmem:[#allocation35_spill] sm:$0xff] }
 0xc82   :  { %3279 = vmatpush1.msra.mxu0 %v6907_v57  ;;  %3350 = vmatpush1.msra.mxu1 %v6908_v12  ;;  %v6918_v12 = vld [vmem:[#allocation19_spill] sm:$0xff] }
 0xc83   :  { %3280 = vmatprep.subr.mxu0 %v6909_v17  ;;  %3351 = vmatprep.subr.mxu1 %v6910_v49  ;;  %v6919_v17 = vld [vmem:[#allocation21_spill] sm:$0xff]  ;;  %v6920_v49 = vld [vmem:[#allocation58_spill] sm:$0xff] }
 0xc84   :  { %3281 = vmatpush1.msra.mxu0 %v6911_v58  ;;  %3352 = vmatpush1.msra.mxu1 %v6912_v10  ;;  %v6921_v58 = vld [vmem:[#allocation56_spill] sm:$0xff] }
 0xc85   :  { %3282 = vmatprep.subr.mxu0 %v6913_v46  ;;  %3353 = vmatprep.subr.mxu1 %v6914_v22  ;;  %v2015_v57 = vadd.f32 %v6921_v58, %v6920_v49  ;;  %v6923_v46 = vld [vmem:[#allocation57_spill] sm:$0xff]  ;;  %v6925_v58 = vld [vmem:[#allocation62_spill] sm:$0xff] }
 0xc86   :  { %3283 = vmatpush1.msra.mxu0 %v6915_v23  ;;  %3316 = vmatprep.mubr.f32.mxu0 %v6916_v61  ;;  %v2017_v15 = vadd.f32 %v6923_v46, %v6922_v53  ;;  %v2130_v49 = vadd.f32 %v6925_v58, %v5604_v13 }
 0xc87   :  { %3354 = vmatpush1.msra.mxu1 %v6917_v21  ;;  %3387 = vmatprep.mubr.f32.mxu1 %v6916_v61 }
 0xc88   :  { %3420 = vmatprep.subr.mxu0 %v6918_v12  ;;  %3491 = vmatprep.subr.mxu1 %v6919_v17 }
 0xd27   :  { %v3150_v10 = vpop.f32.mrf.mxu0  ;;  %v3221_v35 = vpop.f32.mrf.mxu1 }
 0xd28   :  { %v3226_v22 = vadd.f32 %v3150_v10, %v2015_v57  ;;  %v3228_v61 = vadd.f32 %v3221_v35, %v2128_v48 }
 0xd29   :  { %v3152_v23 = vpop.f32.mrf.mxu0  ;;  %v3223_v17 = vpop.f32.mrf.mxu1 }
 0xd2a   :  { %v3230_v21 = vmul.f32 0.5, %v3226_v22  ;;  %v3227_v16 = vadd.f32 %v3152_v23, %v2017_v15  ;;  %v3229_v56 = vadd.f32 %v3223_v17, %v2130_v49 }
 0xd2c   :  { %3891 = vtanh.f32 %v3230_v21  ;;  %v3234_v12 = vmul.f32 0.5, %v3227_v16  ;;  %v3239_v52 = vmul.f32 0.5, %v3229_v56 }
 0xd2e   :  { %3893 = vtanh.f32 %v3234_v12 }
 0xd2f   :  { %3895 = vtanh.f32 %v3228_v61 }
 0xd30   :  { %3897 = vtanh.f32 %v3239_v52 }
 0xd39   :  { %v3892_v46 = vpop.eup %3891 }
 0xd3a   :  { %v3232_v57 = vmul.f32 0.5, %v3892_v46 }
 0xd3b   :  { %v3894_v10 = vpop.eup %3893 }
 0xd3c   :  { %v3233_v53 = vadd.f32 0.5, %v3232_v57  ;;  %v3236_v28 = vmul.f32 0.5, %v3894_v10  ;;  %v3896_v19 = vpop.eup %3895 }
 0xd3d   :  { %v3898_v35 = vpop.eup %3897 }
 0xd3e   :  { %v3237_v22 = vadd.f32 0.5, %v3236_v28  ;;  %v3244_v15 = vmul.f32 %v3896_v19, %v3233_v53  ;;  %v3241_v61 = vmul.f32 0.5, %v3898_v35 }
 0xd40   :  { %v3243_v48 = vmul.f32 %v3237_v22, %v6047_v50  ;;  %v3242_v21 = vadd.f32 0.5, %v3241_v61 }
 0xd42   :  { %v6125_v16 = vadd.f32 %v3244_v15, %v3243_v48 }
 0xd44   :  { %3899 = vtanh.f32 %v6125_v16 }
 0xd51   :  { %v3900_v49 = vpop.eup %3899 }
 0xd52   :  { %v3247_v56 = vmul.f32 %v3900_v49, %v3242_v21  ;;  %v3599_v21 = vld [vmem:[%s6291_s7 + $0x78] sm:$0xff]  ;;  %v3597_v49 = vld [vmem:[%s6291_s7 + $0x68] sm:$0xff] }
 0xd54   :  { %3317 = vmatmul.mubr.f32.vlgmr.msra.gmra.mxu0 %v3247_v56  ;;  %3388 = vmatmul.mubr.f32.vlgmr.msra.gmra.mxu1 %v3247_v56  ;;  %v3596_v56 = vld [vmem:[%s6291_s7 + $0x60] sm:$0xff] }
 0xd55   :  { %3421 = vmatpush1.msra.mxu0 %v5848_v14  ;;  %3492 = vmatpush1.msra.mxu1 %v5851_v51  ;;  %v6926_v14 = vld [vmem:[#allocation20_spill] sm:$0xff]  ;;  %v6927_v51 = vld [vmem:[#allocation22_spill] sm:$0xff] }
 0xd56   :  { %3422 = vmatprep.subr.mxu0 %v5854_v4  ;;  %3493 = vmatprep.subr.mxu1 %v5857_v60  ;;  %v6928_v4 = vld [vmem:[#allocation12_spill] sm:$0xff]  ;;  %v6929_v60 = vld [vmem:[#allocation38_spill] sm:$0xff] }
 0xd57   :  { %3423 = vmatpush1.msra.mxu0 %v5860_v32  ;;  %3494 = vmatpush1.msra.mxu1 %v5863_v55  ;;  %v6930_v32 = vld [vmem:[#allocation23_spill] sm:$0xff]  ;;  %v6931_v55 = vld [vmem:[#allocation25_spill] sm:$0xff] }
 0xd58   :  { %3424 = vmatprep.subr.mxu0 %v5866_v3  ;;  %3495 = vmatprep.subr.mxu1 %v5869_v62  ;;  %v6932_v3 = vld [vmem:[#allocation24_spill] sm:$0xff]  ;;  %v6933_v62 = vld [vmem:[#allocation26_spill] sm:$0xff] }
 0xd59   :  { %3425 = vmatpush1.msra.mxu0 %v5872_v27  ;;  %3496 = vmatpush1.msra.mxu1 %v5875_v1  ;;  %v6934_v27 = vld [vmem:[#allocation40_spill] sm:$0xff]  ;;  %v6935_v1 = vld [vmem:[#allocation39_spill] sm:$0xff] }
 0xd5a   :  { %3426 = vmatprep.subr.mxu0 %v5878_v5  ;;  %3497 = vmatprep.subr.mxu1 %v5881_v0  ;;  %v6936_v5 = vld [vmem:[#allocation41_spill] sm:$0xff]  ;;  %v6937_v0 = vld [vmem:[#allocation42_spill] sm:$0xff] }
 0xd5b   :  { %3427 = vmatpush1.msra.mxu0 %v5884_v6  ;;  %3498 = vmatpush1.msra.mxu1 %v5887_v9  ;;  %v6938_v6 = vld [vmem:[#allocation44_spill] sm:$0xff]  ;;  %v6939_v9 = vld [vmem:[#allocation43_spill] sm:$0xff] }
 0xd5c   :  { %3428 = vmatprep.subr.mxu0 %v5890_v36  ;;  %3499 = vmatprep.subr.mxu1 %v5893_v2  ;;  %v6940_v36 = vld [vmem:[#allocation45_spill] sm:$0xff]  ;;  %v6941_v2 = vld [vmem:[#allocation46_spill] sm:$0xff] }
 0xd5d   :  { %3429 = vmatpush1.msra.mxu0 %v5896_v54  ;;  %3500 = vmatpush1.msra.mxu1 %v5899_v8  ;;  %v6942_v54 = vld [vmem:[#allocation48_spill] sm:$0xff]  ;;  %v6943_v8 = vld [vmem:[#allocation47_spill] sm:$0xff] }
 0xd5e   :  { %3430 = vmatprep.subr.mxu0 %v5902_v7  ;;  %3501 = vmatprep.subr.mxu1 %v5905_v18  ;;  %v6944_v7 = vld [vmem:[#allocation49_spill] sm:$0xff]  ;;  %v6945_v18 = vld [vmem:[#allocation36_spill] sm:$0xff] }
 0xd5f   :  { %3431 = vmatpush1.msra.mxu0 %v5908_v45  ;;  %3502 = vmatpush1.msra.mxu1 %v5911_v63  ;;  %v6946_v45 = vmov 0.0   ;;  %v6947_v63 = vld [vmem:[#allocation35_spill] sm:$0xff] }
 0xd60   :  { %3432 = vmatprep.subr.mxu0 %v5914_v11  ;;  %3503 = vmatprep.subr.mxu1 %v5917_v24  ;;  %v6948_v11 = vld [vmem:[#allocation58_spill] sm:$0xff]  ;;  %v6949_v24 = vld [vmem:[#allocation13_spill] sm:$0xff] }
 0xd61   :  { %3433 = vmatpush1.msra.mxu0 %v5920_v25  ;;  %3504 = vmatpush1.msra.mxu1 %v5923_v26  ;;  %v2021_v25 = vadd.f32 %v6949_v24, %v6948_v11 }
 0xd62   :  { %3434 = vmatprep.subr.mxu0 %v5926_v29  ;;  %3505 = vmatprep.subr.mxu1 %v5929_v30  ;;  %v6950_v29 = vld [vmem:[#allocation61_spill] sm:$0xff] }
 0xd63   :  { %3435 = vmatpush1.msra.mxu0 %v5932_v31  ;;  %3506 = vmatpush1.msra.mxu1 %v5935_v33  ;;  %v6951_v30 = vld [vmem:[#allocation37_spill] sm:$0xff] }
 0xd64   :  { %3436 = vmatprep.subr.mxu0 %v5938_v59  ;;  %3507 = vmatprep.subr.mxu1 %v5941_v37  ;;  %v2023_v31 = vadd.f32 %v6951_v30, %v6950_v29 }
 0xd65   :  { %3437 = vmatpush1.msra.mxu0 %v5944_v38  ;;  %3508 = vmatpush1.msra.mxu1 %v5947_v39  ;;  %v6952_v38 = vld [vmem:[#allocation14_spill] sm:$0xff] }
 0xd66   :  { %3438 = vmatprep.subr.mxu0 %v5950_v40  ;;  %3509 = vmatprep.subr.mxu1 %v5953_v41  ;;  %v2134_v39 = vadd.f32 %v6952_v38, %v5598_v47 }
 0xd67   :  { %3439 = vmatpush1.msra.mxu0 %v5956_v42  ;;  %3510 = vmatpush1.msra.mxu1 %v5959_v43 }
 0xd68   :  { %3440 = vmatprep.subr.mxu0 %v5962_v20  ;;  %3511 = vmatprep.subr.mxu1 %v5965_v44  ;;  %v6953_v44 = vld [vmem:[#allocation11_spill] sm:$0xff] }
 0xd69   :  { %3441 = vmatpush1.msra.mxu0 %v5968_v34  ;;  %3512 = vmatpush1.msra.mxu1 %v6926_v14  ;;  %v2136_v34 = vadd.f32 %v6953_v44, %v5604_v13  ;;  %v3595_v14 = vld [vmem:[%s6291_s7 + $0x58] sm:$0xff] }
 0xd6a   :  { %3442 = vmatprep.subr.mxu0 %v6927_v51  ;;  %3513 = vmatprep.subr.mxu1 %v6928_v4  ;;  %v3594_v51 = vld [vmem:[%s6291_s7 + $0x50] sm:$0xff]  ;;  %v3593_v4 = vld [vmem:[%s6291_s7 + $0x48] sm:$0xff] }
 0xd6b   :  { %3443 = vmatpush1.msra.mxu0 %v6929_v60  ;;  %3514 = vmatpush1.msra.mxu1 %v6930_v32  ;;  %v3592_v60 = vld [vmem:[%s6291_s7 + $0x40] sm:$0xff]  ;;  %v3591_v32 = vld [vmem:[%s6291_s7 + $0x38] sm:$0xff] }
 0xd6c   :  { %3444 = vmatprep.subr.mxu0 %v6931_v55  ;;  %3515 = vmatprep.subr.mxu1 %v6932_v3  ;;  %v3590_v55 = vld [vmem:[%s6291_s7 + $0x30] sm:$0xff]  ;;  %v3589_v3 = vld [vmem:[%s6291_s7 + $0x28] sm:$0xff] }
 0xd6d   :  { %3445 = vmatpush1.msra.mxu0 %v6933_v62  ;;  %3516 = vmatpush1.msra.mxu1 %v6934_v27  ;;  %v3588_v62 = vld [vmem:[%s6291_s7 + $0x20] sm:$0xff]  ;;  %v3587_v27 = vld [vmem:[%s6291_s7 + $0x18] sm:$0xff] }
 0xd6e   :  { %3446 = vmatprep.subr.mxu0 %v6935_v1  ;;  %3517 = vmatprep.subr.mxu1 %v6936_v5  ;;  %v3586_v1 = vld [vmem:[%s6291_s7 + $0x10] sm:$0xff]  ;;  %v3585_v5 = vld [vmem:[%s6291_s7 + $0x8] sm:$0xff] }
 0xd6f   :  { %3447 = vmatpush1.msra.mxu0 %v6937_v0  ;;  %3518 = vmatpush1.msra.mxu1 %v6938_v6  ;;  %v3584_v0 = vld [vmem:[%s6291_s7] sm:$0xff]  ;;  %v6954_v6 = vld [vmem:[#allocation60_spill] sm:$0xff] }
 0xd70   :  { %3448 = vmatprep.subr.mxu0 %v6939_v9  ;;  %3519 = vmatprep.subr.mxu1 %v6940_v36  ;;  %v2027_v9 = vadd.f32 %v6954_v6, %v6948_v11  ;;  %v6957_v11 = vld [vmem:[#allocation63_spill] sm:$0xff] }
 0xd71   :  { %3449 = vmatpush1.msra.mxu0 %v6941_v2  ;;  %3520 = vmatpush1.msra.mxu1 %v6942_v54  ;;  %v6955_v2 = vld [vmem:[#allocation34_spill] sm:$0xff] }
 0xd72   :  { %3450 = vmatprep.subr.mxu0 %v6943_v8  ;;  %3521 = vmatprep.subr.mxu1 %v6944_v7  ;;  %v2029_v54 = vadd.f32 %v6955_v2, %v6950_v29 }
 0xd73   :  { %3451 = vmatpush1.msra.mxu0 %v6945_v18  ;;  %3484 = vmatprep.mubr.f32.mxu0 %v6946_v45 }
 0xd74   :  { %3522 = vmatpush1.msra.mxu1 %v6947_v63  ;;  %3555 = vmatprep.mubr.f32.mxu1 %v6946_v45  ;;  %v6956_v63 = vld [vmem:[#allocation59_spill] sm:$0xff] }
 0xd75   :  { %3719 = vmatprep.subr.mxu0 %v6946_v45  ;;  %v2140_v24 = vadd.f32 %v6956_v63, %v5598_v47 }
 0xe14   :  { %v3318_v26 = vpop.f32.mrf.mxu0  ;;  %v3389_v59 = vpop.f32.mrf.mxu1 }
 0xe15   :  { %v3394_v33 = vadd.f32 %v3318_v26, %v2021_v25  ;;  %v3396_v42 = vadd.f32 %v3389_v59, %v2134_v39 }
 0xe16   :  { %v3320_v37 = vpop.f32.mrf.mxu0  ;;  %v3391_v20 = vpop.f32.mrf.mxu1 }
 0xe17   :  { %v3398_v40 = vmul.f32 0.5, %v3394_v33  ;;  %v3395_v41 = vadd.f32 %v3320_v37, %v2023_v31  ;;  %v3397_v50 = vadd.f32 %v3391_v20, %v2136_v34  ;;  %v2142_v33 = vadd.f32 %v6957_v11, %v5604_v13 }
 0xe19   :  { %3901 = vtanh.f32 %v3398_v40  ;;  %v3402_v43 = vmul.f32 0.5, %v3395_v41  ;;  %v3407_v28 = vmul.f32 0.5, %v3397_v50 }
 0xe1b   :  { %3903 = vtanh.f32 %v3402_v43 }
 0xe1c   :  { %3905 = vtanh.f32 %v3396_v42 }
 0xe1d   :  { %3907 = vtanh.f32 %v3407_v28 }
 0xe26   :  { %v3902_v52 = vpop.eup %3901 }
 0xe27   :  { %v3400_v53 = vmul.f32 0.5, %v3902_v52 }
 0xe28   :  { %v3904_v23 = vpop.eup %3903 }
 0xe29   :  { %v3401_v12 = vadd.f32 0.5, %v3400_v53  ;;  %v3404_v17 = vmul.f32 0.5, %v3904_v23  ;;  %v3906_v58 = vpop.eup %3905  ;;  %v3701_v53 = vld [vmem:[%s6292_s8] ss:$0 sm:$0xff] }
 0xe2a   :  { %v3908_v22 = vpop.eup %3907 }
 0xe2b   :  { %v3405_v46 = vadd.f32 0.5, %v3404_v17  ;;  %v3412_v57 = vmul.f32 %v3906_v58, %v3401_v12  ;;  %v3409_v15 = vmul.f32 0.5, %v3908_v22 }
 0xe2d   :  { %v3411_v10 = vmul.f32 %v3405_v46, %v6125_v16  ;;  %v3410_v48 = vadd.f32 0.5, %v3409_v15  ;;  %v3598_v16 = vld [vmem:[%s6291_s7 + $0x70] sm:$0xff] }
 0xe2f   :  { %v6202_v19 = vadd.f32 %v3412_v57, %v3411_v10 }
 0xe31   :  { %3909 = vtanh.f32 %v6202_v19 }
 0xe3e   :  { %v3910_v35 = vpop.eup %3909 }
 0xe3f   :  { %v3415_v61 = vmul.f32 %v3910_v35, %v3410_v48 }
 0xe41   :  { %3485 = vmatmul.mubr.f32.vlgmr.msra.gmra.mxu0 %v3415_v61  ;;  %3556 = vmatmul.mubr.f32.vlgmr.msra.gmra.mxu1 %v3415_v61 }
 0xe42   :  { %3720 = vmatpush3.msra.mxu0 %v3599_v21  ;;  %3751 = vmatprep.mubr.msk.f32.mxu0 %vm4119_vm1, %v6946_v45 }
 0xe43   :  { %3721 = vmatprep.subr.mxu0 %v6946_v45 }
 0xe44   :  { %3722 = vmatpush3.msra.mxu0 %v3598_v16 }
 0xe45   :  { %3723 = vmatprep.subr.mxu0 %v6946_v45 }
 0xe46   :  { %3724 = vmatpush3.msra.mxu0 %v3597_v49 }
 0xe47   :  { %3725 = vmatprep.subr.mxu0 %v6946_v45 }
 0xe48   :  { %3726 = vmatpush3.msra.mxu0 %v3596_v56 }
 0xe49   :  { %3727 = vmatprep.subr.mxu0 %v6946_v45 }
 0xe4a   :  { %3728 = vmatpush3.msra.mxu0 %v3595_v14 }
 0xe4b   :  { %3729 = vmatprep.subr.mxu0 %v6946_v45 }
 0xe4c   :  { %3730 = vmatpush3.msra.mxu0 %v3594_v51 }
 0xe4d   :  { %3731 = vmatprep.subr.mxu0 %v6946_v45 }
 0xe4e   :  { %3732 = vmatpush3.msra.mxu0 %v3593_v4 }
 0xe4f   :  { %3733 = vmatprep.subr.mxu0 %v6946_v45 }
 0xe50   :  { %3734 = vmatpush3.msra.mxu0 %v3592_v60 }
 0xe51   :  { %3735 = vmatprep.subr.mxu0 %v6946_v45 }
 0xe52   :  { %3736 = vmatpush3.msra.mxu0 %v3591_v32 }
 0xe53   :  { %3737 = vmatprep.subr.mxu0 %v6946_v45 }
 0xe54   :  { %3738 = vmatpush3.msra.mxu0 %v3590_v55 }
 0xe55   :  { %3739 = vmatprep.subr.mxu0 %v6946_v45 }
 0xe56   :  { %3740 = vmatpush3.msra.mxu0 %v3589_v3 }
 0xe57   :  { %3741 = vmatprep.subr.mxu0 %v6946_v45 }
 0xe58   :  { %3742 = vmatpush3.msra.mxu0 %v3588_v62 }
 0xe59   :  { %3743 = vmatprep.subr.mxu0 %v6946_v45 }
 0xe5a   :  { %3744 = vmatpush3.msra.mxu0 %v3587_v27 }
 0xe5b   :  { %3745 = vmatprep.subr.mxu0 %v6946_v45 }
 0xe5c   :  { %3746 = vmatpush3.msra.mxu0 %v3586_v1 }
 0xe5d   :  { %3747 = vmatprep.subr.mxu0 %v6946_v45 }
 0xe5e   :  { %3748 = vmatpush3.msra.mxu0 %v3585_v5 }
 0xe5f   :  { %3749 = vmatprep.subr.mxu0 %v6946_v45 }
 0xe60   :  { %3750 = vmatpush3.msra.mxu0 %v3584_v0 }
 0xf01   :  { %v3486_v36 = vpop.f32.mrf.mxu0  ;;  %v3557_v7 = vpop.f32.mrf.mxu1 }
 0xf02   :  { %v3562_v8 = vadd.f32 %v3486_v36, %v2027_v9  ;;  %v3564_v30 = vadd.f32 %v3557_v7, %v2140_v24 }
 0xf03   :  { %v3488_v18 = vpop.f32.mrf.mxu0  ;;  %v3559_v45 = vpop.f32.mrf.mxu1 }
 0xf04   :  { %v3566_v25 = vmul.f32 0.5, %v3562_v8  ;;  %v3563_v26 = vadd.f32 %v3488_v18, %v2029_v54  ;;  %v3565_v59 = vadd.f32 %v3559_v45, %v2142_v33 }
 0xf06   :  { %3911 = vtanh.f32 %v3566_v25  ;;  %v3570_v31 = vmul.f32 0.5, %v3563_v26  ;;  %v3575_v37 = vmul.f32 0.5, %v3565_v59 }
 0xf08   :  { %3913 = vtanh.f32 %v3570_v31 }
 0xf09   :  { %3915 = vtanh.f32 %v3564_v30 }
 0xf0a   :  { %3917 = vtanh.f32 %v3575_v37 }
 0xf13   :  { %v3912_v29 = vpop.eup %3911 }
 0xf14   :  { %v3568_v38 = vmul.f32 0.5, %v3912_v29 }
 0xf15   :  { %v3914_v39 = vpop.eup %3913 }
 0xf16   :  { %v3569_v40 = vadd.f32 0.5, %v3568_v38  ;;  %v3572_v41 = vmul.f32 0.5, %v3914_v39  ;;  %v3916_v47 = vpop.eup %3915 }
 0xf17   :  { %v3918_v34 = vpop.eup %3917 }
 0xf18   :  { %v3573_v42 = vadd.f32 0.5, %v3572_v41  ;;  %v3580_v43 = vmul.f32 %v3916_v47, %v3569_v40  ;;  %v3577_v50 = vmul.f32 0.5, %v3918_v34 }
 0xf1a   :  { %v3579_v20 = vmul.f32 %v3573_v42, %v6202_v19  ;;  %v3578_v28 = vadd.f32 0.5, %v3577_v50 }
 0xf1c   :  { %v3581_v44 = vadd.f32 %v3580_v43, %v3579_v20 }
 0xf1e   :  { %3919 = vtanh.f32 %v3581_v44 }
 0xf2b   :  { %v3920_v52 = vpop.eup %3919 }
 0xf2c   :  { %v3583_v13 = vmul.f32 %v3920_v52, %v3578_v28 }
 0xf2e   :  { %3752 = vmatmul.mubr.f32.vlgmr.msra.gmra.mxu0 %v3583_v13 }
 0xfee   :  { %v3673_v23 = vpop.f32.mrf.mxu0 }
 0xfef   :  { %v3674_v12 = vadd.f32 %v3701_v53, %v3673_v23 }
 0xff0   :  { %v3753_v17 = vpop.f32.mrf.mxu0 }
 0xff1   :  { %3678 = vst.msk [vmem:[%s6293_s9] sm:$0xff] %vm3677_vm2, %v3674_v12 }
 0xff2   :  { %3683 = vsyncpa [#allocation5], 1 }
 0xff3   :  { %3684 = vsyncpa [#allocation7], 1 }

</bundles_post_ra>
